<compile_context>
chip_gen: v6e
topology: v6e:2x2x1
jax: 0.10.0
libtpu: 0.0.40
codegen_flags: <defaults>
</compile_context>

<pallas_src>
import math
import jax
import jax.numpy as jnp
from jax.experimental import pallas as pl
from jax.experimental.pallas import tpu as pltpu

D_MODEL = 128
N_HEADS = 4
HEAD_DIM = D_MODEL // N_HEADS   # 32
D_FF = 512
N_LAYERS = 4
MOTION_DIM = 106
D_PAD = 128                     # projection weight padded to a full lane width
MAX_LEN = 600
LN_EPS = 1e-5                   # PyTorch TransformerEncoderLayer default


def _gelu_exact(x):
    # activation='gelu' in nn.TransformerEncoderLayer -> exact erf GELU
    return 0.5 * x * (1.0 + jax.lax.erf(x * (1.0 / math.sqrt(2.0))))


def _layernorm(x, w, b):
    mu = jnp.mean(x, axis=-1, keepdims=True)
    var = jnp.mean((x - mu) ** 2, axis=-1, keepdims=True)
    return (x - mu) * jax.lax.rsqrt(var + LN_EPS) * w + b


def style_encoder_kernel(motion_ref, stats_ref, bias0_ref, pw_ref,
                         wqkv_ref, bqkv_ref, wo_ref, bo_ref,
                         ln1w_ref, ln1b_ref, ln2w_ref, ln2b_ref,
                         w1_ref, b1_ref, w2_ref, b2_ref,
                         out_ref):
    # motion_ref block: (Bt, S, 106) -> Bt batch elements per grid step
    Bt, S, C = motion_ref.shape
    M = Bt * S
    bf16 = jnp.bfloat16

    x_in = motion_ref[...].reshape(M, C)                        # (M, 106) f32
    # norm_with_stats (multiply by precomputed 1/std), then cast for the MXU
    xn = ((x_in - stats_ref[0:1, :]) * stats_ref[1:2, :]).astype(bf16)
    if C < D_PAD:
        # zero-pad the contraction lanes in VMEM (no wrapper-side HBM pad)
        xn = jnp.concatenate([xn, jnp.zeros((M, D_PAD - C), bf16)], axis=-1)
    # motion_proj (padded 128x128) + (proj bias + PositionalEncoding row)
    x = jnp.dot(xn, pw_ref[...], preferred_element_type=jnp.float32) + bias0_ref[...]
    # TODO(synk): dropout layers are identity (inference mode); no stochastic drop.

    def split_heads(t, base):
        # (M, 3*D_MODEL) bf16 -> (N_HEADS*Bt, S, HEAD_DIM); head h = lanes
        # [base + h*32, base + (h+1)*32)  (same channel split as PyTorch MHA).
        parts = [t[:, base + h * HEAD_DIM: base + (h + 1) * HEAD_DIM]
                 for h in range(N_HEADS)]
        return jnp.stack(parts, axis=0).reshape(N_HEADS * Bt, S, HEAD_DIM)

    def layer_body(l, x):
        # --- self attention block (fused QKV; 1/sqrt(head_dim) folded into Wq/bq) ---
        xb = x.astype(bf16)
        qkv = (jnp.dot(xb, wqkv_ref[l], preferred_element_type=jnp.float32)
               + bqkv_ref[l]).astype(bf16)                       # (M, 384)
        qh = split_heads(qkv, 0)
        kh = split_heads(qkv, D_MODEL)
        vh = split_heads(qkv, 2 * D_MODEL)
        # one batched score/softmax/PV pass over all (head, batch) pairs
        s = jnp.einsum('bqd,bkd->bqk', qh, kh,
                       preferred_element_type=jnp.float32)       # (H*Bt, S, S) f32
        s = s - jnp.max(s, axis=-1, keepdims=True)
        p = jnp.exp(s)
        p = p * pl.reciprocal(jnp.sum(p, axis=-1, keepdims=True), approx=True)
        o = jnp.einsum('bqk,bkd->bqd', p.astype(bf16), vh,
                       preferred_element_type=jnp.float32)       # (H*Bt, S, 32)
        o = o.reshape(N_HEADS, M, HEAD_DIM).astype(bf16)
        attn = jnp.concatenate([o[h] for h in range(N_HEADS)], axis=-1)  # (M, 128)
        attn = jnp.dot(attn, wo_ref[l], preferred_element_type=jnp.float32) + bo_ref[l]
        x = _layernorm(x + attn, ln1w_ref[l], ln1b_ref[l])
        # --- feed forward block ---
        hid = _gelu_exact(
            jnp.dot(x.astype(bf16), w1_ref[l],
                    preferred_element_type=jnp.float32) + b1_ref[l])
        ff = jnp.dot(hid.astype(bf16), w2_ref[l],
                     preferred_element_type=jnp.float32) + b2_ref[l]
        x = _layernorm(x + ff, ln2w_ref[l], ln2b_ref[l])
        return x

    x = jax.lax.fori_loop(0, N_LAYERS, layer_body, x, unroll=True)

    # mean over the sequence dimension -> (Bt, 1, 128)
    x3 = x.reshape(Bt, S, D_MODEL)
    out_ref[...] = jnp.mean(x3, axis=1, keepdims=True)


def init_params(key):
    ks = jax.random.split(key, 24)

    def nrm(k, shape, scale):
        return jax.random.normal(k, shape, jnp.float32) * scale

    p = {
        # synthetic ALLTALKEMICA_MEAN / STD buffers (106,)
        "mean": nrm(ks[0], (1, MOTION_DIM), 0.1),
        "std": jax.random.uniform(ks[1], (1, MOTION_DIM), jnp.float32, 0.5, 1.5),
        # motion_proj
        "proj_w": nrm(ks[2], (MOTION_DIM, D_MODEL), 0.05),
        "proj_b": nrm(ks[3], (1, D_MODEL), 0.01),
        # per-layer attention weights (stacked along layer axis, pre-transposed)
        "wq": nrm(ks[4], (N_LAYERS, D_MODEL, D_MODEL), 0.05),
        "bq": nrm(ks[5], (N_LAYERS, 1, D_MODEL), 0.01),
        "wk": nrm(ks[6], (N_LAYERS, D_MODEL, D_MODEL), 0.05),
        "bk": nrm(ks[7], (N_LAYERS, 1, D_MODEL), 0.01),
        "wv": nrm(ks[8], (N_LAYERS, D_MODEL, D_MODEL), 0.05),
        "bv": nrm(ks[9], (N_LAYERS, 1, D_MODEL), 0.01),
        "wo": nrm(ks[10], (N_LAYERS, D_MODEL, D_MODEL), 0.05),
        "bo": nrm(ks[11], (N_LAYERS, 1, D_MODEL), 0.01),
        # layer norms
        "ln1_w": 1.0 + nrm(ks[12], (N_LAYERS, 1, D_MODEL), 0.01),
        "ln1_b": nrm(ks[13], (N_LAYERS, 1, D_MODEL), 0.01),
        "ln2_w": 1.0 + nrm(ks[14], (N_LAYERS, 1, D_MODEL), 0.01),
        "ln2_b": nrm(ks[15], (N_LAYERS, 1, D_MODEL), 0.01),
        # feed-forward
        "w1": nrm(ks[16], (N_LAYERS, D_MODEL, D_FF), 0.05),
        "b1": nrm(ks[17], (N_LAYERS, 1, D_FF), 0.01),
        "w2": nrm(ks[18], (N_LAYERS, D_FF, D_MODEL), 0.05),
        "b2": nrm(ks[19], (N_LAYERS, 1, D_MODEL), 0.01),
    }
    # sinusoidal PE table (max_len, d_model) exactly as PositionalEncoding.__init__
    position = jnp.arange(MAX_LEN, dtype=jnp.float32)[:, None]
    div_term = jnp.exp(jnp.arange(0, D_MODEL, 2, dtype=jnp.float32)
                       * (-math.log(10000.0) / D_MODEL))
    pe = jnp.zeros((MAX_LEN, D_MODEL), jnp.float32)
    pe = pe.at[:, 0::2].set(jnp.sin(position * div_term))
    pe = pe.at[:, 1::2].set(jnp.cos(position * div_term))
    p["pe"] = pe
    return p


def _vmem_estimate(bt, s):
    """Rough per-grid-step VMEM working set (bytes) for the kernel."""
    m = bt * s
    f32, bf16 = 4, 2
    act = m * D_MODEL * f32 * 6                      # residual stream + LN temps
    qkv = m * 3 * D_MODEL * (f32 + bf16)             # qkv f32 + bf16 copy
    heads = 3 * m * D_MODEL * bf16                   # stacked per-head q/k/v
    scores = bt * N_HEADS * s * s * (2 * f32 + bf16) # s, p (+ bf16 copy)
    ffn = m * D_FF * (f32 + bf16)
    inblk = 2 * bt * s * MOTION_DIM * f32            # double-buffered input block
    weights = 3 * 1024 * 1024                        # single-buffered weight stack
    return act + qkv + heads + scores + ffn + inblk + weights


def _pick_bt(B, S, target_rows=512, vmem_budget=44 << 20):
    """Largest batch tile that divides B, keeps Bt*S near target_rows, fits the
    VMEM budget, and (when B >= 2) leaves grid >= 2 for v7x's dual TensorCores."""
    cap = B if B == 1 else max(1, B // 2)
    bt = min(cap, max(1, target_rows // max(S, 1)))
    while bt > 1 and (B % bt != 0 or _vmem_estimate(bt, S) > vmem_budget):
        bt -= 1
    return max(bt, 1)


def style_encoder_forward(motion, params):
    """motion: (B, S, 106) float32 -> (B, 128) float32"""
    B, S, C = motion.shape
    assert C == MOTION_DIM
    # PositionalEncoding quirk indexes pe[seq_len]; OOB when S == MAX_LEN.
    assert S < MAX_LEN, "seq_len must be < max_len (600) due to pe[:, seq_len, :]"
    scale = 1.0 / math.sqrt(HEAD_DIM)
    f32, bf16 = jnp.float32, jnp.bfloat16

    # --- wrapper-side weight prep (small tensors; done once per call) ---
    # mean / 1-over-std packed into one (2, 106) f32 tensor
    stats = jnp.concatenate([params["mean"], 1.0 / params["std"]], axis=0).astype(f32)
    pe_row = params["pe"][S][None, :]            # pe[:, x.shape[1], :] -> (1, 128)
    bias0 = (params["proj_b"] + pe_row).astype(f32)       # proj bias + PE row
    proj_w_p = jnp.pad(params["proj_w"],
                       ((0, D_PAD - MOTION_DIM), (0, 0))).astype(bf16)   # (128,128)
    # fused QKV (bf16), with the attention scale folded into the Q part
    wqkv = jnp.concatenate(
        [params["wq"] * scale, params["wk"], params["wv"]], axis=-1).astype(bf16)
    bqkv = jnp.concatenate(
        [params["bq"] * scale, params["bk"], params["bv"]], axis=-1).astype(f32)

    Bt = _pick_bt(B, S)

    args = (motion, stats, bias0, proj_w_p, wqkv, bqkv,
            params["wo"].astype(bf16), params["bo"],
            params["ln1_w"], params["ln1_b"], params["ln2_w"], params["ln2_b"],
            params["w1"].astype(bf16), params["b1"],
            params["w2"].astype(bf16), params["b2"])

    def const_spec(a):
        # grid-invariant weight/constant: constant index_map + single buffer
        nd = a.ndim
        return pl.BlockSpec(a.shape, lambda b, _nd=nd: (0,) * _nd,
                            pipeline_mode=pl.Buffered(1))

    in_specs = [pl.BlockSpec((Bt, S, MOTION_DIM), lambda b: (b, 0, 0))]
    in_specs += [const_spec(a) for a in args[1:]]

    out = pl.pallas_call(
        style_encoder_kernel,
        out_shape=jax.ShapeDtypeStruct((B, 1, D_MODEL), jnp.float32),
        grid_spec=pltpu.PrefetchScalarGridSpec(
            num_scalar_prefetch=0,
            grid=(B // Bt,),
            in_specs=in_specs,
            # 3-D output block: last two block dims always equal the full array
            # dims (robust for Bt < 8).
            out_specs=pl.BlockSpec((Bt, 1, D_MODEL), lambda b: (b, 0, 0)),
        ),
        compiler_params=pltpu.CompilerParams(
            dimension_semantics=("parallel",),
            vmem_limit_bytes=56 * 1024 * 1024,
        ),
    )(*args)
    return out[:, 0, :]


def reference_forward(motion, params):
    """Pure-JAX f32 reference of the same math (PyTorch eval-mode semantics)."""
    S = motion.shape[1]
    x = (motion - params["mean"][0]) / params["std"][0]
    x = jnp.einsum("bsm,md->bsd", x, params["proj_w"]) + params["proj_b"][0]
    x = x + params["pe"][S]
    for l in range(N_LAYERS):
        q = x @ params["wq"][l] + params["bq"][l, 0]
        k = x @ params["wk"][l] + params["bk"][l, 0]
        v = x @ params["wv"][l] + params["bv"][l, 0]
        B_, S_, _ = q.shape
        qh = q.reshape(B_, S_, N_HEADS, HEAD_DIM)
        kh = k.reshape(B_, S_, N_HEADS, HEAD_DIM)
        vh = v.reshape(B_, S_, N_HEADS, HEAD_DIM)
        s = jnp.einsum("bqhd,bkhd->bhqk", qh, kh) / math.sqrt(HEAD_DIM)
        p = jax.nn.softmax(s, axis=-1)
        o = jnp.einsum("bhqk,bkhd->bqhd", p, vh).reshape(B_, S_, D_MODEL)
        attn = o @ params["wo"][l] + params["bo"][l, 0]
        x = _layernorm(x + attn, params["ln1_w"][l, 0], params["ln1_b"][l, 0])
        hid = _gelu_exact(x @ params["w1"][l] + params["b1"][l, 0])
        ff = hid @ params["w2"][l] + params["b2"][l, 0]
        x = _layernorm(x + ff, params["ln2_w"][l, 0], params["ln2_b"][l, 0])
    return x.mean(axis=1)


if __name__ == "__main__":
    key = jax.random.PRNGKey(0)
    kp, kx = jax.random.split(key)
    params = init_params(kp)

    B, S = 2, 16
    motion_coef = jax.random.normal(kx, (B, S, MOTION_DIM), jnp.float32)

    out = style_encoder_forward(motion_coef, params)
    out = jax.block_until_ready(out)

    ref = reference_forward(motion_coef, params)
    assert out.shape == (B, D_MODEL), out.shape
    # bf16 MXU operands (f32 accumulation) vs. the f32 reference: allow a
    # mixed-precision tolerance.
    err = float(jnp.max(jnp.abs(out - ref)))
    assert err < 5e-2, f"max abs err {err}"

    print("KERNEL_OK")
</pallas_src>

<mosaic_0001>
module attributes {stable_mosaic.version = 11 : i64} {
  func.func @style_encoder_kernel(%arg0: i32, %arg1: memref<1x16x106xf32, #tpu.memory_space<vmem>>, %arg2: memref<2x106xf32, #tpu.memory_space<vmem>>, %arg3: memref<1x128xf32, #tpu.memory_space<vmem>>, %arg4: memref<128x128xbf16, #tpu.memory_space<vmem>>, %arg5: memref<4x128x384xbf16, #tpu.memory_space<vmem>>, %arg6: memref<4x1x384xf32, #tpu.memory_space<vmem>>, %arg7: memref<4x128x128xbf16, #tpu.memory_space<vmem>>, %arg8: memref<4x1x128xf32, #tpu.memory_space<vmem>>, %arg9: memref<4x1x128xf32, #tpu.memory_space<vmem>>, %arg10: memref<4x1x128xf32, #tpu.memory_space<vmem>>, %arg11: memref<4x1x128xf32, #tpu.memory_space<vmem>>, %arg12: memref<4x1x128xf32, #tpu.memory_space<vmem>>, %arg13: memref<4x128x512xbf16, #tpu.memory_space<vmem>>, %arg14: memref<4x1x512xf32, #tpu.memory_space<vmem>>, %arg15: memref<4x512x128xbf16, #tpu.memory_space<vmem>>, %arg16: memref<4x1x128xf32, #tpu.memory_space<vmem>>, %arg17: memref<1x1x128xf32, #tpu.memory_space<vmem>>) attributes {dimension_semantics = [#tpu.dimension_semantics<parallel>], iteration_bounds = array<i64: 2>, scalar_prefetch = 0 : i64, scratch_operands = 0 : i64, tpu.core_type = #tpu.core_type<tc>, window_params = [{transform_indices = @transform_0, window_bounds = array<i64: 1, 16, 106>}, {pipeline_mode = #tpu.pipeline_mode<synchronous>, transform_indices = @transform_1, window_bounds = array<i64: 2, 106>}, {pipeline_mode = #tpu.pipeline_mode<synchronous>, transform_indices = @transform_2, window_bounds = array<i64: 1, 128>}, {pipeline_mode = #tpu.pipeline_mode<synchronous>, transform_indices = @transform_3, window_bounds = array<i64: 128, 128>}, {pipeline_mode = #tpu.pipeline_mode<synchronous>, transform_indices = @transform_4, window_bounds = array<i64: 4, 128, 384>}, {pipeline_mode = #tpu.pipeline_mode<synchronous>, transform_indices = @transform_5, window_bounds = array<i64: 4, 1, 384>}, {pipeline_mode = #tpu.pipeline_mode<synchronous>, transform_indices = @transform_6, window_bounds = array<i64: 4, 128, 128>}, {pipeline_mode = #tpu.pipeline_mode<synchronous>, transform_indices = @transform_7, window_bounds = array<i64: 4, 1, 128>}, {pipeline_mode = #tpu.pipeline_mode<synchronous>, transform_indices = @transform_8, window_bounds = array<i64: 4, 1, 128>}, {pipeline_mode = #tpu.pipeline_mode<synchronous>, transform_indices = @transform_9, window_bounds = array<i64: 4, 1, 128>}, {pipeline_mode = #tpu.pipeline_mode<synchronous>, transform_indices = @transform_10, window_bounds = array<i64: 4, 1, 128>}, {pipeline_mode = #tpu.pipeline_mode<synchronous>, transform_indices = @transform_11, window_bounds = array<i64: 4, 1, 128>}, {pipeline_mode = #tpu.pipeline_mode<synchronous>, transform_indices = @transform_12, window_bounds = array<i64: 4, 128, 512>}, {pipeline_mode = #tpu.pipeline_mode<synchronous>, transform_indices = @transform_13, window_bounds = array<i64: 4, 1, 512>}, {pipeline_mode = #tpu.pipeline_mode<synchronous>, transform_indices = @transform_14, window_bounds = array<i64: 4, 512, 128>}, {pipeline_mode = #tpu.pipeline_mode<synchronous>, transform_indices = @transform_15, window_bounds = array<i64: 4, 1, 128>}, {transform_indices = @transform_16, window_bounds = array<i64: 1, 1, 128>}]} {
    %c0 = arith.constant 0 : index
    %c0_0 = arith.constant 0 : index
    %c0_1 = arith.constant 0 : index
    %0 = vector.load %arg1[%c0, %c0_0, %c0_1] : memref<1x16x106xf32, #tpu.memory_space<vmem>>, vector<1x16x106xf32>
    %1 = vector.shape_cast %0 : vector<1x16x106xf32> to vector<16x106xf32>
    %c0_2 = arith.constant 0 : index
    %c0_3 = arith.constant 0 : index
    %2 = vector.load %arg2[%c0_2, %c0_3] : memref<2x106xf32, #tpu.memory_space<vmem>>, vector<1x106xf32>
    %3 = vector.broadcast %2 : vector<1x106xf32> to vector<16x106xf32>
    %4 = arith.subf %1, %3 : vector<16x106xf32>
    %c1 = arith.constant 1 : index
    %c0_4 = arith.constant 0 : index
    %5 = vector.load %arg2[%c1, %c0_4] : memref<2x106xf32, #tpu.memory_space<vmem>>, vector<1x106xf32>
    %6 = vector.broadcast %5 : vector<1x106xf32> to vector<16x106xf32>
    %7 = arith.mulf %4, %6 : vector<16x106xf32>
    %8 = arith.truncf %7 : vector<16x106xf32> to vector<16x106xbf16>
    %cst = arith.constant 0.000000e+00 : bf16
    %9 = vector.broadcast %cst : bf16 to vector<16x22xbf16>
    %10 = tpu.concatenate %8, %9 in 1 : vector<16x106xbf16>, vector<16x22xbf16> -> vector<16x128xbf16>
    %c0_5 = arith.constant 0 : index
    %c0_6 = arith.constant 0 : index
    %11 = vector.load %arg4[%c0_5, %c0_6] : memref<128x128xbf16, #tpu.memory_space<vmem>>, vector<128x128xbf16>
    %cst_7 = arith.constant dense<0.000000e+00> : vector<16x128xf32>
    %12 = tpu.matmul %10, %11, %cst_7 {dimension_numbers = #tpu.dot_dimension_numbers<[1], [0], [0], [1], [0, 0, 1, 1], [], []>} : vector<16x128xbf16>, vector<128x128xbf16>, vector<16x128xf32> -> vector<16x128xf32>
    %c0_8 = arith.constant 0 : index
    %c0_9 = arith.constant 0 : index
    %13 = vector.load %arg3[%c0_8, %c0_9] : memref<1x128xf32, #tpu.memory_space<vmem>>, vector<1x128xf32>
    %14 = vector.broadcast %13 : vector<1x128xf32> to vector<16x128xf32>
    %15 = arith.addf %12, %14 : vector<16x128xf32>
    %c0_i32 = arith.constant 0 : i32
    %16 = arith.truncf %15 : vector<16x128xf32> to vector<16x128xbf16>
    %17 = arith.index_cast %c0_i32 : i32 to index
    %c0_10 = arith.constant 0 : index
    %c0_11 = arith.constant 0 : index
    %18 = vector.load %arg5[%17, %c0_10, %c0_11] : memref<4x128x384xbf16, #tpu.memory_space<vmem>>, vector<1x128x384xbf16>
    %19 = vector.shape_cast %18 : vector<1x128x384xbf16> to vector<128x384xbf16>
    %cst_12 = arith.constant dense<0.000000e+00> : vector<16x384xf32>
    %20 = tpu.matmul %16, %19, %cst_12 {dimension_numbers = #tpu.dot_dimension_numbers<[1], [0], [0], [1], [0, 0, 1, 1], [], []>} : vector<16x128xbf16>, vector<128x384xbf16>, vector<16x384xf32> -> vector<16x384xf32>
    %21 = arith.index_cast %c0_i32 : i32 to index
    %c0_13 = arith.constant 0 : index
    %c0_14 = arith.constant 0 : index
    %22 = vector.load %arg6[%21, %c0_13, %c0_14] : memref<4x1x384xf32, #tpu.memory_space<vmem>>, vector<1x1x384xf32>
    %23 = vector.shape_cast %22 : vector<1x1x384xf32> to vector<1x384xf32>
    %24 = vector.broadcast %23 : vector<1x384xf32> to vector<16x384xf32>
    %25 = arith.addf %20, %24 : vector<16x384xf32>
    %26 = arith.truncf %25 : vector<16x384xf32> to vector<16x384xbf16>
    %27 = vector.extract_strided_slice %26 {offsets = [0, 0], sizes = [16, 32], strides = [1, 1]} : vector<16x384xbf16> to vector<16x32xbf16>
    %28 = vector.extract_strided_slice %26 {offsets = [0, 32], sizes = [16, 32], strides = [1, 1]} : vector<16x384xbf16> to vector<16x32xbf16>
    %29 = vector.extract_strided_slice %26 {offsets = [0, 64], sizes = [16, 32], strides = [1, 1]} : vector<16x384xbf16> to vector<16x32xbf16>
    %30 = vector.extract_strided_slice %26 {offsets = [0, 96], sizes = [16, 32], strides = [1, 1]} : vector<16x384xbf16> to vector<16x32xbf16>
    %31 = vector.shape_cast %27 : vector<16x32xbf16> to vector<1x16x32xbf16>
    %32 = vector.shape_cast %28 : vector<16x32xbf16> to vector<1x16x32xbf16>
    %33 = vector.shape_cast %29 : vector<16x32xbf16> to vector<1x16x32xbf16>
    %34 = vector.shape_cast %30 : vector<16x32xbf16> to vector<1x16x32xbf16>
    %35 = tpu.concatenate %31, %32, %33, %34 in 0 : vector<1x16x32xbf16>, vector<1x16x32xbf16>, vector<1x16x32xbf16>, vector<1x16x32xbf16> -> vector<4x16x32xbf16>
    %36 = vector.extract_strided_slice %26 {offsets = [0, 128], sizes = [16, 32], strides = [1, 1]} : vector<16x384xbf16> to vector<16x32xbf16>
    %37 = vector.extract_strided_slice %26 {offsets = [0, 160], sizes = [16, 32], strides = [1, 1]} : vector<16x384xbf16> to vector<16x32xbf16>
    %38 = vector.extract_strided_slice %26 {offsets = [0, 192], sizes = [16, 32], strides = [1, 1]} : vector<16x384xbf16> to vector<16x32xbf16>
    %39 = vector.extract_strided_slice %26 {offsets = [0, 224], sizes = [16, 32], strides = [1, 1]} : vector<16x384xbf16> to vector<16x32xbf16>
    %40 = vector.shape_cast %36 : vector<16x32xbf16> to vector<1x16x32xbf16>
    %41 = vector.shape_cast %37 : vector<16x32xbf16> to vector<1x16x32xbf16>
    %42 = vector.shape_cast %38 : vector<16x32xbf16> to vector<1x16x32xbf16>
    %43 = vector.shape_cast %39 : vector<16x32xbf16> to vector<1x16x32xbf16>
    %44 = tpu.concatenate %40, %41, %42, %43 in 0 : vector<1x16x32xbf16>, vector<1x16x32xbf16>, vector<1x16x32xbf16>, vector<1x16x32xbf16> -> vector<4x16x32xbf16>
    %45 = vector.extract_strided_slice %26 {offsets = [0, 256], sizes = [16, 32], strides = [1, 1]} : vector<16x384xbf16> to vector<16x32xbf16>
    %46 = vector.extract_strided_slice %26 {offsets = [0, 288], sizes = [16, 32], strides = [1, 1]} : vector<16x384xbf16> to vector<16x32xbf16>
    %47 = vector.extract_strided_slice %26 {offsets = [0, 320], sizes = [16, 32], strides = [1, 1]} : vector<16x384xbf16> to vector<16x32xbf16>
    %48 = vector.extract_strided_slice %26 {offsets = [0, 352], sizes = [16, 32], strides = [1, 1]} : vector<16x384xbf16> to vector<16x32xbf16>
    %49 = vector.shape_cast %45 : vector<16x32xbf16> to vector<1x16x32xbf16>
    %50 = vector.shape_cast %46 : vector<16x32xbf16> to vector<1x16x32xbf16>
    %51 = vector.shape_cast %47 : vector<16x32xbf16> to vector<1x16x32xbf16>
    %52 = vector.shape_cast %48 : vector<16x32xbf16> to vector<1x16x32xbf16>
    %53 = tpu.concatenate %49, %50, %51, %52 in 0 : vector<1x16x32xbf16>, vector<1x16x32xbf16>, vector<1x16x32xbf16>, vector<1x16x32xbf16> -> vector<4x16x32xbf16>
    "tpu.trace_start"() <{level = 10 : i32, message = "bqd,bkd->bqk"}> : () -> ()
    %cst_15 = arith.constant dense<0.000000e+00> : vector<4x16x16xf32>
    %54 = tpu.matmul %35, %44, %cst_15 {dimension_numbers = #tpu.dot_dimension_numbers<[2], [2], [1], [1], [0, 0, 0, 1, 1, 1], [0], [0]>} : vector<4x16x32xbf16>, vector<4x16x32xbf16>, vector<4x16x16xf32> -> vector<4x16x16xf32>
    "tpu.trace_stop"() : () -> ()
    %cst_16 = arith.constant dense<0xFF800000> : vector<4x16xf32>
    %55 = vector.multi_reduction <maximumf>, %54, %cst_16 [2] : vector<4x16x16xf32> to vector<4x16xf32>
    %56 = vector.shape_cast %55 : vector<4x16xf32> to vector<4x16x1xf32>
    %57 = vector.broadcast %56 : vector<4x16x1xf32> to vector<4x16x16xf32>
    %58 = arith.subf %54, %57 : vector<4x16x16xf32>
    %59 = math.exp %58 : vector<4x16x16xf32>
    %cst_17 = arith.constant dense<0.000000e+00> : vector<4x16xf32>
    %60 = vector.multi_reduction <add>, %59, %cst_17 [2] : vector<4x16x16xf32> to vector<4x16xf32>
    %61 = vector.shape_cast %60 : vector<4x16xf32> to vector<4x16x1xf32>
    %62 = tpu.reciprocal %61 {approx = true} : vector<4x16x1xf32> -> vector<4x16x1xf32>
    %63 = vector.broadcast %62 : vector<4x16x1xf32> to vector<4x16x16xf32>
    %64 = arith.mulf %59, %63 : vector<4x16x16xf32>
    %65 = arith.truncf %64 : vector<4x16x16xf32> to vector<4x16x16xbf16>
    "tpu.trace_start"() <{level = 10 : i32, message = "bqk,bkd->bqd"}> : () -> ()
    %cst_18 = arith.constant dense<0.000000e+00> : vector<4x16x32xf32>
    %66 = tpu.matmul %65, %53, %cst_18 {dimension_numbers = #tpu.dot_dimension_numbers<[2], [1], [1], [2], [0, 0, 0, 1, 1, 2], [0], [0]>} : vector<4x16x16xbf16>, vector<4x16x32xbf16>, vector<4x16x32xf32> -> vector<4x16x32xf32>
    "tpu.trace_stop"() : () -> ()
    %67 = arith.truncf %66 : vector<4x16x32xf32> to vector<4x16x32xbf16>
    %68 = vector.extract_strided_slice %67 {offsets = [0, 0, 0], sizes = [1, 16, 32], strides = [1, 1, 1]} : vector<4x16x32xbf16> to vector<1x16x32xbf16>
    %69 = vector.shape_cast %68 : vector<1x16x32xbf16> to vector<16x32xbf16>
    %70 = vector.extract_strided_slice %67 {offsets = [1, 0, 0], sizes = [1, 16, 32], strides = [1, 1, 1]} : vector<4x16x32xbf16> to vector<1x16x32xbf16>
    %71 = vector.shape_cast %70 : vector<1x16x32xbf16> to vector<16x32xbf16>
    %72 = vector.extract_strided_slice %67 {offsets = [2, 0, 0], sizes = [1, 16, 32], strides = [1, 1, 1]} : vector<4x16x32xbf16> to vector<1x16x32xbf16>
    %73 = vector.shape_cast %72 : vector<1x16x32xbf16> to vector<16x32xbf16>
    %74 = vector.extract_strided_slice %67 {offsets = [3, 0, 0], sizes = [1, 16, 32], strides = [1, 1, 1]} : vector<4x16x32xbf16> to vector<1x16x32xbf16>
    %75 = vector.shape_cast %74 : vector<1x16x32xbf16> to vector<16x32xbf16>
    %76 = tpu.concatenate %69, %71, %73, %75 in 1 : vector<16x32xbf16>, vector<16x32xbf16>, vector<16x32xbf16>, vector<16x32xbf16> -> vector<16x128xbf16>
    %77 = arith.index_cast %c0_i32 : i32 to index
    %c0_19 = arith.constant 0 : index
    %c0_20 = arith.constant 0 : index
    %78 = vector.load %arg7[%77, %c0_19, %c0_20] : memref<4x128x128xbf16, #tpu.memory_space<vmem>>, vector<1x128x128xbf16>
    %79 = vector.shape_cast %78 : vector<1x128x128xbf16> to vector<128x128xbf16>
    %cst_21 = arith.constant dense<0.000000e+00> : vector<16x128xf32>
    %80 = tpu.matmul %76, %79, %cst_21 {dimension_numbers = #tpu.dot_dimension_numbers<[1], [0], [0], [1], [0, 0, 1, 1], [], []>} : vector<16x128xbf16>, vector<128x128xbf16>, vector<16x128xf32> -> vector<16x128xf32>
    %81 = arith.index_cast %c0_i32 : i32 to index
    %c0_22 = arith.constant 0 : index
    %c0_23 = arith.constant 0 : index
    %82 = vector.load %arg8[%81, %c0_22, %c0_23] : memref<4x1x128xf32, #tpu.memory_space<vmem>>, vector<1x1x128xf32>
    %83 = vector.shape_cast %82 : vector<1x1x128xf32> to vector<1x128xf32>
    %84 = vector.broadcast %83 : vector<1x128xf32> to vector<16x128xf32>
    %85 = arith.addf %80, %84 : vector<16x128xf32>
    %86 = arith.addf %15, %85 : vector<16x128xf32>
    %87 = arith.index_cast %c0_i32 : i32 to index
    %c0_24 = arith.constant 0 : index
    %c0_25 = arith.constant 0 : index
    %88 = vector.load %arg9[%87, %c0_24, %c0_25] : memref<4x1x128xf32, #tpu.memory_space<vmem>>, vector<1x1x128xf32>
    %89 = vector.shape_cast %88 : vector<1x1x128xf32> to vector<1x128xf32>
    %90 = arith.index_cast %c0_i32 : i32 to index
    %c0_26 = arith.constant 0 : index
    %c0_27 = arith.constant 0 : index
    %91 = vector.load %arg10[%90, %c0_26, %c0_27] : memref<4x1x128xf32, #tpu.memory_space<vmem>>, vector<1x1x128xf32>
    %92 = vector.shape_cast %91 : vector<1x1x128xf32> to vector<1x128xf32>
    %cst_28 = arith.constant dense<0.000000e+00> : vector<16xf32>
    %93 = vector.multi_reduction <add>, %86, %cst_28 [1] : vector<16x128xf32> to vector<16xf32>
    %94 = vector.shape_cast %93 : vector<16xf32> to vector<16x1xf32>
    %cst_29 = arith.constant 1.280000e+02 : f32
    %95 = vector.broadcast %cst_29 : f32 to vector<16x1xf32>
    %96 = arith.divf %94, %95 : vector<16x1xf32>
    %97 = vector.broadcast %96 : vector<16x1xf32> to vector<16x128xf32>
    %98 = arith.subf %86, %97 : vector<16x128xf32>
    %99 = arith.mulf %98, %98 : vector<16x128xf32>
    %cst_30 = arith.constant dense<0.000000e+00> : vector<16xf32>
    %100 = vector.multi_reduction <add>, %99, %cst_30 [1] : vector<16x128xf32> to vector<16xf32>
    %101 = vector.shape_cast %100 : vector<16xf32> to vector<16x1xf32>
    %cst_31 = arith.constant 1.280000e+02 : f32
    %102 = vector.broadcast %cst_31 : f32 to vector<16x1xf32>
    %103 = arith.divf %101, %102 : vector<16x1xf32>
    %104 = vector.broadcast %96 : vector<16x1xf32> to vector<16x128xf32>
    %105 = arith.subf %86, %104 : vector<16x128xf32>
    %cst_32 = arith.constant 9.99999974E-6 : f32
    %106 = vector.broadcast %cst_32 : f32 to vector<16x1xf32>
    %107 = arith.addf %103, %106 : vector<16x1xf32>
    %108 = math.rsqrt %107 : vector<16x1xf32>
    %109 = vector.broadcast %108 : vector<16x1xf32> to vector<16x128xf32>
    %110 = arith.mulf %105, %109 : vector<16x128xf32>
    %111 = vector.broadcast %89 : vector<1x128xf32> to vector<16x128xf32>
    %112 = arith.mulf %110, %111 : vector<16x128xf32>
    %113 = vector.broadcast %92 : vector<1x128xf32> to vector<16x128xf32>
    %114 = arith.addf %112, %113 : vector<16x128xf32>
    %115 = arith.truncf %114 : vector<16x128xf32> to vector<16x128xbf16>
    %116 = arith.index_cast %c0_i32 : i32 to index
    %c0_33 = arith.constant 0 : index
    %c0_34 = arith.constant 0 : index
    %117 = vector.load %arg13[%116, %c0_33, %c0_34] : memref<4x128x512xbf16, #tpu.memory_space<vmem>>, vector<1x128x512xbf16>
    %118 = vector.shape_cast %117 : vector<1x128x512xbf16> to vector<128x512xbf16>
    %cst_35 = arith.constant dense<0.000000e+00> : vector<16x512xf32>
    %119 = tpu.matmul %115, %118, %cst_35 {dimension_numbers = #tpu.dot_dimension_numbers<[1], [0], [0], [1], [0, 0, 1, 1], [], []>} : vector<16x128xbf16>, vector<128x512xbf16>, vector<16x512xf32> -> vector<16x512xf32>
    %120 = arith.index_cast %c0_i32 : i32 to index
    %c0_36 = arith.constant 0 : index
    %c0_37 = arith.constant 0 : index
    %121 = vector.load %arg14[%120, %c0_36, %c0_37] : memref<4x1x512xf32, #tpu.memory_space<vmem>>, vector<1x1x512xf32>
    %122 = vector.shape_cast %121 : vector<1x1x512xf32> to vector<1x512xf32>
    %123 = vector.broadcast %122 : vector<1x512xf32> to vector<16x512xf32>
    %124 = arith.addf %119, %123 : vector<16x512xf32>
    %cst_38 = arith.constant 5.000000e-01 : f32
    %125 = vector.broadcast %cst_38 : f32 to vector<16x512xf32>
    %126 = arith.mulf %125, %124 : vector<16x512xf32>
    %cst_39 = arith.constant 0.707106769 : f32
    %127 = vector.broadcast %cst_39 : f32 to vector<16x512xf32>
    %128 = arith.mulf %124, %127 : vector<16x512xf32>
    %129 = math.erf %128 : vector<16x512xf32>
    %cst_40 = arith.constant 1.000000e+00 : f32
    %130 = vector.broadcast %cst_40 : f32 to vector<16x512xf32>
    %131 = arith.addf %130, %129 : vector<16x512xf32>
    %132 = arith.mulf %126, %131 : vector<16x512xf32>
    %133 = arith.truncf %132 : vector<16x512xf32> to vector<16x512xbf16>
    %134 = arith.index_cast %c0_i32 : i32 to index
    %c0_41 = arith.constant 0 : index
    %c0_42 = arith.constant 0 : index
    %135 = vector.load %arg15[%134, %c0_41, %c0_42] : memref<4x512x128xbf16, #tpu.memory_space<vmem>>, vector<1x512x128xbf16>
    %136 = vector.shape_cast %135 : vector<1x512x128xbf16> to vector<512x128xbf16>
    %cst_43 = arith.constant dense<0.000000e+00> : vector<16x128xf32>
    %137 = tpu.matmul %133, %136, %cst_43 {dimension_numbers = #tpu.dot_dimension_numbers<[1], [0], [0], [1], [0, 0, 1, 1], [], []>} : vector<16x512xbf16>, vector<512x128xbf16>, vector<16x128xf32> -> vector<16x128xf32>
    %138 = arith.index_cast %c0_i32 : i32 to index
    %c0_44 = arith.constant 0 : index
    %c0_45 = arith.constant 0 : index
    %139 = vector.load %arg16[%138, %c0_44, %c0_45] : memref<4x1x128xf32, #tpu.memory_space<vmem>>, vector<1x1x128xf32>
    %140 = vector.shape_cast %139 : vector<1x1x128xf32> to vector<1x128xf32>
    %141 = vector.broadcast %140 : vector<1x128xf32> to vector<16x128xf32>
    %142 = arith.addf %137, %141 : vector<16x128xf32>
    %143 = arith.addf %114, %142 : vector<16x128xf32>
    %144 = arith.index_cast %c0_i32 : i32 to index
    %c0_46 = arith.constant 0 : index
    %c0_47 = arith.constant 0 : index
    %145 = vector.load %arg11[%144, %c0_46, %c0_47] : memref<4x1x128xf32, #tpu.memory_space<vmem>>, vector<1x1x128xf32>
    %146 = vector.shape_cast %145 : vector<1x1x128xf32> to vector<1x128xf32>
    %147 = arith.index_cast %c0_i32 : i32 to index
    %c0_48 = arith.constant 0 : index
    %c0_49 = arith.constant 0 : index
    %148 = vector.load %arg12[%147, %c0_48, %c0_49] : memref<4x1x128xf32, #tpu.memory_space<vmem>>, vector<1x1x128xf32>
    %149 = vector.shape_cast %148 : vector<1x1x128xf32> to vector<1x128xf32>
    %cst_50 = arith.constant dense<0.000000e+00> : vector<16xf32>
    %150 = vector.multi_reduction <add>, %143, %cst_50 [1] : vector<16x128xf32> to vector<16xf32>
    %151 = vector.shape_cast %150 : vector<16xf32> to vector<16x1xf32>
    %cst_51 = arith.constant 1.280000e+02 : f32
    %152 = vector.broadcast %cst_51 : f32 to vector<16x1xf32>
    %153 = arith.divf %151, %152 : vector<16x1xf32>
    %154 = vector.broadcast %153 : vector<16x1xf32> to vector<16x128xf32>
    %155 = arith.subf %143, %154 : vector<16x128xf32>
    %156 = arith.mulf %155, %155 : vector<16x128xf32>
    %cst_52 = arith.constant dense<0.000000e+00> : vector<16xf32>
    %157 = vector.multi_reduction <add>, %156, %cst_52 [1] : vector<16x128xf32> to vector<16xf32>
    %158 = vector.shape_cast %157 : vector<16xf32> to vector<16x1xf32>
    %cst_53 = arith.constant 1.280000e+02 : f32
    %159 = vector.broadcast %cst_53 : f32 to vector<16x1xf32>
    %160 = arith.divf %158, %159 : vector<16x1xf32>
    %161 = vector.broadcast %153 : vector<16x1xf32> to vector<16x128xf32>
    %162 = arith.subf %143, %161 : vector<16x128xf32>
    %cst_54 = arith.constant 9.99999974E-6 : f32
    %163 = vector.broadcast %cst_54 : f32 to vector<16x1xf32>
    %164 = arith.addf %160, %163 : vector<16x1xf32>
    %165 = math.rsqrt %164 : vector<16x1xf32>
    %166 = vector.broadcast %165 : vector<16x1xf32> to vector<16x128xf32>
    %167 = arith.mulf %162, %166 : vector<16x128xf32>
    %168 = vector.broadcast %146 : vector<1x128xf32> to vector<16x128xf32>
    %169 = arith.mulf %167, %168 : vector<16x128xf32>
    %170 = vector.broadcast %149 : vector<1x128xf32> to vector<16x128xf32>
    %171 = arith.addf %169, %170 : vector<16x128xf32>
    %c1_i32 = arith.constant 1 : i32
    %172 = arith.truncf %171 : vector<16x128xf32> to vector<16x128xbf16>
    %173 = arith.index_cast %c1_i32 : i32 to index
    %c0_55 = arith.constant 0 : index
    %c0_56 = arith.constant 0 : index
    %174 = vector.load %arg5[%173, %c0_55, %c0_56] : memref<4x128x384xbf16, #tpu.memory_space<vmem>>, vector<1x128x384xbf16>
    %175 = vector.shape_cast %174 : vector<1x128x384xbf16> to vector<128x384xbf16>
    %cst_57 = arith.constant dense<0.000000e+00> : vector<16x384xf32>
    %176 = tpu.matmul %172, %175, %cst_57 {dimension_numbers = #tpu.dot_dimension_numbers<[1], [0], [0], [1], [0, 0, 1, 1], [], []>} : vector<16x128xbf16>, vector<128x384xbf16>, vector<16x384xf32> -> vector<16x384xf32>
    %177 = arith.index_cast %c1_i32 : i32 to index
    %c0_58 = arith.constant 0 : index
    %c0_59 = arith.constant 0 : index
    %178 = vector.load %arg6[%177, %c0_58, %c0_59] : memref<4x1x384xf32, #tpu.memory_space<vmem>>, vector<1x1x384xf32>
    %179 = vector.shape_cast %178 : vector<1x1x384xf32> to vector<1x384xf32>
    %180 = vector.broadcast %179 : vector<1x384xf32> to vector<16x384xf32>
    %181 = arith.addf %176, %180 : vector<16x384xf32>
    %182 = arith.truncf %181 : vector<16x384xf32> to vector<16x384xbf16>
    %183 = vector.extract_strided_slice %182 {offsets = [0, 0], sizes = [16, 32], strides = [1, 1]} : vector<16x384xbf16> to vector<16x32xbf16>
    %184 = vector.extract_strided_slice %182 {offsets = [0, 32], sizes = [16, 32], strides = [1, 1]} : vector<16x384xbf16> to vector<16x32xbf16>
    %185 = vector.extract_strided_slice %182 {offsets = [0, 64], sizes = [16, 32], strides = [1, 1]} : vector<16x384xbf16> to vector<16x32xbf16>
    %186 = vector.extract_strided_slice %182 {offsets = [0, 96], sizes = [16, 32], strides = [1, 1]} : vector<16x384xbf16> to vector<16x32xbf16>
    %187 = vector.shape_cast %183 : vector<16x32xbf16> to vector<1x16x32xbf16>
    %188 = vector.shape_cast %184 : vector<16x32xbf16> to vector<1x16x32xbf16>
    %189 = vector.shape_cast %185 : vector<16x32xbf16> to vector<1x16x32xbf16>
    %190 = vector.shape_cast %186 : vector<16x32xbf16> to vector<1x16x32xbf16>
    %191 = tpu.concatenate %187, %188, %189, %190 in 0 : vector<1x16x32xbf16>, vector<1x16x32xbf16>, vector<1x16x32xbf16>, vector<1x16x32xbf16> -> vector<4x16x32xbf16>
    %192 = vector.extract_strided_slice %182 {offsets = [0, 128], sizes = [16, 32], strides = [1, 1]} : vector<16x384xbf16> to vector<16x32xbf16>
    %193 = vector.extract_strided_slice %182 {offsets = [0, 160], sizes = [16, 32], strides = [1, 1]} : vector<16x384xbf16> to vector<16x32xbf16>
    %194 = vector.extract_strided_slice %182 {offsets = [0, 192], sizes = [16, 32], strides = [1, 1]} : vector<16x384xbf16> to vector<16x32xbf16>
    %195 = vector.extract_strided_slice %182 {offsets = [0, 224], sizes = [16, 32], strides = [1, 1]} : vector<16x384xbf16> to vector<16x32xbf16>
    %196 = vector.shape_cast %192 : vector<16x32xbf16> to vector<1x16x32xbf16>
    %197 = vector.shape_cast %193 : vector<16x32xbf16> to vector<1x16x32xbf16>
    %198 = vector.shape_cast %194 : vector<16x32xbf16> to vector<1x16x32xbf16>
    %199 = vector.shape_cast %195 : vector<16x32xbf16> to vector<1x16x32xbf16>
    %200 = tpu.concatenate %196, %197, %198, %199 in 0 : vector<1x16x32xbf16>, vector<1x16x32xbf16>, vector<1x16x32xbf16>, vector<1x16x32xbf16> -> vector<4x16x32xbf16>
    %201 = vector.extract_strided_slice %182 {offsets = [0, 256], sizes = [16, 32], strides = [1, 1]} : vector<16x384xbf16> to vector<16x32xbf16>
    %202 = vector.extract_strided_slice %182 {offsets = [0, 288], sizes = [16, 32], strides = [1, 1]} : vector<16x384xbf16> to vector<16x32xbf16>
    %203 = vector.extract_strided_slice %182 {offsets = [0, 320], sizes = [16, 32], strides = [1, 1]} : vector<16x384xbf16> to vector<16x32xbf16>
    %204 = vector.extract_strided_slice %182 {offsets = [0, 352], sizes = [16, 32], strides = [1, 1]} : vector<16x384xbf16> to vector<16x32xbf16>
    %205 = vector.shape_cast %201 : vector<16x32xbf16> to vector<1x16x32xbf16>
    %206 = vector.shape_cast %202 : vector<16x32xbf16> to vector<1x16x32xbf16>
    %207 = vector.shape_cast %203 : vector<16x32xbf16> to vector<1x16x32xbf16>
    %208 = vector.shape_cast %204 : vector<16x32xbf16> to vector<1x16x32xbf16>
    %209 = tpu.concatenate %205, %206, %207, %208 in 0 : vector<1x16x32xbf16>, vector<1x16x32xbf16>, vector<1x16x32xbf16>, vector<1x16x32xbf16> -> vector<4x16x32xbf16>
    "tpu.trace_start"() <{level = 10 : i32, message = "bqd,bkd->bqk"}> : () -> ()
    %cst_60 = arith.constant dense<0.000000e+00> : vector<4x16x16xf32>
    %210 = tpu.matmul %191, %200, %cst_60 {dimension_numbers = #tpu.dot_dimension_numbers<[2], [2], [1], [1], [0, 0, 0, 1, 1, 1], [0], [0]>} : vector<4x16x32xbf16>, vector<4x16x32xbf16>, vector<4x16x16xf32> -> vector<4x16x16xf32>
    "tpu.trace_stop"() : () -> ()
    %cst_61 = arith.constant dense<0xFF800000> : vector<4x16xf32>
    %211 = vector.multi_reduction <maximumf>, %210, %cst_61 [2] : vector<4x16x16xf32> to vector<4x16xf32>
    %212 = vector.shape_cast %211 : vector<4x16xf32> to vector<4x16x1xf32>
    %213 = vector.broadcast %212 : vector<4x16x1xf32> to vector<4x16x16xf32>
    %214 = arith.subf %210, %213 : vector<4x16x16xf32>
    %215 = math.exp %214 : vector<4x16x16xf32>
    %cst_62 = arith.constant dense<0.000000e+00> : vector<4x16xf32>
    %216 = vector.multi_reduction <add>, %215, %cst_62 [2] : vector<4x16x16xf32> to vector<4x16xf32>
    %217 = vector.shape_cast %216 : vector<4x16xf32> to vector<4x16x1xf32>
    %218 = tpu.reciprocal %217 {approx = true} : vector<4x16x1xf32> -> vector<4x16x1xf32>
    %219 = vector.broadcast %218 : vector<4x16x1xf32> to vector<4x16x16xf32>
    %220 = arith.mulf %215, %219 : vector<4x16x16xf32>
    %221 = arith.truncf %220 : vector<4x16x16xf32> to vector<4x16x16xbf16>
    "tpu.trace_start"() <{level = 10 : i32, message = "bqk,bkd->bqd"}> : () -> ()
    %cst_63 = arith.constant dense<0.000000e+00> : vector<4x16x32xf32>
    %222 = tpu.matmul %221, %209, %cst_63 {dimension_numbers = #tpu.dot_dimension_numbers<[2], [1], [1], [2], [0, 0, 0, 1, 1, 2], [0], [0]>} : vector<4x16x16xbf16>, vector<4x16x32xbf16>, vector<4x16x32xf32> -> vector<4x16x32xf32>
    "tpu.trace_stop"() : () -> ()
    %223 = arith.truncf %222 : vector<4x16x32xf32> to vector<4x16x32xbf16>
    %224 = vector.extract_strided_slice %223 {offsets = [0, 0, 0], sizes = [1, 16, 32], strides = [1, 1, 1]} : vector<4x16x32xbf16> to vector<1x16x32xbf16>
    %225 = vector.shape_cast %224 : vector<1x16x32xbf16> to vector<16x32xbf16>
    %226 = vector.extract_strided_slice %223 {offsets = [1, 0, 0], sizes = [1, 16, 32], strides = [1, 1, 1]} : vector<4x16x32xbf16> to vector<1x16x32xbf16>
    %227 = vector.shape_cast %226 : vector<1x16x32xbf16> to vector<16x32xbf16>
    %228 = vector.extract_strided_slice %223 {offsets = [2, 0, 0], sizes = [1, 16, 32], strides = [1, 1, 1]} : vector<4x16x32xbf16> to vector<1x16x32xbf16>
    %229 = vector.shape_cast %228 : vector<1x16x32xbf16> to vector<16x32xbf16>
    %230 = vector.extract_strided_slice %223 {offsets = [3, 0, 0], sizes = [1, 16, 32], strides = [1, 1, 1]} : vector<4x16x32xbf16> to vector<1x16x32xbf16>
    %231 = vector.shape_cast %230 : vector<1x16x32xbf16> to vector<16x32xbf16>
    %232 = tpu.concatenate %225, %227, %229, %231 in 1 : vector<16x32xbf16>, vector<16x32xbf16>, vector<16x32xbf16>, vector<16x32xbf16> -> vector<16x128xbf16>
    %233 = arith.index_cast %c1_i32 : i32 to index
    %c0_64 = arith.constant 0 : index
    %c0_65 = arith.constant 0 : index
    %234 = vector.load %arg7[%233, %c0_64, %c0_65] : memref<4x128x128xbf16, #tpu.memory_space<vmem>>, vector<1x128x128xbf16>
    %235 = vector.shape_cast %234 : vector<1x128x128xbf16> to vector<128x128xbf16>
    %cst_66 = arith.constant dense<0.000000e+00> : vector<16x128xf32>
    %236 = tpu.matmul %232, %235, %cst_66 {dimension_numbers = #tpu.dot_dimension_numbers<[1], [0], [0], [1], [0, 0, 1, 1], [], []>} : vector<16x128xbf16>, vector<128x128xbf16>, vector<16x128xf32> -> vector<16x128xf32>
    %237 = arith.index_cast %c1_i32 : i32 to index
    %c0_67 = arith.constant 0 : index
    %c0_68 = arith.constant 0 : index
    %238 = vector.load %arg8[%237, %c0_67, %c0_68] : memref<4x1x128xf32, #tpu.memory_space<vmem>>, vector<1x1x128xf32>
    %239 = vector.shape_cast %238 : vector<1x1x128xf32> to vector<1x128xf32>
    %240 = vector.broadcast %239 : vector<1x128xf32> to vector<16x128xf32>
    %241 = arith.addf %236, %240 : vector<16x128xf32>
    %242 = arith.addf %171, %241 : vector<16x128xf32>
    %243 = arith.index_cast %c1_i32 : i32 to index
    %c0_69 = arith.constant 0 : index
    %c0_70 = arith.constant 0 : index
    %244 = vector.load %arg9[%243, %c0_69, %c0_70] : memref<4x1x128xf32, #tpu.memory_space<vmem>>, vector<1x1x128xf32>
    %245 = vector.shape_cast %244 : vector<1x1x128xf32> to vector<1x128xf32>
    %246 = arith.index_cast %c1_i32 : i32 to index
    %c0_71 = arith.constant 0 : index
    %c0_72 = arith.constant 0 : index
    %247 = vector.load %arg10[%246, %c0_71, %c0_72] : memref<4x1x128xf32, #tpu.memory_space<vmem>>, vector<1x1x128xf32>
    %248 = vector.shape_cast %247 : vector<1x1x128xf32> to vector<1x128xf32>
    %cst_73 = arith.constant dense<0.000000e+00> : vector<16xf32>
    %249 = vector.multi_reduction <add>, %242, %cst_73 [1] : vector<16x128xf32> to vector<16xf32>
    %250 = vector.shape_cast %249 : vector<16xf32> to vector<16x1xf32>
    %cst_74 = arith.constant 1.280000e+02 : f32
    %251 = vector.broadcast %cst_74 : f32 to vector<16x1xf32>
    %252 = arith.divf %250, %251 : vector<16x1xf32>
    %253 = vector.broadcast %252 : vector<16x1xf32> to vector<16x128xf32>
    %254 = arith.subf %242, %253 : vector<16x128xf32>
    %255 = arith.mulf %254, %254 : vector<16x128xf32>
    %cst_75 = arith.constant dense<0.000000e+00> : vector<16xf32>
    %256 = vector.multi_reduction <add>, %255, %cst_75 [1] : vector<16x128xf32> to vector<16xf32>
    %257 = vector.shape_cast %256 : vector<16xf32> to vector<16x1xf32>
    %cst_76 = arith.constant 1.280000e+02 : f32
    %258 = vector.broadcast %cst_76 : f32 to vector<16x1xf32>
    %259 = arith.divf %257, %258 : vector<16x1xf32>
    %260 = vector.broadcast %252 : vector<16x1xf32> to vector<16x128xf32>
    %261 = arith.subf %242, %260 : vector<16x128xf32>
    %cst_77 = arith.constant 9.99999974E-6 : f32
    %262 = vector.broadcast %cst_77 : f32 to vector<16x1xf32>
    %263 = arith.addf %259, %262 : vector<16x1xf32>
    %264 = math.rsqrt %263 : vector<16x1xf32>
    %265 = vector.broadcast %264 : vector<16x1xf32> to vector<16x128xf32>
    %266 = arith.mulf %261, %265 : vector<16x128xf32>
    %267 = vector.broadcast %245 : vector<1x128xf32> to vector<16x128xf32>
    %268 = arith.mulf %266, %267 : vector<16x128xf32>
    %269 = vector.broadcast %248 : vector<1x128xf32> to vector<16x128xf32>
    %270 = arith.addf %268, %269 : vector<16x128xf32>
    %271 = arith.truncf %270 : vector<16x128xf32> to vector<16x128xbf16>
    %272 = arith.index_cast %c1_i32 : i32 to index
    %c0_78 = arith.constant 0 : index
    %c0_79 = arith.constant 0 : index
    %273 = vector.load %arg13[%272, %c0_78, %c0_79] : memref<4x128x512xbf16, #tpu.memory_space<vmem>>, vector<1x128x512xbf16>
    %274 = vector.shape_cast %273 : vector<1x128x512xbf16> to vector<128x512xbf16>
    %cst_80 = arith.constant dense<0.000000e+00> : vector<16x512xf32>
    %275 = tpu.matmul %271, %274, %cst_80 {dimension_numbers = #tpu.dot_dimension_numbers<[1], [0], [0], [1], [0, 0, 1, 1], [], []>} : vector<16x128xbf16>, vector<128x512xbf16>, vector<16x512xf32> -> vector<16x512xf32>
    %276 = arith.index_cast %c1_i32 : i32 to index
    %c0_81 = arith.constant 0 : index
    %c0_82 = arith.constant 0 : index
    %277 = vector.load %arg14[%276, %c0_81, %c0_82] : memref<4x1x512xf32, #tpu.memory_space<vmem>>, vector<1x1x512xf32>
    %278 = vector.shape_cast %277 : vector<1x1x512xf32> to vector<1x512xf32>
    %279 = vector.broadcast %278 : vector<1x512xf32> to vector<16x512xf32>
    %280 = arith.addf %275, %279 : vector<16x512xf32>
    %cst_83 = arith.constant 5.000000e-01 : f32
    %281 = vector.broadcast %cst_83 : f32 to vector<16x512xf32>
    %282 = arith.mulf %281, %280 : vector<16x512xf32>
    %cst_84 = arith.constant 0.707106769 : f32
    %283 = vector.broadcast %cst_84 : f32 to vector<16x512xf32>
    %284 = arith.mulf %280, %283 : vector<16x512xf32>
    %285 = math.erf %284 : vector<16x512xf32>
    %cst_85 = arith.constant 1.000000e+00 : f32
    %286 = vector.broadcast %cst_85 : f32 to vector<16x512xf32>
    %287 = arith.addf %286, %285 : vector<16x512xf32>
    %288 = arith.mulf %282, %287 : vector<16x512xf32>
    %289 = arith.truncf %288 : vector<16x512xf32> to vector<16x512xbf16>
    %290 = arith.index_cast %c1_i32 : i32 to index
    %c0_86 = arith.constant 0 : index
    %c0_87 = arith.constant 0 : index
    %291 = vector.load %arg15[%290, %c0_86, %c0_87] : memref<4x512x128xbf16, #tpu.memory_space<vmem>>, vector<1x512x128xbf16>
    %292 = vector.shape_cast %291 : vector<1x512x128xbf16> to vector<512x128xbf16>
    %cst_88 = arith.constant dense<0.000000e+00> : vector<16x128xf32>
    %293 = tpu.matmul %289, %292, %cst_88 {dimension_numbers = #tpu.dot_dimension_numbers<[1], [0], [0], [1], [0, 0, 1, 1], [], []>} : vector<16x512xbf16>, vector<512x128xbf16>, vector<16x128xf32> -> vector<16x128xf32>
    %294 = arith.index_cast %c1_i32 : i32 to index
    %c0_89 = arith.constant 0 : index
    %c0_90 = arith.constant 0 : index
    %295 = vector.load %arg16[%294, %c0_89, %c0_90] : memref<4x1x128xf32, #tpu.memory_space<vmem>>, vector<1x1x128xf32>
    %296 = vector.shape_cast %295 : vector<1x1x128xf32> to vector<1x128xf32>
    %297 = vector.broadcast %296 : vector<1x128xf32> to vector<16x128xf32>
    %298 = arith.addf %293, %297 : vector<16x128xf32>
    %299 = arith.addf %270, %298 : vector<16x128xf32>
    %300 = arith.index_cast %c1_i32 : i32 to index
    %c0_91 = arith.constant 0 : index
    %c0_92 = arith.constant 0 : index
    %301 = vector.load %arg11[%300, %c0_91, %c0_92] : memref<4x1x128xf32, #tpu.memory_space<vmem>>, vector<1x1x128xf32>
    %302 = vector.shape_cast %301 : vector<1x1x128xf32> to vector<1x128xf32>
    %303 = arith.index_cast %c1_i32 : i32 to index
    %c0_93 = arith.constant 0 : index
    %c0_94 = arith.constant 0 : index
    %304 = vector.load %arg12[%303, %c0_93, %c0_94] : memref<4x1x128xf32, #tpu.memory_space<vmem>>, vector<1x1x128xf32>
    %305 = vector.shape_cast %304 : vector<1x1x128xf32> to vector<1x128xf32>
    %cst_95 = arith.constant dense<0.000000e+00> : vector<16xf32>
    %306 = vector.multi_reduction <add>, %299, %cst_95 [1] : vector<16x128xf32> to vector<16xf32>
    %307 = vector.shape_cast %306 : vector<16xf32> to vector<16x1xf32>
    %cst_96 = arith.constant 1.280000e+02 : f32
    %308 = vector.broadcast %cst_96 : f32 to vector<16x1xf32>
    %309 = arith.divf %307, %308 : vector<16x1xf32>
    %310 = vector.broadcast %309 : vector<16x1xf32> to vector<16x128xf32>
    %311 = arith.subf %299, %310 : vector<16x128xf32>
    %312 = arith.mulf %311, %311 : vector<16x128xf32>
    %cst_97 = arith.constant dense<0.000000e+00> : vector<16xf32>
    %313 = vector.multi_reduction <add>, %312, %cst_97 [1] : vector<16x128xf32> to vector<16xf32>
    %314 = vector.shape_cast %313 : vector<16xf32> to vector<16x1xf32>
    %cst_98 = arith.constant 1.280000e+02 : f32
    %315 = vector.broadcast %cst_98 : f32 to vector<16x1xf32>
    %316 = arith.divf %314, %315 : vector<16x1xf32>
    %317 = vector.broadcast %309 : vector<16x1xf32> to vector<16x128xf32>
    %318 = arith.subf %299, %317 : vector<16x128xf32>
    %cst_99 = arith.constant 9.99999974E-6 : f32
    %319 = vector.broadcast %cst_99 : f32 to vector<16x1xf32>
    %320 = arith.addf %316, %319 : vector<16x1xf32>
    %321 = math.rsqrt %320 : vector<16x1xf32>
    %322 = vector.broadcast %321 : vector<16x1xf32> to vector<16x128xf32>
    %323 = arith.mulf %318, %322 : vector<16x128xf32>
    %324 = vector.broadcast %302 : vector<1x128xf32> to vector<16x128xf32>
    %325 = arith.mulf %323, %324 : vector<16x128xf32>
    %326 = vector.broadcast %305 : vector<1x128xf32> to vector<16x128xf32>
    %327 = arith.addf %325, %326 : vector<16x128xf32>
    %c2_i32 = arith.constant 2 : i32
    %328 = arith.truncf %327 : vector<16x128xf32> to vector<16x128xbf16>
    %329 = arith.index_cast %c2_i32 : i32 to index
    %c0_100 = arith.constant 0 : index
    %c0_101 = arith.constant 0 : index
    %330 = vector.load %arg5[%329, %c0_100, %c0_101] : memref<4x128x384xbf16, #tpu.memory_space<vmem>>, vector<1x128x384xbf16>
    %331 = vector.shape_cast %330 : vector<1x128x384xbf16> to vector<128x384xbf16>
    %cst_102 = arith.constant dense<0.000000e+00> : vector<16x384xf32>
    %332 = tpu.matmul %328, %331, %cst_102 {dimension_numbers = #tpu.dot_dimension_numbers<[1], [0], [0], [1], [0, 0, 1, 1], [], []>} : vector<16x128xbf16>, vector<128x384xbf16>, vector<16x384xf32> -> vector<16x384xf32>
    %333 = arith.index_cast %c2_i32 : i32 to index
    %c0_103 = arith.constant 0 : index
    %c0_104 = arith.constant 0 : index
    %334 = vector.load %arg6[%333, %c0_103, %c0_104] : memref<4x1x384xf32, #tpu.memory_space<vmem>>, vector<1x1x384xf32>
    %335 = vector.shape_cast %334 : vector<1x1x384xf32> to vector<1x384xf32>
    %336 = vector.broadcast %335 : vector<1x384xf32> to vector<16x384xf32>
    %337 = arith.addf %332, %336 : vector<16x384xf32>
    %338 = arith.truncf %337 : vector<16x384xf32> to vector<16x384xbf16>
    %339 = vector.extract_strided_slice %338 {offsets = [0, 0], sizes = [16, 32], strides = [1, 1]} : vector<16x384xbf16> to vector<16x32xbf16>
    %340 = vector.extract_strided_slice %338 {offsets = [0, 32], sizes = [16, 32], strides = [1, 1]} : vector<16x384xbf16> to vector<16x32xbf16>
    %341 = vector.extract_strided_slice %338 {offsets = [0, 64], sizes = [16, 32], strides = [1, 1]} : vector<16x384xbf16> to vector<16x32xbf16>
    %342 = vector.extract_strided_slice %338 {offsets = [0, 96], sizes = [16, 32], strides = [1, 1]} : vector<16x384xbf16> to vector<16x32xbf16>
    %343 = vector.shape_cast %339 : vector<16x32xbf16> to vector<1x16x32xbf16>
    %344 = vector.shape_cast %340 : vector<16x32xbf16> to vector<1x16x32xbf16>
    %345 = vector.shape_cast %341 : vector<16x32xbf16> to vector<1x16x32xbf16>
    %346 = vector.shape_cast %342 : vector<16x32xbf16> to vector<1x16x32xbf16>
    %347 = tpu.concatenate %343, %344, %345, %346 in 0 : vector<1x16x32xbf16>, vector<1x16x32xbf16>, vector<1x16x32xbf16>, vector<1x16x32xbf16> -> vector<4x16x32xbf16>
    %348 = vector.extract_strided_slice %338 {offsets = [0, 128], sizes = [16, 32], strides = [1, 1]} : vector<16x384xbf16> to vector<16x32xbf16>
    %349 = vector.extract_strided_slice %338 {offsets = [0, 160], sizes = [16, 32], strides = [1, 1]} : vector<16x384xbf16> to vector<16x32xbf16>
    %350 = vector.extract_strided_slice %338 {offsets = [0, 192], sizes = [16, 32], strides = [1, 1]} : vector<16x384xbf16> to vector<16x32xbf16>
    %351 = vector.extract_strided_slice %338 {offsets = [0, 224], sizes = [16, 32], strides = [1, 1]} : vector<16x384xbf16> to vector<16x32xbf16>
    %352 = vector.shape_cast %348 : vector<16x32xbf16> to vector<1x16x32xbf16>
    %353 = vector.shape_cast %349 : vector<16x32xbf16> to vector<1x16x32xbf16>
    %354 = vector.shape_cast %350 : vector<16x32xbf16> to vector<1x16x32xbf16>
    %355 = vector.shape_cast %351 : vector<16x32xbf16> to vector<1x16x32xbf16>
    %356 = tpu.concatenate %352, %353, %354, %355 in 0 : vector<1x16x32xbf16>, vector<1x16x32xbf16>, vector<1x16x32xbf16>, vector<1x16x32xbf16> -> vector<4x16x32xbf16>
    %357 = vector.extract_strided_slice %338 {offsets = [0, 256], sizes = [16, 32], strides = [1, 1]} : vector<16x384xbf16> to vector<16x32xbf16>
    %358 = vector.extract_strided_slice %338 {offsets = [0, 288], sizes = [16, 32], strides = [1, 1]} : vector<16x384xbf16> to vector<16x32xbf16>
    %359 = vector.extract_strided_slice %338 {offsets = [0, 320], sizes = [16, 32], strides = [1, 1]} : vector<16x384xbf16> to vector<16x32xbf16>
    %360 = vector.extract_strided_slice %338 {offsets = [0, 352], sizes = [16, 32], strides = [1, 1]} : vector<16x384xbf16> to vector<16x32xbf16>
    %361 = vector.shape_cast %357 : vector<16x32xbf16> to vector<1x16x32xbf16>
    %362 = vector.shape_cast %358 : vector<16x32xbf16> to vector<1x16x32xbf16>
    %363 = vector.shape_cast %359 : vector<16x32xbf16> to vector<1x16x32xbf16>
    %364 = vector.shape_cast %360 : vector<16x32xbf16> to vector<1x16x32xbf16>
    %365 = tpu.concatenate %361, %362, %363, %364 in 0 : vector<1x16x32xbf16>, vector<1x16x32xbf16>, vector<1x16x32xbf16>, vector<1x16x32xbf16> -> vector<4x16x32xbf16>
    "tpu.trace_start"() <{level = 10 : i32, message = "bqd,bkd->bqk"}> : () -> ()
    %cst_105 = arith.constant dense<0.000000e+00> : vector<4x16x16xf32>
    %366 = tpu.matmul %347, %356, %cst_105 {dimension_numbers = #tpu.dot_dimension_numbers<[2], [2], [1], [1], [0, 0, 0, 1, 1, 1], [0], [0]>} : vector<4x16x32xbf16>, vector<4x16x32xbf16>, vector<4x16x16xf32> -> vector<4x16x16xf32>
    "tpu.trace_stop"() : () -> ()
    %cst_106 = arith.constant dense<0xFF800000> : vector<4x16xf32>
    %367 = vector.multi_reduction <maximumf>, %366, %cst_106 [2] : vector<4x16x16xf32> to vector<4x16xf32>
    %368 = vector.shape_cast %367 : vector<4x16xf32> to vector<4x16x1xf32>
    %369 = vector.broadcast %368 : vector<4x16x1xf32> to vector<4x16x16xf32>
    %370 = arith.subf %366, %369 : vector<4x16x16xf32>
    %371 = math.exp %370 : vector<4x16x16xf32>
    %cst_107 = arith.constant dense<0.000000e+00> : vector<4x16xf32>
    %372 = vector.multi_reduction <add>, %371, %cst_107 [2] : vector<4x16x16xf32> to vector<4x16xf32>
    %373 = vector.shape_cast %372 : vector<4x16xf32> to vector<4x16x1xf32>
    %374 = tpu.reciprocal %373 {approx = true} : vector<4x16x1xf32> -> vector<4x16x1xf32>
    %375 = vector.broadcast %374 : vector<4x16x1xf32> to vector<4x16x16xf32>
    %376 = arith.mulf %371, %375 : vector<4x16x16xf32>
    %377 = arith.truncf %376 : vector<4x16x16xf32> to vector<4x16x16xbf16>
    "tpu.trace_start"() <{level = 10 : i32, message = "bqk,bkd->bqd"}> : () -> ()
    %cst_108 = arith.constant dense<0.000000e+00> : vector<4x16x32xf32>
    %378 = tpu.matmul %377, %365, %cst_108 {dimension_numbers = #tpu.dot_dimension_numbers<[2], [1], [1], [2], [0, 0, 0, 1, 1, 2], [0], [0]>} : vector<4x16x16xbf16>, vector<4x16x32xbf16>, vector<4x16x32xf32> -> vector<4x16x32xf32>
    "tpu.trace_stop"() : () -> ()
    %379 = arith.truncf %378 : vector<4x16x32xf32> to vector<4x16x32xbf16>
    %380 = vector.extract_strided_slice %379 {offsets = [0, 0, 0], sizes = [1, 16, 32], strides = [1, 1, 1]} : vector<4x16x32xbf16> to vector<1x16x32xbf16>
    %381 = vector.shape_cast %380 : vector<1x16x32xbf16> to vector<16x32xbf16>
    %382 = vector.extract_strided_slice %379 {offsets = [1, 0, 0], sizes = [1, 16, 32], strides = [1, 1, 1]} : vector<4x16x32xbf16> to vector<1x16x32xbf16>
    %383 = vector.shape_cast %382 : vector<1x16x32xbf16> to vector<16x32xbf16>
    %384 = vector.extract_strided_slice %379 {offsets = [2, 0, 0], sizes = [1, 16, 32], strides = [1, 1, 1]} : vector<4x16x32xbf16> to vector<1x16x32xbf16>
    %385 = vector.shape_cast %384 : vector<1x16x32xbf16> to vector<16x32xbf16>
    %386 = vector.extract_strided_slice %379 {offsets = [3, 0, 0], sizes = [1, 16, 32], strides = [1, 1, 1]} : vector<4x16x32xbf16> to vector<1x16x32xbf16>
    %387 = vector.shape_cast %386 : vector<1x16x32xbf16> to vector<16x32xbf16>
    %388 = tpu.concatenate %381, %383, %385, %387 in 1 : vector<16x32xbf16>, vector<16x32xbf16>, vector<16x32xbf16>, vector<16x32xbf16> -> vector<16x128xbf16>
    %389 = arith.index_cast %c2_i32 : i32 to index
    %c0_109 = arith.constant 0 : index
    %c0_110 = arith.constant 0 : index
    %390 = vector.load %arg7[%389, %c0_109, %c0_110] : memref<4x128x128xbf16, #tpu.memory_space<vmem>>, vector<1x128x128xbf16>
    %391 = vector.shape_cast %390 : vector<1x128x128xbf16> to vector<128x128xbf16>
    %cst_111 = arith.constant dense<0.000000e+00> : vector<16x128xf32>
    %392 = tpu.matmul %388, %391, %cst_111 {dimension_numbers = #tpu.dot_dimension_numbers<[1], [0], [0], [1], [0, 0, 1, 1], [], []>} : vector<16x128xbf16>, vector<128x128xbf16>, vector<16x128xf32> -> vector<16x128xf32>
    %393 = arith.index_cast %c2_i32 : i32 to index
    %c0_112 = arith.constant 0 : index
    %c0_113 = arith.constant 0 : index
    %394 = vector.load %arg8[%393, %c0_112, %c0_113] : memref<4x1x128xf32, #tpu.memory_space<vmem>>, vector<1x1x128xf32>
    %395 = vector.shape_cast %394 : vector<1x1x128xf32> to vector<1x128xf32>
    %396 = vector.broadcast %395 : vector<1x128xf32> to vector<16x128xf32>
    %397 = arith.addf %392, %396 : vector<16x128xf32>
    %398 = arith.addf %327, %397 : vector<16x128xf32>
    %399 = arith.index_cast %c2_i32 : i32 to index
    %c0_114 = arith.constant 0 : index
    %c0_115 = arith.constant 0 : index
    %400 = vector.load %arg9[%399, %c0_114, %c0_115] : memref<4x1x128xf32, #tpu.memory_space<vmem>>, vector<1x1x128xf32>
    %401 = vector.shape_cast %400 : vector<1x1x128xf32> to vector<1x128xf32>
    %402 = arith.index_cast %c2_i32 : i32 to index
    %c0_116 = arith.constant 0 : index
    %c0_117 = arith.constant 0 : index
    %403 = vector.load %arg10[%402, %c0_116, %c0_117] : memref<4x1x128xf32, #tpu.memory_space<vmem>>, vector<1x1x128xf32>
    %404 = vector.shape_cast %403 : vector<1x1x128xf32> to vector<1x128xf32>
    %cst_118 = arith.constant dense<0.000000e+00> : vector<16xf32>
    %405 = vector.multi_reduction <add>, %398, %cst_118 [1] : vector<16x128xf32> to vector<16xf32>
    %406 = vector.shape_cast %405 : vector<16xf32> to vector<16x1xf32>
    %cst_119 = arith.constant 1.280000e+02 : f32
    %407 = vector.broadcast %cst_119 : f32 to vector<16x1xf32>
    %408 = arith.divf %406, %407 : vector<16x1xf32>
    %409 = vector.broadcast %408 : vector<16x1xf32> to vector<16x128xf32>
    %410 = arith.subf %398, %409 : vector<16x128xf32>
    %411 = arith.mulf %410, %410 : vector<16x128xf32>
    %cst_120 = arith.constant dense<0.000000e+00> : vector<16xf32>
    %412 = vector.multi_reduction <add>, %411, %cst_120 [1] : vector<16x128xf32> to vector<16xf32>
    %413 = vector.shape_cast %412 : vector<16xf32> to vector<16x1xf32>
    %cst_121 = arith.constant 1.280000e+02 : f32
    %414 = vector.broadcast %cst_121 : f32 to vector<16x1xf32>
    %415 = arith.divf %413, %414 : vector<16x1xf32>
    %416 = vector.broadcast %408 : vector<16x1xf32> to vector<16x128xf32>
    %417 = arith.subf %398, %416 : vector<16x128xf32>
    %cst_122 = arith.constant 9.99999974E-6 : f32
    %418 = vector.broadcast %cst_122 : f32 to vector<16x1xf32>
    %419 = arith.addf %415, %418 : vector<16x1xf32>
    %420 = math.rsqrt %419 : vector<16x1xf32>
    %421 = vector.broadcast %420 : vector<16x1xf32> to vector<16x128xf32>
    %422 = arith.mulf %417, %421 : vector<16x128xf32>
    %423 = vector.broadcast %401 : vector<1x128xf32> to vector<16x128xf32>
    %424 = arith.mulf %422, %423 : vector<16x128xf32>
    %425 = vector.broadcast %404 : vector<1x128xf32> to vector<16x128xf32>
    %426 = arith.addf %424, %425 : vector<16x128xf32>
    %427 = arith.truncf %426 : vector<16x128xf32> to vector<16x128xbf16>
    %428 = arith.index_cast %c2_i32 : i32 to index
    %c0_123 = arith.constant 0 : index
    %c0_124 = arith.constant 0 : index
    %429 = vector.load %arg13[%428, %c0_123, %c0_124] : memref<4x128x512xbf16, #tpu.memory_space<vmem>>, vector<1x128x512xbf16>
    %430 = vector.shape_cast %429 : vector<1x128x512xbf16> to vector<128x512xbf16>
    %cst_125 = arith.constant dense<0.000000e+00> : vector<16x512xf32>
    %431 = tpu.matmul %427, %430, %cst_125 {dimension_numbers = #tpu.dot_dimension_numbers<[1], [0], [0], [1], [0, 0, 1, 1], [], []>} : vector<16x128xbf16>, vector<128x512xbf16>, vector<16x512xf32> -> vector<16x512xf32>
    %432 = arith.index_cast %c2_i32 : i32 to index
    %c0_126 = arith.constant 0 : index
    %c0_127 = arith.constant 0 : index
    %433 = vector.load %arg14[%432, %c0_126, %c0_127] : memref<4x1x512xf32, #tpu.memory_space<vmem>>, vector<1x1x512xf32>
    %434 = vector.shape_cast %433 : vector<1x1x512xf32> to vector<1x512xf32>
    %435 = vector.broadcast %434 : vector<1x512xf32> to vector<16x512xf32>
    %436 = arith.addf %431, %435 : vector<16x512xf32>
    %cst_128 = arith.constant 5.000000e-01 : f32
    %437 = vector.broadcast %cst_128 : f32 to vector<16x512xf32>
    %438 = arith.mulf %437, %436 : vector<16x512xf32>
    %cst_129 = arith.constant 0.707106769 : f32
    %439 = vector.broadcast %cst_129 : f32 to vector<16x512xf32>
    %440 = arith.mulf %436, %439 : vector<16x512xf32>
    %441 = math.erf %440 : vector<16x512xf32>
    %cst_130 = arith.constant 1.000000e+00 : f32
    %442 = vector.broadcast %cst_130 : f32 to vector<16x512xf32>
    %443 = arith.addf %442, %441 : vector<16x512xf32>
    %444 = arith.mulf %438, %443 : vector<16x512xf32>
    %445 = arith.truncf %444 : vector<16x512xf32> to vector<16x512xbf16>
    %446 = arith.index_cast %c2_i32 : i32 to index
    %c0_131 = arith.constant 0 : index
    %c0_132 = arith.constant 0 : index
    %447 = vector.load %arg15[%446, %c0_131, %c0_132] : memref<4x512x128xbf16, #tpu.memory_space<vmem>>, vector<1x512x128xbf16>
    %448 = vector.shape_cast %447 : vector<1x512x128xbf16> to vector<512x128xbf16>
    %cst_133 = arith.constant dense<0.000000e+00> : vector<16x128xf32>
    %449 = tpu.matmul %445, %448, %cst_133 {dimension_numbers = #tpu.dot_dimension_numbers<[1], [0], [0], [1], [0, 0, 1, 1], [], []>} : vector<16x512xbf16>, vector<512x128xbf16>, vector<16x128xf32> -> vector<16x128xf32>
    %450 = arith.index_cast %c2_i32 : i32 to index
    %c0_134 = arith.constant 0 : index
    %c0_135 = arith.constant 0 : index
    %451 = vector.load %arg16[%450, %c0_134, %c0_135] : memref<4x1x128xf32, #tpu.memory_space<vmem>>, vector<1x1x128xf32>
    %452 = vector.shape_cast %451 : vector<1x1x128xf32> to vector<1x128xf32>
    %453 = vector.broadcast %452 : vector<1x128xf32> to vector<16x128xf32>
    %454 = arith.addf %449, %453 : vector<16x128xf32>
    %455 = arith.addf %426, %454 : vector<16x128xf32>
    %456 = arith.index_cast %c2_i32 : i32 to index
    %c0_136 = arith.constant 0 : index
    %c0_137 = arith.constant 0 : index
    %457 = vector.load %arg11[%456, %c0_136, %c0_137] : memref<4x1x128xf32, #tpu.memory_space<vmem>>, vector<1x1x128xf32>
    %458 = vector.shape_cast %457 : vector<1x1x128xf32> to vector<1x128xf32>
    %459 = arith.index_cast %c2_i32 : i32 to index
    %c0_138 = arith.constant 0 : index
    %c0_139 = arith.constant 0 : index
    %460 = vector.load %arg12[%459, %c0_138, %c0_139] : memref<4x1x128xf32, #tpu.memory_space<vmem>>, vector<1x1x128xf32>
    %461 = vector.shape_cast %460 : vector<1x1x128xf32> to vector<1x128xf32>
    %cst_140 = arith.constant dense<0.000000e+00> : vector<16xf32>
    %462 = vector.multi_reduction <add>, %455, %cst_140 [1] : vector<16x128xf32> to vector<16xf32>
    %463 = vector.shape_cast %462 : vector<16xf32> to vector<16x1xf32>
    %cst_141 = arith.constant 1.280000e+02 : f32
    %464 = vector.broadcast %cst_141 : f32 to vector<16x1xf32>
    %465 = arith.divf %463, %464 : vector<16x1xf32>
    %466 = vector.broadcast %465 : vector<16x1xf32> to vector<16x128xf32>
    %467 = arith.subf %455, %466 : vector<16x128xf32>
    %468 = arith.mulf %467, %467 : vector<16x128xf32>
    %cst_142 = arith.constant dense<0.000000e+00> : vector<16xf32>
    %469 = vector.multi_reduction <add>, %468, %cst_142 [1] : vector<16x128xf32> to vector<16xf32>
    %470 = vector.shape_cast %469 : vector<16xf32> to vector<16x1xf32>
    %cst_143 = arith.constant 1.280000e+02 : f32
    %471 = vector.broadcast %cst_143 : f32 to vector<16x1xf32>
    %472 = arith.divf %470, %471 : vector<16x1xf32>
    %473 = vector.broadcast %465 : vector<16x1xf32> to vector<16x128xf32>
    %474 = arith.subf %455, %473 : vector<16x128xf32>
    %cst_144 = arith.constant 9.99999974E-6 : f32
    %475 = vector.broadcast %cst_144 : f32 to vector<16x1xf32>
    %476 = arith.addf %472, %475 : vector<16x1xf32>
    %477 = math.rsqrt %476 : vector<16x1xf32>
    %478 = vector.broadcast %477 : vector<16x1xf32> to vector<16x128xf32>
    %479 = arith.mulf %474, %478 : vector<16x128xf32>
    %480 = vector.broadcast %458 : vector<1x128xf32> to vector<16x128xf32>
    %481 = arith.mulf %479, %480 : vector<16x128xf32>
    %482 = vector.broadcast %461 : vector<1x128xf32> to vector<16x128xf32>
    %483 = arith.addf %481, %482 : vector<16x128xf32>
    %c3_i32 = arith.constant 3 : i32
    %484 = arith.truncf %483 : vector<16x128xf32> to vector<16x128xbf16>
    %485 = arith.index_cast %c3_i32 : i32 to index
    %c0_145 = arith.constant 0 : index
    %c0_146 = arith.constant 0 : index
    %486 = vector.load %arg5[%485, %c0_145, %c0_146] : memref<4x128x384xbf16, #tpu.memory_space<vmem>>, vector<1x128x384xbf16>
    %487 = vector.shape_cast %486 : vector<1x128x384xbf16> to vector<128x384xbf16>
    %cst_147 = arith.constant dense<0.000000e+00> : vector<16x384xf32>
    %488 = tpu.matmul %484, %487, %cst_147 {dimension_numbers = #tpu.dot_dimension_numbers<[1], [0], [0], [1], [0, 0, 1, 1], [], []>} : vector<16x128xbf16>, vector<128x384xbf16>, vector<16x384xf32> -> vector<16x384xf32>
    %489 = arith.index_cast %c3_i32 : i32 to index
    %c0_148 = arith.constant 0 : index
    %c0_149 = arith.constant 0 : index
    %490 = vector.load %arg6[%489, %c0_148, %c0_149] : memref<4x1x384xf32, #tpu.memory_space<vmem>>, vector<1x1x384xf32>
    %491 = vector.shape_cast %490 : vector<1x1x384xf32> to vector<1x384xf32>
    %492 = vector.broadcast %491 : vector<1x384xf32> to vector<16x384xf32>
    %493 = arith.addf %488, %492 : vector<16x384xf32>
    %494 = arith.truncf %493 : vector<16x384xf32> to vector<16x384xbf16>
    %495 = vector.extract_strided_slice %494 {offsets = [0, 0], sizes = [16, 32], strides = [1, 1]} : vector<16x384xbf16> to vector<16x32xbf16>
    %496 = vector.extract_strided_slice %494 {offsets = [0, 32], sizes = [16, 32], strides = [1, 1]} : vector<16x384xbf16> to vector<16x32xbf16>
    %497 = vector.extract_strided_slice %494 {offsets = [0, 64], sizes = [16, 32], strides = [1, 1]} : vector<16x384xbf16> to vector<16x32xbf16>
    %498 = vector.extract_strided_slice %494 {offsets = [0, 96], sizes = [16, 32], strides = [1, 1]} : vector<16x384xbf16> to vector<16x32xbf16>
    %499 = vector.shape_cast %495 : vector<16x32xbf16> to vector<1x16x32xbf16>
    %500 = vector.shape_cast %496 : vector<16x32xbf16> to vector<1x16x32xbf16>
    %501 = vector.shape_cast %497 : vector<16x32xbf16> to vector<1x16x32xbf16>
    %502 = vector.shape_cast %498 : vector<16x32xbf16> to vector<1x16x32xbf16>
    %503 = tpu.concatenate %499, %500, %501, %502 in 0 : vector<1x16x32xbf16>, vector<1x16x32xbf16>, vector<1x16x32xbf16>, vector<1x16x32xbf16> -> vector<4x16x32xbf16>
    %504 = vector.extract_strided_slice %494 {offsets = [0, 128], sizes = [16, 32], strides = [1, 1]} : vector<16x384xbf16> to vector<16x32xbf16>
    %505 = vector.extract_strided_slice %494 {offsets = [0, 160], sizes = [16, 32], strides = [1, 1]} : vector<16x384xbf16> to vector<16x32xbf16>
    %506 = vector.extract_strided_slice %494 {offsets = [0, 192], sizes = [16, 32], strides = [1, 1]} : vector<16x384xbf16> to vector<16x32xbf16>
    %507 = vector.extract_strided_slice %494 {offsets = [0, 224], sizes = [16, 32], strides = [1, 1]} : vector<16x384xbf16> to vector<16x32xbf16>
    %508 = vector.shape_cast %504 : vector<16x32xbf16> to vector<1x16x32xbf16>
    %509 = vector.shape_cast %505 : vector<16x32xbf16> to vector<1x16x32xbf16>
    %510 = vector.shape_cast %506 : vector<16x32xbf16> to vector<1x16x32xbf16>
    %511 = vector.shape_cast %507 : vector<16x32xbf16> to vector<1x16x32xbf16>
    %512 = tpu.concatenate %508, %509, %510, %511 in 0 : vector<1x16x32xbf16>, vector<1x16x32xbf16>, vector<1x16x32xbf16>, vector<1x16x32xbf16> -> vector<4x16x32xbf16>
    %513 = vector.extract_strided_slice %494 {offsets = [0, 256], sizes = [16, 32], strides = [1, 1]} : vector<16x384xbf16> to vector<16x32xbf16>
    %514 = vector.extract_strided_slice %494 {offsets = [0, 288], sizes = [16, 32], strides = [1, 1]} : vector<16x384xbf16> to vector<16x32xbf16>
    %515 = vector.extract_strided_slice %494 {offsets = [0, 320], sizes = [16, 32], strides = [1, 1]} : vector<16x384xbf16> to vector<16x32xbf16>
    %516 = vector.extract_strided_slice %494 {offsets = [0, 352], sizes = [16, 32], strides = [1, 1]} : vector<16x384xbf16> to vector<16x32xbf16>
    %517 = vector.shape_cast %513 : vector<16x32xbf16> to vector<1x16x32xbf16>
    %518 = vector.shape_cast %514 : vector<16x32xbf16> to vector<1x16x32xbf16>
    %519 = vector.shape_cast %515 : vector<16x32xbf16> to vector<1x16x32xbf16>
    %520 = vector.shape_cast %516 : vector<16x32xbf16> to vector<1x16x32xbf16>
    %521 = tpu.concatenate %517, %518, %519, %520 in 0 : vector<1x16x32xbf16>, vector<1x16x32xbf16>, vector<1x16x32xbf16>, vector<1x16x32xbf16> -> vector<4x16x32xbf16>
    "tpu.trace_start"() <{level = 10 : i32, message = "bqd,bkd->bqk"}> : () -> ()
    %cst_150 = arith.constant dense<0.000000e+00> : vector<4x16x16xf32>
    %522 = tpu.matmul %503, %512, %cst_150 {dimension_numbers = #tpu.dot_dimension_numbers<[2], [2], [1], [1], [0, 0, 0, 1, 1, 1], [0], [0]>} : vector<4x16x32xbf16>, vector<4x16x32xbf16>, vector<4x16x16xf32> -> vector<4x16x16xf32>
    "tpu.trace_stop"() : () -> ()
    %cst_151 = arith.constant dense<0xFF800000> : vector<4x16xf32>
    %523 = vector.multi_reduction <maximumf>, %522, %cst_151 [2] : vector<4x16x16xf32> to vector<4x16xf32>
    %524 = vector.shape_cast %523 : vector<4x16xf32> to vector<4x16x1xf32>
    %525 = vector.broadcast %524 : vector<4x16x1xf32> to vector<4x16x16xf32>
    %526 = arith.subf %522, %525 : vector<4x16x16xf32>
    %527 = math.exp %526 : vector<4x16x16xf32>
    %cst_152 = arith.constant dense<0.000000e+00> : vector<4x16xf32>
    %528 = vector.multi_reduction <add>, %527, %cst_152 [2] : vector<4x16x16xf32> to vector<4x16xf32>
    %529 = vector.shape_cast %528 : vector<4x16xf32> to vector<4x16x1xf32>
    %530 = tpu.reciprocal %529 {approx = true} : vector<4x16x1xf32> -> vector<4x16x1xf32>
    %531 = vector.broadcast %530 : vector<4x16x1xf32> to vector<4x16x16xf32>
    %532 = arith.mulf %527, %531 : vector<4x16x16xf32>
    %533 = arith.truncf %532 : vector<4x16x16xf32> to vector<4x16x16xbf16>
    "tpu.trace_start"() <{level = 10 : i32, message = "bqk,bkd->bqd"}> : () -> ()
    %cst_153 = arith.constant dense<0.000000e+00> : vector<4x16x32xf32>
    %534 = tpu.matmul %533, %521, %cst_153 {dimension_numbers = #tpu.dot_dimension_numbers<[2], [1], [1], [2], [0, 0, 0, 1, 1, 2], [0], [0]>} : vector<4x16x16xbf16>, vector<4x16x32xbf16>, vector<4x16x32xf32> -> vector<4x16x32xf32>
    "tpu.trace_stop"() : () -> ()
    %535 = arith.truncf %534 : vector<4x16x32xf32> to vector<4x16x32xbf16>
    %536 = vector.extract_strided_slice %535 {offsets = [0, 0, 0], sizes = [1, 16, 32], strides = [1, 1, 1]} : vector<4x16x32xbf16> to vector<1x16x32xbf16>
    %537 = vector.shape_cast %536 : vector<1x16x32xbf16> to vector<16x32xbf16>
    %538 = vector.extract_strided_slice %535 {offsets = [1, 0, 0], sizes = [1, 16, 32], strides = [1, 1, 1]} : vector<4x16x32xbf16> to vector<1x16x32xbf16>
    %539 = vector.shape_cast %538 : vector<1x16x32xbf16> to vector<16x32xbf16>
    %540 = vector.extract_strided_slice %535 {offsets = [2, 0, 0], sizes = [1, 16, 32], strides = [1, 1, 1]} : vector<4x16x32xbf16> to vector<1x16x32xbf16>
    %541 = vector.shape_cast %540 : vector<1x16x32xbf16> to vector<16x32xbf16>
    %542 = vector.extract_strided_slice %535 {offsets = [3, 0, 0], sizes = [1, 16, 32], strides = [1, 1, 1]} : vector<4x16x32xbf16> to vector<1x16x32xbf16>
    %543 = vector.shape_cast %542 : vector<1x16x32xbf16> to vector<16x32xbf16>
    %544 = tpu.concatenate %537, %539, %541, %543 in 1 : vector<16x32xbf16>, vector<16x32xbf16>, vector<16x32xbf16>, vector<16x32xbf16> -> vector<16x128xbf16>
    %545 = arith.index_cast %c3_i32 : i32 to index
    %c0_154 = arith.constant 0 : index
    %c0_155 = arith.constant 0 : index
    %546 = vector.load %arg7[%545, %c0_154, %c0_155] : memref<4x128x128xbf16, #tpu.memory_space<vmem>>, vector<1x128x128xbf16>
    %547 = vector.shape_cast %546 : vector<1x128x128xbf16> to vector<128x128xbf16>
    %cst_156 = arith.constant dense<0.000000e+00> : vector<16x128xf32>
    %548 = tpu.matmul %544, %547, %cst_156 {dimension_numbers = #tpu.dot_dimension_numbers<[1], [0], [0], [1], [0, 0, 1, 1], [], []>} : vector<16x128xbf16>, vector<128x128xbf16>, vector<16x128xf32> -> vector<16x128xf32>
    %549 = arith.index_cast %c3_i32 : i32 to index
    %c0_157 = arith.constant 0 : index
    %c0_158 = arith.constant 0 : index
    %550 = vector.load %arg8[%549, %c0_157, %c0_158] : memref<4x1x128xf32, #tpu.memory_space<vmem>>, vector<1x1x128xf32>
    %551 = vector.shape_cast %550 : vector<1x1x128xf32> to vector<1x128xf32>
    %552 = vector.broadcast %551 : vector<1x128xf32> to vector<16x128xf32>
    %553 = arith.addf %548, %552 : vector<16x128xf32>
    %554 = arith.addf %483, %553 : vector<16x128xf32>
    %555 = arith.index_cast %c3_i32 : i32 to index
    %c0_159 = arith.constant 0 : index
    %c0_160 = arith.constant 0 : index
    %556 = vector.load %arg9[%555, %c0_159, %c0_160] : memref<4x1x128xf32, #tpu.memory_space<vmem>>, vector<1x1x128xf32>
    %557 = vector.shape_cast %556 : vector<1x1x128xf32> to vector<1x128xf32>
    %558 = arith.index_cast %c3_i32 : i32 to index
    %c0_161 = arith.constant 0 : index
    %c0_162 = arith.constant 0 : index
    %559 = vector.load %arg10[%558, %c0_161, %c0_162] : memref<4x1x128xf32, #tpu.memory_space<vmem>>, vector<1x1x128xf32>
    %560 = vector.shape_cast %559 : vector<1x1x128xf32> to vector<1x128xf32>
    %cst_163 = arith.constant dense<0.000000e+00> : vector<16xf32>
    %561 = vector.multi_reduction <add>, %554, %cst_163 [1] : vector<16x128xf32> to vector<16xf32>
    %562 = vector.shape_cast %561 : vector<16xf32> to vector<16x1xf32>
    %cst_164 = arith.constant 1.280000e+02 : f32
    %563 = vector.broadcast %cst_164 : f32 to vector<16x1xf32>
    %564 = arith.divf %562, %563 : vector<16x1xf32>
    %565 = vector.broadcast %564 : vector<16x1xf32> to vector<16x128xf32>
    %566 = arith.subf %554, %565 : vector<16x128xf32>
    %567 = arith.mulf %566, %566 : vector<16x128xf32>
    %cst_165 = arith.constant dense<0.000000e+00> : vector<16xf32>
    %568 = vector.multi_reduction <add>, %567, %cst_165 [1] : vector<16x128xf32> to vector<16xf32>
    %569 = vector.shape_cast %568 : vector<16xf32> to vector<16x1xf32>
    %cst_166 = arith.constant 1.280000e+02 : f32
    %570 = vector.broadcast %cst_166 : f32 to vector<16x1xf32>
    %571 = arith.divf %569, %570 : vector<16x1xf32>
    %572 = vector.broadcast %564 : vector<16x1xf32> to vector<16x128xf32>
    %573 = arith.subf %554, %572 : vector<16x128xf32>
    %cst_167 = arith.constant 9.99999974E-6 : f32
    %574 = vector.broadcast %cst_167 : f32 to vector<16x1xf32>
    %575 = arith.addf %571, %574 : vector<16x1xf32>
    %576 = math.rsqrt %575 : vector<16x1xf32>
    %577 = vector.broadcast %576 : vector<16x1xf32> to vector<16x128xf32>
    %578 = arith.mulf %573, %577 : vector<16x128xf32>
    %579 = vector.broadcast %557 : vector<1x128xf32> to vector<16x128xf32>
    %580 = arith.mulf %578, %579 : vector<16x128xf32>
    %581 = vector.broadcast %560 : vector<1x128xf32> to vector<16x128xf32>
    %582 = arith.addf %580, %581 : vector<16x128xf32>
    %583 = arith.truncf %582 : vector<16x128xf32> to vector<16x128xbf16>
    %584 = arith.index_cast %c3_i32 : i32 to index
    %c0_168 = arith.constant 0 : index
    %c0_169 = arith.constant 0 : index
    %585 = vector.load %arg13[%584, %c0_168, %c0_169] : memref<4x128x512xbf16, #tpu.memory_space<vmem>>, vector<1x128x512xbf16>
    %586 = vector.shape_cast %585 : vector<1x128x512xbf16> to vector<128x512xbf16>
    %cst_170 = arith.constant dense<0.000000e+00> : vector<16x512xf32>
    %587 = tpu.matmul %583, %586, %cst_170 {dimension_numbers = #tpu.dot_dimension_numbers<[1], [0], [0], [1], [0, 0, 1, 1], [], []>} : vector<16x128xbf16>, vector<128x512xbf16>, vector<16x512xf32> -> vector<16x512xf32>
    %588 = arith.index_cast %c3_i32 : i32 to index
    %c0_171 = arith.constant 0 : index
    %c0_172 = arith.constant 0 : index
    %589 = vector.load %arg14[%588, %c0_171, %c0_172] : memref<4x1x512xf32, #tpu.memory_space<vmem>>, vector<1x1x512xf32>
    %590 = vector.shape_cast %589 : vector<1x1x512xf32> to vector<1x512xf32>
    %591 = vector.broadcast %590 : vector<1x512xf32> to vector<16x512xf32>
    %592 = arith.addf %587, %591 : vector<16x512xf32>
    %cst_173 = arith.constant 5.000000e-01 : f32
    %593 = vector.broadcast %cst_173 : f32 to vector<16x512xf32>
    %594 = arith.mulf %593, %592 : vector<16x512xf32>
    %cst_174 = arith.constant 0.707106769 : f32
    %595 = vector.broadcast %cst_174 : f32 to vector<16x512xf32>
    %596 = arith.mulf %592, %595 : vector<16x512xf32>
    %597 = math.erf %596 : vector<16x512xf32>
    %cst_175 = arith.constant 1.000000e+00 : f32
    %598 = vector.broadcast %cst_175 : f32 to vector<16x512xf32>
    %599 = arith.addf %598, %597 : vector<16x512xf32>
    %600 = arith.mulf %594, %599 : vector<16x512xf32>
    %601 = arith.truncf %600 : vector<16x512xf32> to vector<16x512xbf16>
    %602 = arith.index_cast %c3_i32 : i32 to index
    %c0_176 = arith.constant 0 : index
    %c0_177 = arith.constant 0 : index
    %603 = vector.load %arg15[%602, %c0_176, %c0_177] : memref<4x512x128xbf16, #tpu.memory_space<vmem>>, vector<1x512x128xbf16>
    %604 = vector.shape_cast %603 : vector<1x512x128xbf16> to vector<512x128xbf16>
    %cst_178 = arith.constant dense<0.000000e+00> : vector<16x128xf32>
    %605 = tpu.matmul %601, %604, %cst_178 {dimension_numbers = #tpu.dot_dimension_numbers<[1], [0], [0], [1], [0, 0, 1, 1], [], []>} : vector<16x512xbf16>, vector<512x128xbf16>, vector<16x128xf32> -> vector<16x128xf32>
    %606 = arith.index_cast %c3_i32 : i32 to index
    %c0_179 = arith.constant 0 : index
    %c0_180 = arith.constant 0 : index
    %607 = vector.load %arg16[%606, %c0_179, %c0_180] : memref<4x1x128xf32, #tpu.memory_space<vmem>>, vector<1x1x128xf32>
    %608 = vector.shape_cast %607 : vector<1x1x128xf32> to vector<1x128xf32>
    %609 = vector.broadcast %608 : vector<1x128xf32> to vector<16x128xf32>
    %610 = arith.addf %605, %609 : vector<16x128xf32>
    %611 = arith.addf %582, %610 : vector<16x128xf32>
    %612 = arith.index_cast %c3_i32 : i32 to index
    %c0_181 = arith.constant 0 : index
    %c0_182 = arith.constant 0 : index
    %613 = vector.load %arg11[%612, %c0_181, %c0_182] : memref<4x1x128xf32, #tpu.memory_space<vmem>>, vector<1x1x128xf32>
    %614 = vector.shape_cast %613 : vector<1x1x128xf32> to vector<1x128xf32>
    %615 = arith.index_cast %c3_i32 : i32 to index
    %c0_183 = arith.constant 0 : index
    %c0_184 = arith.constant 0 : index
    %616 = vector.load %arg12[%615, %c0_183, %c0_184] : memref<4x1x128xf32, #tpu.memory_space<vmem>>, vector<1x1x128xf32>
    %617 = vector.shape_cast %616 : vector<1x1x128xf32> to vector<1x128xf32>
    %cst_185 = arith.constant dense<0.000000e+00> : vector<16xf32>
    %618 = vector.multi_reduction <add>, %611, %cst_185 [1] : vector<16x128xf32> to vector<16xf32>
    %619 = vector.shape_cast %618 : vector<16xf32> to vector<16x1xf32>
    %cst_186 = arith.constant 1.280000e+02 : f32
    %620 = vector.broadcast %cst_186 : f32 to vector<16x1xf32>
    %621 = arith.divf %619, %620 : vector<16x1xf32>
    %622 = vector.broadcast %621 : vector<16x1xf32> to vector<16x128xf32>
    %623 = arith.subf %611, %622 : vector<16x128xf32>
    %624 = arith.mulf %623, %623 : vector<16x128xf32>
    %cst_187 = arith.constant dense<0.000000e+00> : vector<16xf32>
    %625 = vector.multi_reduction <add>, %624, %cst_187 [1] : vector<16x128xf32> to vector<16xf32>
    %626 = vector.shape_cast %625 : vector<16xf32> to vector<16x1xf32>
    %cst_188 = arith.constant 1.280000e+02 : f32
    %627 = vector.broadcast %cst_188 : f32 to vector<16x1xf32>
    %628 = arith.divf %626, %627 : vector<16x1xf32>
    %629 = vector.broadcast %621 : vector<16x1xf32> to vector<16x128xf32>
    %630 = arith.subf %611, %629 : vector<16x128xf32>
    %cst_189 = arith.constant 9.99999974E-6 : f32
    %631 = vector.broadcast %cst_189 : f32 to vector<16x1xf32>
    %632 = arith.addf %628, %631 : vector<16x1xf32>
    %633 = math.rsqrt %632 : vector<16x1xf32>
    %634 = vector.broadcast %633 : vector<16x1xf32> to vector<16x128xf32>
    %635 = arith.mulf %630, %634 : vector<16x128xf32>
    %636 = vector.broadcast %614 : vector<1x128xf32> to vector<16x128xf32>
    %637 = arith.mulf %635, %636 : vector<16x128xf32>
    %638 = vector.broadcast %617 : vector<1x128xf32> to vector<16x128xf32>
    %639 = arith.addf %637, %638 : vector<16x128xf32>
    %c4_i32 = arith.constant 4 : i32
    %640 = vector.shape_cast %639 : vector<16x128xf32> to vector<1x16x128xf32>
    %cst_190 = arith.constant dense<0.000000e+00> : vector<1x128xf32>
    %641 = vector.multi_reduction <add>, %640, %cst_190 [1] : vector<1x16x128xf32> to vector<1x128xf32>
    %642 = vector.shape_cast %641 : vector<1x128xf32> to vector<1x1x128xf32>
    %cst_191 = arith.constant 1.600000e+01 : f32
    %643 = vector.broadcast %cst_191 : f32 to vector<1x1x128xf32>
    %644 = arith.divf %642, %643 : vector<1x1x128xf32>
    %c0_192 = arith.constant 0 : index
    %c0_193 = arith.constant 0 : index
    %c0_194 = arith.constant 0 : index
    %645 = vector.load %arg17[%c0_192, %c0_193, %c0_194] : memref<1x1x128xf32, #tpu.memory_space<vmem>>, vector<1x1x128xf32>
    tpu.vector_store %arg17[%c0_192, %c0_193, %c0_194], %644 {strides = array<i32>} : memref<1x1x128xf32, #tpu.memory_space<vmem>>, vector<1x1x128xf32>,
    return
  }
  func.func @transform_0(%arg0: i32) -> (i32, i32, i32) {
    %c0_i32 = arith.constant 0 : i32
    %c0_i32_0 = arith.constant 0 : i32
    %c0_i32_1 = arith.constant 0 : i32
    return %arg0, %c0_i32, %c0_i32_0 : i32, i32, i32
  }
  func.func @transform_1(%arg0: i32) -> (i32, i32) {
    %c0_i32 = arith.constant 0 : i32
    %c0_i32_0 = arith.constant 0 : i32
    %c0_i32_1 = arith.constant 0 : i32
    return %c0_i32, %c0_i32_0 : i32, i32
  }
  func.func @transform_2(%arg0: i32) -> (i32, i32) {
    %c0_i32 = arith.constant 0 : i32
    %c0_i32_0 = arith.constant 0 : i32
    %c0_i32_1 = arith.constant 0 : i32
    return %c0_i32, %c0_i32_0 : i32, i32
  }
  func.func @transform_3(%arg0: i32) -> (i32, i32) {
    %c0_i32 = arith.constant 0 : i32
    %c0_i32_0 = arith.constant 0 : i32
    %c0_i32_1 = arith.constant 0 : i32
    return %c0_i32, %c0_i32_0 : i32, i32
  }
  func.func @transform_4(%arg0: i32) -> (i32, i32, i32) {
    %c0_i32 = arith.constant 0 : i32
    %c0_i32_0 = arith.constant 0 : i32
    %c0_i32_1 = arith.constant 0 : i32
    %c0_i32_2 = arith.constant 0 : i32
    return %c0_i32, %c0_i32_0, %c0_i32_1 : i32, i32, i32
  }
  func.func @transform_5(%arg0: i32) -> (i32, i32, i32) {
    %c0_i32 = arith.constant 0 : i32
    %c0_i32_0 = arith.constant 0 : i32
    %c0_i32_1 = arith.constant 0 : i32
    %c0_i32_2 = arith.constant 0 : i32
    return %c0_i32, %c0_i32_0, %c0_i32_1 : i32, i32, i32
  }
  func.func @transform_6(%arg0: i32) -> (i32, i32, i32) {
    %c0_i32 = arith.constant 0 : i32
    %c0_i32_0 = arith.constant 0 : i32
    %c0_i32_1 = arith.constant 0 : i32
    %c0_i32_2 = arith.constant 0 : i32
    return %c0_i32, %c0_i32_0, %c0_i32_1 : i32, i32, i32
  }
  func.func @transform_7(%arg0: i32) -> (i32, i32, i32) {
    %c0_i32 = arith.constant 0 : i32
    %c0_i32_0 = arith.constant 0 : i32
    %c0_i32_1 = arith.constant 0 : i32
    %c0_i32_2 = arith.constant 0 : i32
    return %c0_i32, %c0_i32_0, %c0_i32_1 : i32, i32, i32
  }
  func.func @transform_8(%arg0: i32) -> (i32, i32, i32) {
    %c0_i32 = arith.constant 0 : i32
    %c0_i32_0 = arith.constant 0 : i32
    %c0_i32_1 = arith.constant 0 : i32
    %c0_i32_2 = arith.constant 0 : i32
    return %c0_i32, %c0_i32_0, %c0_i32_1 : i32, i32, i32
  }
  func.func @transform_9(%arg0: i32) -> (i32, i32, i32) {
    %c0_i32 = arith.constant 0 : i32
    %c0_i32_0 = arith.constant 0 : i32
    %c0_i32_1 = arith.constant 0 : i32
    %c0_i32_2 = arith.constant 0 : i32
    return %c0_i32, %c0_i32_0, %c0_i32_1 : i32, i32, i32
  }
  func.func @transform_10(%arg0: i32) -> (i32, i32, i32) {
    %c0_i32 = arith.constant 0 : i32
    %c0_i32_0 = arith.constant 0 : i32
    %c0_i32_1 = arith.constant 0 : i32
    %c0_i32_2 = arith.constant 0 : i32
    return %c0_i32, %c0_i32_0, %c0_i32_1 : i32, i32, i32
  }
  func.func @transform_11(%arg0: i32) -> (i32, i32, i32) {
    %c0_i32 = arith.constant 0 : i32
    %c0_i32_0 = arith.constant 0 : i32
    %c0_i32_1 = arith.constant 0 : i32
    %c0_i32_2 = arith.constant 0 : i32
    return %c0_i32, %c0_i32_0, %c0_i32_1 : i32, i32, i32
  }
  func.func @transform_12(%arg0: i32) -> (i32, i32, i32) {
    %c0_i32 = arith.constant 0 : i32
    %c0_i32_0 = arith.constant 0 : i32
    %c0_i32_1 = arith.constant 0 : i32
    %c0_i32_2 = arith.constant 0 : i32
    return %c0_i32, %c0_i32_0, %c0_i32_1 : i32, i32, i32
  }
  func.func @transform_13(%arg0: i32) -> (i32, i32, i32) {
    %c0_i32 = arith.constant 0 : i32
    %c0_i32_0 = arith.constant 0 : i32
    %c0_i32_1 = arith.constant 0 : i32
    %c0_i32_2 = arith.constant 0 : i32
    return %c0_i32, %c0_i32_0, %c0_i32_1 : i32, i32, i32
  }
  func.func @transform_14(%arg0: i32) -> (i32, i32, i32) {
    %c0_i32 = arith.constant 0 : i32
    %c0_i32_0 = arith.constant 0 : i32
    %c0_i32_1 = arith.constant 0 : i32
    %c0_i32_2 = arith.constant 0 : i32
    return %c0_i32, %c0_i32_0, %c0_i32_1 : i32, i32, i32
  }
  func.func @transform_15(%arg0: i32) -> (i32, i32, i32) {
    %c0_i32 = arith.constant 0 : i32
    %c0_i32_0 = arith.constant 0 : i32
    %c0_i32_1 = arith.constant 0 : i32
    %c0_i32_2 = arith.constant 0 : i32
    return %c0_i32, %c0_i32_0, %c0_i32_1 : i32, i32, i32
  }
  func.func @transform_16(%arg0: i32) -> (i32, i32, i32) {
    %c0_i32 = arith.constant 0 : i32
    %c0_i32_0 = arith.constant 0 : i32
    %c0_i32_1 = arith.constant 0 : i32
    return %arg0, %c0_i32, %c0_i32_0 : i32, i32, i32
  }
}

</mosaic_0001>

<bundles_post_ra>
// kernel: tpu_custom_call.1
= control target key start
LH: loop header
LB: loop body
LE: loop exit
PB: predicated region body
PF: predicated region fallthrough
CT: control target
= control target key end

     0   :  { %s11186_s0 = inlined_call_operand.hbm [shape: f32[2,16,106], index: 0, kind: input, shape index: {}]   ;;  %s11187_s1 = inlined_call_operand.hbm [shape: f32[2,106], index: 1, kind: input, shape index: {}]   ;;  %s11188_s2 = inlined_call_operand.vmem [shape: f32[1,128], index: 2, kind: input, shape index: {}]   ;;  %s11189_s3 = inlined_call_operand.hbm [shape: bf16[128,128], index: 3, kind: input, shape index: {}]   ;;  %s11190_s4 = inlined_call_operand.hbm [shape: bf16[4,128,384], index: 4, kind: input, shape index: {}]   ;;  %s11191_s5 = inlined_call_operand.hbm [shape: f32[4,1,384], index: 5, kind: input, shape index: {}]   ;;  %s11192_s6 = inlined_call_operand.hbm [shape: bf16[4,128,128], index: 6, kind: input, shape index: {}]   ;;  %s11193_s7 = inlined_call_operand.vmem [shape: f32[4,1,128], index: 7, kind: input, shape index: {}]   ;;  %s11194_s8 = inlined_call_operand.hbm [shape: f32[4,1,128], index: 8, kind: input, shape index: {}]   ;;  %s11195_s9 = inlined_call_operand.hbm [shape: f32[4,1,128], index: 9, kind: input, shape index: {}]   ;;  %s11196_s10 = inlined_call_operand.hbm [shape: f32[4,1,128], index: 10, kind: input, shape index: {}]   ;;  %s11197_s11 = inlined_call_operand.hbm [shape: f32[4,1,128], index: 11, kind: input, shape index: {}]   ;;  %s11198_s12 = inlined_call_operand.hbm [shape: bf16[4,128,512], index: 12, kind: input, shape index: {}]   ;;  %s11199_s13 = inlined_call_operand.vmem [shape: f32[4,1,512], index: 13, kind: input, shape index: {}]   ;;  %s11200_s14 = inlined_call_operand.hbm [shape: bf16[4,512,128], index: 14, kind: input, shape index: {}]   ;;  %s11201_s15 = inlined_call_operand.vmem [shape: f32[4,1,128], index: 15, kind: input, shape index: {}]   ;;  %s11202_s16 = inlined_call_operand.hbm [shape: f32[2,1,128], index: 16, kind: output, shape index: {}]  }
   0x1   :  { %11218 = sst [smem:[#allocation31_spill]] %s11186_s0 }
   0x2   :  { %11219 = sst [smem:[#allocation32_spill]] %s11187_s1 }
   0x3   :  { %11220 = sst [smem:[#allocation33_spill]] %s11189_s3 }
   0x4   :  { %11221 = sst [smem:[#allocation34_spill]] %s11190_s4 }
   0x5   :  { %11222 = sst [smem:[#allocation35_spill]] %s11191_s5 }
   0x6   :  { %11223 = sst [smem:[#allocation36_spill]] %s11192_s6 }
   0x7   :  { %11224 = sst [smem:[#allocation37_spill]] %s11194_s8 }
   0x8   :  { %11225 = sst [smem:[#allocation38_spill]] %s11195_s9 }
   0x9   :  { %11226 = sst [smem:[#allocation39_spill]] %s11196_s10 }
   0xa   :  { %11227 = sst [smem:[#allocation40_spill]] %s11201_s15 }
   0xb   :  { %11228 = sst [smem:[#allocation41_spill]] %s11202_s16 }
   0xc   :  { %21 = vsyncpa [#allocation3], 0 }
   0xd   :  { %23 = vsyncpa [#allocation3 + $0x1], 0 }
   0xe   :  { %24 = vsyncpa [#allocation6], 0 }
   0xf   :  { %25 = vsyncpa [#allocation9], 0 }
  0x10   :  { %26 = vsyncpa [#allocation12], 0 }
  0x11   :  { %27 = vsyncpa [#allocation15], 0 }
  0x12   :  { %28 = vsyncpa [#allocation18], 0 }
  0x13   :  { %29 = vsyncpa [#allocation21], 0 }
  0x14   :  { %30 = vsyncpa [#allocation4], 0 }
  0x15   :  { %32 = vsyncpa [#allocation4 + $0x1], 0  ;;  %s10268_s21 = smov 0   ;;  %s10270_s22 = smov 0  }
  0x16   :  { %s10272_s23 = smov 0   ;;  %s10274_s24 = smov 0  }
  0x17 LB: > { %s10153_s25 = smov [#allocation5]   ;;  %s10289_s27 = sadd.s32 4294967295, %s10151_s24   ;;  %s10151_s24 = sphi %s10274_s24, %s11272_s24   ;;  %s10147_s23 = sphi %s10272_s23, %s11271_s23   ;;  %s10143_s22 = sphi %s10270_s22, %s11270_s22   ;;  %s10139_s21 = sphi %s10268_s21, %s11269_s21  }
  0x18   : > { %s423_s26 = sshll.u32 %s10153_s25, 4  ;;  %p7676_p0 = scmp.ge.s32.totalorder %s10151_s24, 1  ;;  %s424_s26 = int_to_ptr.vmem [resolvable:$true] %s423_s26 }
  0x19   : > { %p11214_p1 = scmp.eq.s32.totalorder %s10289_s27, 0  ;;  %p410_p2 = scmp.lt.s32.totalorder %s10151_s24, 3 }
  0x1a   : > { %s10154_s29 = smov [#allocation8]   ;;  %s10155_s17 = smov [#allocation11]  }
  0x1b   : > { %p10294_p3 = pnand %p7676_p0, %p410_p2  ;;  %s449_s30 = sshll.u32 %s10154_s29, 4  ;;  %s10301_s30 = int_to_ptr.vmem [resolvable:$true] %s449_s30 }
  0x1c   : > { %s475_s18 = sshll.u32 %s10155_s17, 4  ;;  %s9760_s20 = scalar_lea.vmem %s424_s26, 32  ;;  %s476_s18 = int_to_ptr.vmem [resolvable:$true] %s475_s18 }
  0x1d   : > { %s11229_s28 = scalar_select %p10294_p3, 1, 0 }
  0x1e   : > { %p8911_p5 = pneg %p10294_p3  ;;  %p9761_p8 = scmp.ne.s32.totalorder %s424_s26, %s9760_s20 }
  0x1f   : > { %p9768_p11 = scmp.lt.s32.totalorder %s424_s26, %s424_s26  ;;  %p9769_p12 = scmp.lt.s32.totalorder %s9760_s20, %s9760_s20 }
  0x20   : > { %p10305_p6 = pnand %p8911_p5, %p11214_p1 }
  0x21   : > { %p9770_p13 = por %p9769_p12, %p9768_p11 }
  0x22   : > { %p10311_p7 = pneg %p10305_p6 }
  0x24   : > { %p9763_p9 = pnand %p9761_p8, %p10311_p7 }
  0x26   : > { %p9764_p10 = pneg %p9763_p9 }
  0x28   : > { %p9771_p0 = pnand %p9770_p13, %p9764_p10 }
  0x2a   : > { %9774 = shalt.err (!%p9771_p0)
}
  0x2b   : > { %s11232_s1 = sld [smem:[#allocation32_spill]]  ;;  %s9786_s17 = scalar_lea.vmem %s10301_s30, 12288 }
  0x2c   : > { %p9787_p2 = scmp.ne.s32.totalorder %s10301_s30, %s9786_s17  ;;  %p9794_p9 = scmp.lt.s32.totalorder %s10301_s30, %s10301_s30 }
  0x2d   : > { %p9795_p11 = scmp.lt.s32.totalorder %s9786_s17, %s9786_s17 }
  0x2e   : > { %p9789_p5 = pnand %p9787_p2, %p10311_p7 }
  0x2f   : > { %p9796_p10 = por %p9795_p11, %p9794_p9 }
  0x30   : > { %p9790_p8 = pneg %p9789_p5 }
  0x31   : > { %8914 = dma.hbm_to_vmem [thread:$0]  (!%p10305_p6), %s11232_s1, 32, %s424_s26, [#allocation6]  }
  0x32   : > { %p9797_p12 = pnand %p9796_p10, %p9790_p8 }
  0x34   : > { %9800 = shalt.err (!%p9797_p12)
}
  0x35   : > { %s10156_s20 = smov 192   ;;  %s10157_s25 = smov 12  }
  0x36   : > { %s11233_s4 = sld [smem:[#allocation34_spill]]  ;;  %s9812_s26 = scalar_lea.vmem %s476_s18, 4096 }
  0x37   : > { %p9813_p13 = scmp.ne.s32.totalorder %s476_s18, %s9812_s26  ;;  %p9820_p5 = scmp.lt.s32.totalorder %s476_s18, %s476_s18 }
  0x38   : > { %p9821_p9 = scmp.lt.s32.totalorder %s9812_s26, %s9812_s26 }
  0x39   : > { %p9815_p0 = pnand %p9813_p13, %p10311_p7 }
  0x3a   : > { %p9822_p8 = por %p9821_p9, %p9820_p5 }
  0x3b   : > { %p9816_p2 = pneg %p9815_p0 }
  0x3c   : > { %8920 = dma.hbm_to_vmem [thread:$0]  (!%p10305_p6), %s11233_s4, 12288, %s10301_s30, [#allocation9], %s10156_s20, %s10156_s20, %s10157_s25  }
  0x3d   : > { %p9823_p11 = pnand %p9822_p8, %p9816_p2 }
  0x3f   : > { %9826 = shalt.err (!%p9823_p11)
}
  0x40   : > { %s11206_s17 = smov 64   ;;  %s11208_s1 = smov 4  }
  0x41   : > { %s11234_s6 = sld [smem:[#allocation36_spill]]  ;;  %s10160_s20 = smov [#allocation14]  }
  0x42   : > { %s504_s25 = sshll.u32 %s10160_s20, 4  ;;  %s10161_s29 = smov [#allocation17]   ;;  %s505_s25 = int_to_ptr.vmem [resolvable:$true] %s504_s25 }
  0x43   : > { %s530_s26 = sshll.u32 %s10161_s29, 4  ;;  %s9838_s4 = scalar_lea.vmem %s505_s25, 64  ;;  %s531_s26 = int_to_ptr.vmem [resolvable:$true] %s530_s26 }
  0x44   : > { %p9839_p10 = scmp.ne.s32.totalorder %s505_s25, %s9838_s4  ;;  %p9846_p0 = scmp.lt.s32.totalorder %s505_s25, %s505_s25 }
  0x45   : > { %p9847_p2 = scmp.lt.s32.totalorder %s9838_s4, %s9838_s4 }
  0x46   : > { %p9841_p12 = pnand %p9839_p10, %p10311_p7 }
  0x47   : > { %8926 = dma.hbm_to_vmem [thread:$0]  (!%p10305_p6), %s11234_s6, 4096, %s476_s18, [#allocation12], %s11206_s17, %s11206_s17, %s11208_s1  }
  0x48   : > { %p9842_p13 = pneg %p9841_p12  ;;  %p9848_p5 = por %p9847_p2, %p9846_p0 }
  0x4a   : > { %p9849_p9 = pnand %p9848_p5, %p9842_p13 }
  0x4c   : > { %9852 = shalt.err (!%p9849_p9)
}
  0x4d   : > { %s11210_s15 = smov 16   ;;  %s11212_s16 = smov 1  }
  0x4e   : > { %s11235_s9 = sld [smem:[#allocation38_spill]]  ;;  %s9864_s20 = scalar_lea.vmem %s531_s26, 64 }
  0x4f   : > { %p9865_p8 = scmp.ne.s32.totalorder %s531_s26, %s9864_s20  ;;  %p9872_p12 = scmp.lt.s32.totalorder %s531_s26, %s531_s26 }
  0x50   : > { %p9873_p13 = scmp.lt.s32.totalorder %s9864_s20, %s9864_s20 }
  0x51   : > { %p9867_p11 = pnand %p9865_p8, %p10311_p7 }
  0x52   : > { %p9874_p0 = por %p9873_p13, %p9872_p12 }
  0x53   : > { %p9868_p10 = pneg %p9867_p11 }
  0x54   : > { %8932 = dma.hbm_to_vmem [thread:$0]  (!%p10305_p6), %s11235_s9, 64, %s505_s25, [#allocation15], %s11210_s15, %s11210_s15, %s11212_s16  }
  0x55   : > { %p9875_p2 = pnand %p9874_p0, %p9868_p10 }
  0x57   : > { %9878 = shalt.err (!%p9875_p2)
}
  0x58   : > { %8938 = dma.hbm_to_vmem [thread:$0]  (!%p10305_p6), %s11197_s11, 64, %s531_s26, [#allocation18], %s11210_s15, %s11210_s15, %s11212_s16  }
  0x59   : > { %s10164_s25 = smov [#allocation7]   ;;  %s10165_s30 = smov [#allocation10]  }
  0x5a   : > { %s436_s18 = sshll.u32 %s10164_s25, 4  ;;  %s462_s17 = sshll.u32 %s10165_s30, 4  ;;  %s437_s18 = int_to_ptr.vmem [resolvable:$true] %s436_s18  ;;  %s463_s17 = int_to_ptr.vmem [resolvable:$true] %s462_s17 }
  0x5b   : > { %s9890_s1 = scalar_lea.vmem %s437_s18, 1024  ;;  %p9898_p11 = scmp.lt.s32.totalorder %s437_s18, %s437_s18 }
  0x5c   : > { %p9891_p5 = scmp.ne.s32.totalorder %s437_s18, %s9890_s1  ;;  %p9899_p10 = scmp.lt.s32.totalorder %s9890_s1, %s9890_s1 }
  0x5e   : > { %p9893_p9 = pnand %p9891_p5, %p10311_p7  ;;  %p9900_p12 = por %p9899_p10, %p9898_p11 }
  0x60   : > { %p9894_p8 = pneg %p9893_p9 }
  0x62   : > { %p9901_p13 = pnand %p9900_p12, %p9894_p8 }
  0x64   : > { %9904 = shalt.err (!%p9901_p13)
}
  0x65   : > { %s11236_s20 = smov 4   ;;  %s11237_s4 = smov 64  }
  0x66   : > { %s11238_s3 = sld [smem:[#allocation33_spill]]  ;;  %s9916_s25 = scalar_lea.vmem %s463_s17, 192 }
  0x67   : > { %p9917_p0 = scmp.ne.s32.totalorder %s463_s17, %s9916_s25  ;;  %p9924_p9 = scmp.lt.s32.totalorder %s463_s17, %s463_s17 }
  0x68   : > { %p9925_p11 = scmp.lt.s32.totalorder %s9916_s25, %s9916_s25 }
  0x69   : > { %p9919_p2 = pnand %p9917_p0, %p10311_p7 }
  0x6a   : > { %p9926_p8 = por %p9925_p11, %p9924_p9 }
  0x6b   : > { %p9920_p5 = pneg %p9919_p2 }
  0x6c   : > { %8917 = dma.hbm_to_vmem [thread:$0]  (!%p10305_p6), %s11238_s3, 1024, %s437_s18, [#allocation6], %s11237_s4, %s11237_s4, %s11236_s20  }
  0x6d   : > { %p9927_p10 = pnand %p9926_p8, %p9920_p5 }
  0x6f   : > { %9930 = shalt.err (!%p9927_p10)
}
  0x70   : > { %s10166_s1 = smov 48   ;;  %s10167_s30 = smov 3  }
  0x71   : > { %s11239_s5 = sld [smem:[#allocation35_spill]]  ;;  %s10168_s18 = smov [#allocation13]  }
  0x72   : > { %s491_s29 = sshll.u32 %s10168_s18, 4  ;;  %s10169_s16 = smov [#allocation16]   ;;  %s492_s29 = int_to_ptr.vmem [resolvable:$true] %s491_s29 }
  0x73   : > { %s517_s3 = sshll.u32 %s10169_s16, 4  ;;  %s9942_s6 = scalar_lea.vmem %s492_s29, 64  ;;  %s518_s3 = int_to_ptr.vmem [resolvable:$true] %s517_s3 }
  0x74   : > { %p9943_p12 = scmp.ne.s32.totalorder %s492_s29, %s9942_s6  ;;  %p9950_p2 = scmp.lt.s32.totalorder %s492_s29, %s492_s29 }
  0x75   : > { %p9951_p5 = scmp.lt.s32.totalorder %s9942_s6, %s9942_s6 }
  0x76   : > { %p9945_p13 = pnand %p9943_p12, %p10311_p7 }
  0x77   : > { %8923 = dma.hbm_to_vmem [thread:$0]  (!%p10305_p6), %s11239_s5, 192, %s463_s17, [#allocation9], %s10166_s1, %s10166_s1, %s10167_s30  }
  0x78   : > { %p9946_p0 = pneg %p9945_p13  ;;  %p9952_p9 = por %p9951_p5, %p9950_p2 }
  0x7a   : > { %p9953_p11 = pnand %p9952_p9, %p9946_p0 }
  0x7c   : > { %9956 = shalt.err (!%p9953_p11)
}
  0x7d   : > { %s11240_s25 = smov 1   ;;  %s11241_s15 = smov 16  }
  0x7e   : > { %s11242_s8 = sld [smem:[#allocation37_spill]]  ;;  %s9968_s16 = scalar_lea.vmem %s518_s3, 64 }
  0x7f   : > { %p9969_p8 = scmp.ne.s32.totalorder %s518_s3, %s9968_s16  ;;  %p9976_p13 = scmp.lt.s32.totalorder %s518_s3, %s518_s3 }
  0x80   : > { %p9977_p2 = scmp.lt.s32.totalorder %s9968_s16, %s9968_s16 }
  0x81   : > { %p9971_p10 = pnand %p9969_p8, %p10311_p7 }
  0x82   : > { %p9978_p0 = por %p9977_p2, %p9976_p13 }
  0x83   : > { %p9972_p12 = pneg %p9971_p10 }
  0x84   : > { %8929 = dma.hbm_to_vmem [thread:$0]  (!%p10305_p6), %s11242_s8, 64, %s492_s29, [#allocation12], %s11241_s15, %s11241_s15, %s11240_s25  }
  0x85   : > { %p9979_p5 = pnand %p9978_p0, %p9972_p12 }
  0x87   : > { %9982 = shalt.err (!%p9979_p5)
}
  0x88   : > { %s11243_s10 = sld [smem:[#allocation39_spill]]  ;;  %s10170_s26 = smov [#allocation19]  }
  0x89   : > { %s543_s18 = sshll.u32 %s10170_s26, 4  ;;  %s544_s18 = int_to_ptr.vmem [resolvable:$true] %s543_s18 }
  0x8a   : > { %s9994_s29 = scalar_lea.vmem %s544_s18, 16384  ;;  %p10002_p10 = scmp.lt.s32.totalorder %s544_s18, %s544_s18 }
  0x8b   : > { %p9995_p9 = scmp.ne.s32.totalorder %s544_s18, %s9994_s29  ;;  %p10003_p12 = scmp.lt.s32.totalorder %s9994_s29, %s9994_s29 }
  0x8d   : > { %p9997_p11 = pnand %p9995_p9, %p10311_p7  ;;  %p10004_p13 = por %p10003_p12, %p10002_p10 }
  0x8e   : > { %8935 = dma.hbm_to_vmem [thread:$0]  (!%p10305_p6), %s11243_s10, 64, %s518_s3, [#allocation15], %s11241_s15, %s11241_s15, %s11240_s25  }
  0x8f   : > { %p9998_p8 = pneg %p9997_p11 }
  0x91   : > { %p10005_p2 = pnand %p10004_p13, %p9998_p8 }
  0x93   : > { %10008 = shalt.err (!%p10005_p2)
}
  0x94   : > { %s10171_s17 = smov 256   ;;  %s10172_s3 = smov [#allocation20]  }
  0x95   : > { %8941 = dma.hbm_to_vmem [thread:$0]  (!%p10305_p6), %s11198_s12, 16384, %s544_s18, [#allocation18], %s10171_s17, %s10171_s17, %s11241_s15  }
  0x96   : > { %s559_s25 = sshll.u32 %s10172_s3, 4  ;;  %s560_s25 = int_to_ptr.vmem [resolvable:$true] %s559_s25 }
  0x97   : > { %s10020_s6 = scalar_lea.vmem %s560_s25, 16384  ;;  %p10028_p11 = scmp.lt.s32.totalorder %s560_s25, %s560_s25 }
  0x98   : > { %p10021_p0 = scmp.ne.s32.totalorder %s560_s25, %s10020_s6  ;;  %p10029_p8 = scmp.lt.s32.totalorder %s10020_s6, %s10020_s6 }
  0x9a   : > { %p10023_p5 = pnand %p10021_p0, %p10311_p7  ;;  %p10030_p10 = por %p10029_p8, %p10028_p11 }
  0x9c   : > { %p10024_p9 = pneg %p10023_p5 }
  0x9e   : > { %p10031_p12 = pnand %p10030_p10, %p10024_p9 }
  0xa0   : > { %10034 = shalt.err (!%p10031_p12)
}
  0xa1   : > { %8944 = dma.hbm_to_vmem [thread:$0]  (!%p10305_p6), %s11200_s14, 16384, %s560_s25, [#allocation21], %s11237_s4, %s11237_s4, %s11236_s20  }
  0xa2   : > { %s7675_s0 = sadd.s32 4294967294, %s10151_s24   ;;  %s10421_s19 = sadd.s32 1, %s10151_s24  }
  0xa3   : > { %s42_s26 = ssub.s32 %s10151_s24, %s10421_s19  ;;  %s45_s18 = sadd.s32 1, %s10147_s23 }
  0xa4   : > { %p43_p7 = scmp.eq.s32.totalorder %s42_s26, 0  ;;  %p52_p13 = scmp.ne.s32.totalorder %s10147_s23, %s10143_s22 }
  0xa5   : > { %p53_p2 = scmp.eq.s32.totalorder %s10151_s24, 0  ;;  %p58_p0 = scmp.ne.s32.totalorder %s10143_s22, %s10139_s21 }
  0xa6   : > { %s10432_s29 = scalar_select %p43_p7, %s10147_s23, %s45_s18  }
  0xa7   : > { %p10434_p5 = por %p53_p2, %p52_p13  ;;  %p10440_p6 = por %p11214_p1, %p58_p0 }
  0xa8   : > { %p397_p9 = scmp.eq.s32.totalorder %s10289_s27, 1  ;;  %p403_p11 = scmp.eq.s32.totalorder %s7675_s0, 1 }
  0xa9   : > { %s11245_s20 = scalar_select %p10440_p6, 1, 0 }
  0xaa   : > { %p8964_p8 = scmp.lt.s32.totalorder %s10151_s24, 2  ;;  %s576_s4 = sand.u32 1, %s10147_s23  }
  0xab   : > { %p10447_p10 = por %p397_p9, %p52_p13  ;;  %p10451_p12 = por %p403_p11, %p58_p0 }
  0xac   : > { %s7689_s3 = sshll.u32 %s576_s4, 4  ;;  %s8169_s25 = sshll.u32 %s10151_s24, 8 }
  0xad   : > { %s11246_s1 = scalar_select %p10447_p10, 1, 0 }
  0xae   : > { %s11247_s16 = scalar_select %p10451_p12, 1, 0 }
  0xaf   : > { %s11248_s15 = sld [smem:[#allocation31_spill]]  ;;  %s580_s0 = scalar_lea.vmem [#allocation2], %s7689_s3 }
  0xb0   : > { %s587_s18 = sshll.u32 %s580_s0, 4  ;;  %p10465_p7 = pnand %p8964_p8, %p10434_p5  ;;  %s10461_s18 = int_to_ptr.vmem [resolvable:$true] %s587_s18 }
  0xb1   : > { %s10469_s8 = scalar_lea.sflag [#allocation3], %s576_s4 }
  0xb2   : > { %p10037_p2 = pneg %p10465_p7 }
  0xb5   : > { %s10459_s26 = scalar_lea.hbm %s11248_s15, %s8169_s25  ;;  %s10040_s3 = scalar_lea.hbm %s11248_s15, 512 }
  0xb6   : > { %s10035_s9 = scalar_lea.hbm %s10459_s26, 256  ;;  %p10041_p5 = scmp.lt.s32.totalorder %s10459_s26, %s11248_s15 }
  0xb7   : > { %p10036_p13 = scmp.ne.s32.totalorder %s10459_s26, %s10035_s9  ;;  %p10042_p11 = scmp.lt.s32.totalorder %s10040_s3, %s10035_s9 }
  0xb9   : > { %p10038_p0 = pnand %p10037_p2, %p10036_p13  ;;  %p10043_p8 = por %p10042_p11, %p10041_p5 }
  0xbb   : > { %p10039_p9 = pneg %p10038_p0 }
  0xbd   : > { %p10044_p4 = pnand %p10043_p8, %p10039_p9 }
  0xbf   : > { %10047 = shalt.err (!%p10044_p4)
}
  0xc0   : > { %s10048_s17 = scalar_lea.vmem %s10461_s18, 256  ;;  %s10173_s4 = smov [#allocation2]  }
  0xc1   : > { %p10049_p1 = scmp.ne.s32.totalorder %s10461_s18, %s10048_s17  ;;  %s10053_s10 = sshll.u32 %s10173_s4, 4  ;;  %s10054_s10 = int_to_ptr.vmem [resolvable:$false] %s10053_s10 }
  0xc2   : > { %s10055_s25 = scalar_lea.vmem %s10054_s10, 512  ;;  %p10056_p0 = scmp.lt.s32.totalorder %s10461_s18, %s10054_s10 }
  0xc3   : > { %p10051_p12 = pnand %p10049_p1, %p10037_p2  ;;  %p10057_p10 = scmp.lt.s32.totalorder %s10055_s25, %s10048_s17 }
  0xc5   : > { %p10052_p13 = pneg %p10051_p12  ;;  %p10058_p6 = por %p10057_p10, %p10056_p0 }
  0xc7   : > { %p10059_p3 = pnand %p10058_p6, %p10052_p13 }
  0xc9   : > { %10062 = shalt.err (!%p10059_p3)
}
  0xca   : > { %s10174_s9 = smov 128   ;;  %s10175_s6 = smov 8  }
  0xcb   : > { %8948 = dma.hbm_to_vmem [thread:$0]  (!%p10465_p7), %s10459_s26, 256, %s10461_s18, %s10469_s8, %s10174_s9, %s10174_s9, %s10175_s6  }
  0xcc   : > { %p11250_p1 = scmp.ne.s32.totalorder %s11229_s28, 0 }
  0xcd   : > { %s10493_s3 = sand.u32 (!%p11250_p1), 1, %s10143_s22   ;;  %p11251_p3 = scmp.ne.s32.totalorder (!%p11250_p1), %s11245_s20, 0 }
  0xce   : > { %599 = sbr.rel (%p11250_p1) target bundleno = 10156 (0x27ac), region = 84  ;;  %s7693_s10 = sshll.u32 (!%p11250_p1), %s10493_s3, 4 }
  0xcf   : > { %s602_s30 = scalar_lea.sflag (!%p11250_p1), [#allocation3], %s10493_s3  ;;  %s10497_s0 = scalar_lea.vmem (!%p11250_p1), [#allocation2], %s7693_s10 }
  0xd3   : > { %10106 = dma.done.wait (%p11251_p3), %s602_s30, 256  }
  0xd4   : > { %10108 = vsyncadd (%p11251_p3), %s602_s30, 4294967040  ;;  %p11252_p4 = scmp.eq.s32.totalorder %s10289_s27, 0 }
  0xd6   : > { %10110 = dma.done.wait (%p11252_p4), [#allocation6], 1056   ;;  %p11253_p6 = pmov %p11252_p4 }
  0xd7   : > { %p11254_p10 = pmov %p11252_p4 }
  0xd8   : > { %10112 = vsyncadd (%p11253_p6), [#allocation6], 4294966240 }
  0xd9   : > { %10114 = dma.done.wait (%p11254_p10), [#allocation9], 12480   ;;  %p11255_p12 = pmov %p11252_p4 }
  0xda   : > { %p11256_p7 = pmov %p11252_p4 }
  0xdb   : > { %10116 = vsyncadd (%p11255_p12), [#allocation9], 4294954816 }
  0xdc   : > { %10118 = dma.done.wait (%p11256_p7), [#allocation12], 4160   ;;  %p11257_p2 = pmov %p11252_p4 }
  0xde   : > { %10120 = vsyncadd (%p11257_p2), [#allocation12], 4294963136  ;;  %p11258_p9 = pmov %p11257_p2 }
  0xdf   : > { %p11259_p5 = pmov %p11257_p2 }
  0xe0   : > { %10122 = dma.done.wait (%p11258_p9), [#allocation15], 128  }
  0xe1   : > { %10124 = vsyncadd (%p11259_p5), [#allocation15], 4294967168  ;;  %p11260_p11 = pmov %p11257_p2 }
  0xe2   : > { %p11261_p8 = pmov %p11257_p2 }
  0xe3   : > { %10126 = dma.done.wait (%p11260_p11), [#allocation18], 16448  }
  0xe4   : > { %10128 = vsyncadd (%p11261_p8), [#allocation18], 4294950848  ;;  %p11262_p13 = pmov %p11257_p2 }
  0xe5   : > { %p11263_p0 = pmov %p11257_p2 }
  0xe6   : > { %10130 = dma.done.wait (%p11262_p13), [#allocation21], 16384  }
  0xe7   : > { %10132 = vsyncadd (%p11263_p0), [#allocation21], 4294950912  ;;  %v10176_v0 = vmov 0.0   ;;  %vm10177_vm0 = vmmov 0   ;;  %v9037_v1 = vld [vmem:[#allocation7 + $0x38] sm:$0xff]   ;;  %v9038_v2 = vld [vmem:[#allocation7 + $0x30] sm:$0xff]   ;;  %v867_v51 = vlaneseq }
  0xe8   : > { %8491 = vmatprep.subr.bf16.mxu0 %v10176_v0  ;;  %8507 = vmatprep.mubr.msk.bf16.mxu0 %vm10177_vm0, %v10176_v0  ;;  %v9039_v3 = vld [vmem:[#allocation7 + $0x28] sm:$0xff]   ;;  %v9040_v4 = vld [vmem:[#allocation7 + $0x20] sm:$0xff]   ;;  %v9041_v7 = vld [vmem:[#allocation7 + $0x18] sm:$0xff]   ;;  %vm715_vm1 = vcmask 867328   ;;  %v10178_v42 = vmov 0   ;;  %vm1121_vm2 = vcmask 261120  }
  0xe9   : > { %8492 = vmatpush3.bf16.msra.mxu0 %v9037_v1  ;;  %v9045_v5 = vld [vmem:[#allocation8 + $0xac] ss:$12 sps:$4 sm:$0xff]   ;;  %v9047_v6 = vld [vmem:[#allocation8 + $0xa8] ss:$12 sps:$4 sm:$0xff]   ;;  %v9051_v9 = vld [vmem:[#allocation8 + $0x90] ss:$12 sps:$4 sm:$0xff]   ;;  %1042 = vmatprep.mubr.bf16.mxu1 %v10178_v42 }
  0xea   : > { %8493 = vmatprep.subr.bf16.mxu0 %v10176_v0  ;;  %1010 = vmatprep.subr.bf16.mxu1 %v9045_v5  ;;  %v9049_v8 = vld [vmem:[#allocation8 + $0x94] ss:$12 sps:$4 sm:$0xff]   ;;  %v9053_v10 = vld [vmem:[#allocation8 + $0x7c] ss:$12 sps:$4 sm:$0xff]   ;;  %v9055_v15 = vld [vmem:[#allocation8 + $0x78] ss:$12 sps:$4 sm:$0xff]  }
  0xeb   : > { %1011 = vmatpush1.bf16.msra.mxu1 %v9047_v6  ;;  %v9042_v11 = vld [vmem:[#allocation7 + $0x10] sm:$0xff]   ;;  %v7705_v14 = vld [vmem:[#allocation5] ss:$0 sm:$0xff]  ;;  %v9043_v17 = vld [vmem:[#allocation7 + $0x8] sm:$0xff]   ;;  %v10565_v52 = vshrl.u32 %v867_v51, 7  ;;  %s10179_s28 = smov 64  }
  0xec   : > { %1012 = vmatprep.subr.bf16.mxu1 %v9049_v8  ;;  %v698_v12 = vld [vmem:[%s10497_s0] sm:$0xff]  ;;  %v699_v13 = vld [vmem:[%s10497_s0 + $0x8] sm:$0xff]  ;;  %s10180_s20 = smov 96   ;;  %s10181_s26 = smov 32   ;;  %vm1310_vm3 = vcmask 130048   ;;  %vm1595_vm4 = vcmask 523264  }
  0xed   : > { %8494 = vmatpush3.bf16.msra.mxu0 %v9038_v2  ;;  %v9057_v16 = vld [vmem:[#allocation8 + $0x64] ss:$12 sps:$4 sm:$0xff]   ;;  %v7706_v18 = vld [vmem:[#allocation5 + $0x1] ss:$0 sm:$0xff]  ;;  %v705_v19 = vsub.f32 %v698_v12, %v7705_v14  ;;  %v706_v20 = vsub.f32 %v699_v13, %v7705_v14  ;;  %v9059_v21 = vld [vmem:[#allocation8 + $0x60] ss:$12 sps:$4 sm:$0xff]  }
  0xee   : > { %8495 = vmatprep.subr.bf16.mxu0 %v10176_v0  ;;  %v9061_v22 = vld [vmem:[#allocation8 + $0x4c] ss:$12 sps:$4 sm:$0xff]   ;;  %v9063_v23 = vld [vmem:[#allocation8 + $0x48] ss:$12 sps:$4 sm:$0xff]   ;;  %v9044_v24 = vld [vmem:[#allocation7] sm:$0xff]   ;;  %v10568_v53 = vsub.s32 2, %v10565_v52 }
  0xef   : > { %1013 = vmatpush1.bf16.msra.mxu1 %v9051_v9  ;;  %v9065_v25 = vld [vmem:[#allocation8 + $0x34] ss:$12 sps:$4 sm:$0xff]   ;;  %v712_v26 = vmul.f32 %v7706_v18, %v705_v19  ;;  %v713_v27 = vmul.f32 %v7706_v18, %v706_v20  ;;  %v9067_v28 = vld [vmem:[#allocation8 + $0x30] ss:$12 sps:$4 sm:$0xff]   ;;  %v9052_v31 = vld [vmem:[#allocation8 + $0x98] ss:$12 sps:$4 sm:$0xff]  }
  0xf0   : > { %1014 = vmatprep.subr.bf16.mxu1 %v9053_v10  ;;  %v9048_v29 = vld [vmem:[#allocation8 + $0xb0] ss:$12 sps:$4 sm:$0xff]   ;;  %v9056_v32 = vld [vmem:[#allocation8 + $0x80] ss:$12 sps:$4 sm:$0xff]   ;;  %v9060_v33 = vld [vmem:[#allocation8 + $0x68] ss:$12 sps:$4 sm:$0xff]  }
  0xf1   : > { %8496 = vmatpush3.bf16.msra.mxu0 %v9039_v3  ;;  %v714_v30 = vpack.c.bf16 %v713_v27, %v712_v26  ;;  %v9064_v34 = vld [vmem:[#allocation8 + $0x50] ss:$12 sps:$4 sm:$0xff]   ;;  %v9068_v35 = vld [vmem:[#allocation8 + $0x38] ss:$12 sps:$4 sm:$0xff]   ;;  %v9072_v38 = vld [vmem:[#allocation8 + $0x20] ss:$12 sps:$4 sm:$0xff]  }
  0xf2   : > { %8497 = vmatprep.subr.bf16.mxu0 %v10176_v0  ;;  %v9069_v36 = vld [vmem:[#allocation8 + $0x1c] ss:$12 sps:$4 sm:$0xff]   ;;  %v9071_v37 = vld [vmem:[#allocation8 + $0x18] ss:$12 sps:$4 sm:$0xff]   ;;  %v9075_v40 = vld [vmem:[#allocation8] ss:$12 sps:$4 sm:$0xff]  }
  0xf3   : > { %1015 = vmatpush1.bf16.msra.mxu1 %v9055_v15  ;;  %v9073_v39 = vld [vmem:[#allocation8 + $0x4] ss:$12 sps:$4 sm:$0xff]   ;;  %v9076_v41 = vld [vmem:[#allocation8 + $0x8] ss:$12 sps:$4 sm:$0xff]   ;;  %v7707_v44 = vld [vmem:[%s11188_s2] ss:$0 sm:$0xff] }
  0xf4   : > { %1016 = vmatprep.subr.bf16.mxu1 %v9057_v16  ;;  %v865_v54 = vld [vmem:[#allocation10] sm:$0x7]  ;;  %v10571_v55 = vsub.s32 1, %v10565_v52  ;;  %v10575_v61 = vsub.s32 0, %v10565_v52  ;;  %vm1598_vm5 = vcmask 785408   ;;  %s11264_s10 = sld [smem:[#allocation40_spill]] }
  0xf5   : > { %8498 = vmatpush3.bf16.msra.mxu0 %v9040_v4  ;;  %v878_v58 = vrot.slane %v865_v54, %v10568_v53  ;;  %s8166_s17 = sshll.u32 %s10289_s27, 4  ;;  %s696_s4 = scalar_lea.vmem [#allocation22], %s10493_s3 }
  0xf6   : > { %8499 = vmatprep.subr.bf16.mxu0 %v10176_v0  ;;  %v874_v62 = vrot.slane %v865_v54, %v10571_v55  ;;  %v870_v6 = vrot.slane %v865_v54, %v10575_v61  ;;  %s7504_s25 = sshll.u32 %s696_s4, 4  ;;  %s11265_s30 = sld [smem:[#allocation41_spill]]  ;;  %s7505_s25 = int_to_ptr.vmem [resolvable:$true] %s7504_s25 }
  0xf7   : > { %1017 = vmatpush1.bf16.msra.mxu1 %v9059_v21  ;;  %p11266_p3 = scmp.ne.s32.totalorder %s11246_s1, 0 }
  0xf8   : > { %1018 = vmatprep.subr.bf16.mxu1 %v9061_v22 }
  0xf9   : > { %8500 = vmatpush3.bf16.msra.mxu0 %v9041_v7 }
  0xfa   : > { %8501 = vmatprep.subr.bf16.mxu0 %v10176_v0 }
  0xfb   : > { %1019 = vmatpush1.bf16.msra.mxu1 %v9063_v23 }
  0xfc   : > { %1020 = vmatprep.subr.bf16.mxu1 %v9065_v25  ;;  %s7502_s0 = scalar_lea.hbm %s11265_s30, %s8166_s17 }
  0xfd   : > { %8502 = vmatpush3.bf16.msra.mxu0 %v9042_v11 }
  0xfe   : > { %8503 = vmatprep.subr.bf16.mxu0 %v10176_v0 }
  0xff   : > { %1021 = vmatpush1.bf16.msra.mxu1 %v9067_v28 }
 0x100   : > { %1022 = vmatprep.subr.bf16.mxu1 %v9069_v36 }
 0x101   : > { %8504 = vmatpush3.bf16.msra.mxu0 %v9043_v17 }
 0x102   : > { %8505 = vmatprep.subr.bf16.mxu0 %v10176_v0 }
 0x103   : > { %1023 = vmatpush1.bf16.msra.mxu1 %v9071_v37 }
 0x104   : > { %1024 = vmatprep.subr.bf16.mxu1 %v9073_v39 }
 0x105   : > { %8506 = vmatpush3.bf16.msra.mxu0 %v9044_v24 }
 0x106   : > { %8511 = vmatprep.subr.bf16.mxu0 %v10176_v0 }
 0x107   : > { %1025 = vmatpush1.bf16.msra.mxu1 %v9075_v40 }
 0x108   : > { %8508 = vmatmul.mubr.msk.bf16.vlgmr.msra.gmra.mxu0 %vm715_vm1, %v714_v30  ;;  %8531 = vmatprep.subr.bf16.mxu1 %v10176_v0 }
 0x109   : > { %8512 = vmatpush3.bf16.msra.mxu0 %v9048_v29  ;;  %8527 = vmatprep.mubr.msk.bf16.mxu0 %vm10177_vm0, %v10176_v0 }
 0x10a   : > { %8513 = vmatprep.subr.bf16.mxu0 %v10176_v0 }
 0x10d   : > { %8514 = vmatpush3.bf16.msra.mxu0 %v9052_v31 }
 0x10e   : > { %8515 = vmatprep.subr.bf16.mxu0 %v10176_v0 }
 0x111   : > { %8516 = vmatpush3.bf16.msra.mxu0 %v9056_v32 }
 0x112   : > { %8517 = vmatprep.subr.bf16.mxu0 %v10176_v0 }
 0x115   : > { %8518 = vmatpush3.bf16.msra.mxu0 %v9060_v33 }
 0x116   : > { %8519 = vmatprep.subr.bf16.mxu0 %v10176_v0 }
 0x119   : > { %8520 = vmatpush3.bf16.msra.mxu0 %v9064_v34 }
 0x11a   : > { %8521 = vmatprep.subr.bf16.mxu0 %v10176_v0 }
 0x11d   : > { %8522 = vmatpush3.bf16.msra.mxu0 %v9068_v35 }
 0x11e   : > { %8523 = vmatprep.subr.bf16.mxu0 %v10176_v0 }
 0x121   : > { %8524 = vmatpush3.bf16.msra.mxu0 %v9072_v38 }
 0x122   : > { %8525 = vmatprep.subr.bf16.mxu0 %v10176_v0 }
 0x125   : > { %8526 = vmatpush3.bf16.msra.mxu0 %v9076_v41 }
 0x126   : > { %8579 = vmatprep.subr.bf16.mxu0 %v10176_v0 }
 0x1c8   : > { %v825_v43 = vpop.f32.mrf.mxu0 }
 0x1c9   : > { %v10555_v47 = vadd.f32 %v7707_v44, %v825_v43 }
 0x1ca   : > { %v8509_v45 = vpop.f32.mrf.mxu0 }
 0x1cc   : > { %v828_v46 = vpop.f32.mrf.mxu0 }
 0x1cd   : > { %v10557_v48 = vadd.f32 %v7707_v44, %v828_v46 }
 0x1ce   : > { %v8510_v49 = vpop.f32.mrf.mxu0 }
 0x1cf   : > { %v832_v50 = vpack.c.bf16 %v10557_v48, %v10555_v47 }
 0x1d1   : > { %1043 = vmatmul.mubr.bf16.vlgmr.msra.gmra.mxu1 %v832_v50  ;;  %8528 = vmatmul.mubr.bf16.vlgmr.msra.gmra.mxu0 %v832_v50 }
 0x1d2   : > { %8533 = vmatprep.mubr.msk.bf16.mxu1 %vm10177_vm0, %v10176_v0  ;;  %8595 = vmatprep.mubr.msk.bf16.mxu0 %vm10177_vm0, %v10176_v0 }
 0x291   : > { %v1044_v56 = vpop.f32.mrf.mxu1  ;;  %v1087_v57 = vpop.f32.mrf.mxu0 }
 0x292   : > { %v1088_v2 = vadd.f32 %v1087_v57, %v878_v58  ;;  %v1045_v12 = vadd.f32 %v1044_v56, %v870_v6 }
 0x293   : > { %v1046_v59 = vpop.f32.mrf.mxu1  ;;  %v8529_v60 = vpop.f32.mrf.mxu0 }
 0x294   : > { %v1047_v7 = vadd.f32 %v1046_v59, %v874_v62 }
 0x295   : > { %v1048_v63 = vpop.f32.mrf.mxu1  ;;  %v1090_v1 = vpop.f32.mrf.mxu0 }
 0x296   : > { %v1091_v3 = vadd.f32 %v1090_v1, %v878_v58  ;;  %v1049_v10 = vadd.f32 %v1048_v63, %v870_v6 }
 0x297   : > { %v1050_v4 = vpop.f32.mrf.mxu1  ;;  %v8530_v5 = vpop.f32.mrf.mxu0 }
 0x298   : > { %v10579_v8 = vpack.c.bf16 %v1091_v3, %v1088_v2  ;;  %v1051_v9 = vadd.f32 %v1050_v4, %v874_v62  ;;  %v1094_v14 = vpack.c.bf16 %v1049_v10, %v1045_v12 }
 0x29a   : > { %v1095_v11 = vpack.c.bf16 %v1051_v9, %v1047_v7 }
 0x29c   : > { %1107 = vrot.lane.b32.xlu1 %v1095_v11, %s10179_s28  ;;  %1105 = vrot.lane.b32.xlu0 %v1095_v11, %s10180_s20  ;;  %v1126_v13 = vsel %vm1121_vm2, %v1095_v11, 0 }
 0x29d   : > { %8532 = vmatpush3.bf16.xpose.msra.mxu1 %v1126_v13 }
 0x29e   : > { %8537 = vmatprep.subr.bf16.mxu1 %v10176_v0 }
 0x2a0   : > { %1100 = vrot.lane.b32.xlu1 %v1094_v14, %s10179_s28  ;;  %1098 = vrot.lane.b32.xlu0 %v1094_v14, %s10180_s20 }
 0x2a4   : > { %1102 = vrot.lane.b32.xlu1 %v1094_v14, %s10181_s26  ;;  %1109 = vrot.lane.b32.xlu0 %v1095_v11, %s10181_s26 }
 0x2a5   : > { %8534 = vmatmul.mubr.msk.bf16.vlgmr.msra.gmra.mxu1 %vm1121_vm2, %v1094_v14 }
 0x2a6   : > { %8539 = vmatprep.mubr.msk.bf16.mxu1 %vm10177_vm0, %v10176_v0 }
 0x30e   : > { %v1106_v15 = vpop.permute.xlu0 %1105  ;;  %v1108_v17 = vpop.permute.xlu1 %1107 }
 0x30f   : > { %v1173_v16 = vsel %vm1121_vm2, %v1106_v15, 0  ;;  %v1220_v19 = vsel %vm1121_vm2, %v1108_v17, 0 }
 0x310   : > { %8538 = vmatpush3.bf16.xpose.msra.mxu1 %v1173_v16 }
 0x311   : > { %8543 = vmatprep.subr.bf16.mxu1 %v10176_v0 }
 0x312   : > { %v1099_v18 = vpop.permute.xlu0 %1098  ;;  %v1101_v21 = vpop.permute.xlu1 %1100 }
 0x316   : > { %v1110_v20 = vpop.permute.xlu0 %1109  ;;  %v1103_v23 = vpop.permute.xlu1 %1102 }
 0x317   : > { %8540 = vmatmul.mubr.msk.bf16.vlgmr.msra.gmra.mxu1 %vm1121_vm2, %v1099_v18  ;;  %v1267_v22 = vsel %vm1121_vm2, %v1110_v20, 0 }
 0x318   : > { %8544 = vmatpush3.bf16.xpose.msra.mxu1 %v1220_v19  ;;  %8545 = vmatprep.mubr.msk.bf16.mxu1 %vm10177_vm0, %v10176_v0 }
 0x319   : > { %8549 = vmatprep.subr.bf16.mxu1 %v10176_v0 }
 0x31f   : > { %8546 = vmatmul.mubr.msk.bf16.vlgmr.msra.gmra.mxu1 %vm1121_vm2, %v1101_v21 }
 0x320   : > { %8550 = vmatpush3.bf16.xpose.msra.mxu1 %v1267_v22  ;;  %8551 = vmatprep.mubr.msk.bf16.mxu1 %vm10177_vm0, %v10176_v0 }
 0x321   : > { %8555 = vmatprep.subr.bf16.mxu1 %v10176_v0 }
 0x327   : > { %8552 = vmatmul.mubr.msk.bf16.vlgmr.msra.gmra.mxu1 %vm1121_vm2, %v1103_v23 }
 0x328   : > { %8556 = vmatpush3.bf16.msra.mxu1 %v10579_v8  ;;  %8557 = vmatprep.mubr.msk.bf16.mxu1 %vm10177_vm0, %v10176_v0 }
 0x329   : > { %8561 = vmatprep.subr.bf16.mxu1 %v10176_v0 }
 0x365   : > { %v1162_v24 = vpop.f32.mrf.mxu1 }
 0x366   : > { %v1311_v25 = vsel %vm1310_vm3, %v1162_v24, -inf }
 0x367   : > { %1312 = vmax.xlane.f32.xlu0 %v1311_v25  ;;  %v8535_v26 = vpop.f32.mrf.mxu1 }
 0x369   : > { %v1165_v27 = vpop.f32.mrf.mxu1 }
 0x36a   : > { %v1314_v28 = vsel %vm1310_vm3, %v1165_v27, -inf }
 0x36b   : > { %1315 = vmax.xlane.f32.xlu1 %v1314_v28  ;;  %v8536_v29 = vpop.f32.mrf.mxu1 }
 0x3d7   : > { %v1209_v30 = vpop.f32.mrf.mxu1 }
 0x3d8   : > { %v1317_v31 = vsel %vm1310_vm3, %v1209_v30, -inf }
 0x3d9   : > { %1318 = vmax.xlane.f32.xlu0 %v1317_v31  ;;  %v8541_v32 = vpop.f32.mrf.mxu1 }
 0x3db   : > { %v1212_v33 = vpop.f32.mrf.mxu1 }
 0x3dc   : > { %v1320_v34 = vsel %vm1310_vm3, %v1212_v33, -inf }
 0x3dd   : > { %1321 = vmax.xlane.f32.xlu0 %v1320_v34  ;;  %v8542_v35 = vpop.f32.mrf.mxu1 }
 0x3df   : > { %v1256_v36 = vpop.f32.mrf.mxu1 }
 0x3e0   : > { %v1323_v37 = vsel %vm1310_vm3, %v1256_v36, -inf }
 0x3e1   : > { %1324 = vmax.xlane.f32.xlu1 %v1323_v37  ;;  %v8547_v38 = vpop.f32.mrf.mxu1 }
 0x3e3   : > { %v1259_v39 = vpop.f32.mrf.mxu1 }
 0x3e4   : > { %v1326_v40 = vsel %vm1310_vm3, %v1259_v39, -inf }
 0x3e5   : > { %1327 = vmax.xlane.f32.xlu0 %v1326_v40  ;;  %v8548_v41 = vpop.f32.mrf.mxu1 }
 0x3e7   : > { %v1303_v43 = vpop.f32.mrf.mxu1 }
 0x3e8   : > { %v1329_v44 = vsel %vm1310_vm3, %v1303_v43, -inf }
 0x3e9   : > { %1330 = vmax.xlane.f32.xlu1 %v1329_v44  ;;  %v8553_v45 = vpop.f32.mrf.mxu1 }
 0x3eb   : > { %v1306_v46 = vpop.f32.mrf.mxu1 }
 0x3ec   : > { %v1332_v49 = vsel %vm1310_vm3, %v1306_v46, -inf }
 0x3ed   : > { %1333 = vmax.xlane.f32.xlu0 %v1332_v49  ;;  %v8554_v50 = vpop.f32.mrf.mxu1 }
 0x3f0   : > { %v1313_v51 = vpop.xlane.xlu0 %1312 }
 0x3f1   : > { %v1335_v54 = vsub.f32 %v1162_v24, %v1313_v51 }
 0x3f3   : > { %v1343_v56 = vmul.f32 1.442695, %v1335_v54 }
 0x3f4   : > { %v1316_v57 = vpop.xlane.xlu1 %1315 }
 0x3f5   : > { %9525 = vpow2.f32 %v1343_v56  ;;  %v1336_v58 = vsub.f32 %v1165_v27, %v1316_v57 }
 0x3f7   : > { %v1345_v59 = vmul.f32 1.442695, %v1336_v58 }
 0x3f9   : > { %9527 = vpow2.f32 %v1345_v59 }
 0x402   : > { %v9526_v60 = vpop.eup %9525 }
 0x403   : > { %v1359_v62 = vsel %vm1310_vm3, %v9526_v60, 0.0 }
 0x404   : > { %1360 = vadd.xlane.f32.xlu1 %v1359_v62 }
 0x406   : > { %v9528_v63 = vpop.eup %9527 }
 0x407   : > { %v1362_v1 = vsel %vm1310_vm3, %v9528_v63, 0.0 }
 0x408   : > { %1363 = vadd.xlane.f32.xlu0 %v1362_v1 }
 0x415   : > { %1112 = vrot.lane.b32.xlu1 %v10579_v8, %s10180_s20 }
 0x462   : > { %v1319_v2 = vpop.xlane.xlu0 %1318 }
 0x463   : > { %v1337_v3 = vsub.f32 %v1209_v30, %v1319_v2 }
 0x465   : > { %v1347_v4 = vmul.f32 1.442695, %v1337_v3 }
 0x466   : > { %v1322_v5 = vpop.xlane.xlu0 %1321 }
 0x467   : > { %9529 = vpow2.f32 %v1347_v4  ;;  %v1338_v6 = vsub.f32 %v1212_v33, %v1322_v5 }
 0x469   : > { %v1349_v7 = vmul.f32 1.442695, %v1338_v6 }
 0x46a   : > { %v1325_v9 = vpop.xlane.xlu1 %1324 }
 0x46b   : > { %9531 = vpow2.f32 %v1349_v7  ;;  %v1339_v10 = vsub.f32 %v1256_v36, %v1325_v9 }
 0x46d   : > { %v1351_v11 = vmul.f32 1.442695, %v1339_v10 }
 0x46e   : > { %v1328_v12 = vpop.xlane.xlu0 %1327 }
 0x46f   : > { %9533 = vpow2.f32 %v1351_v11  ;;  %v1340_v13 = vsub.f32 %v1259_v39, %v1328_v12 }
 0x471   : > { %v1353_v14 = vmul.f32 1.442695, %v1340_v13  ;;  %v9077_v13 = vld [vmem:[#allocation11 + $0x38] sm:$0xff]  }
 0x472   : > { %v1331_v15 = vpop.xlane.xlu1 %1330  ;;  %8580 = vmatpush3.bf16.msra.mxu0 %v9077_v13  ;;  %v9105_v13 = vld [vmem:[#allocation19 + $0x84] ss:$16 sps:$4 sm:$0xff]  }
 0x473   : > { %9535 = vpow2.f32 %v1353_v14  ;;  %v1341_v16 = vsub.f32 %v1303_v43, %v1331_v15  ;;  %v9078_v14 = vld [vmem:[#allocation11 + $0x30] sm:$0xff]   ;;  %8581 = vmatprep.subr.bf16.mxu0 %v10176_v0  ;;  %v9079_v15 = vld [vmem:[#allocation11 + $0x28] sm:$0xff]  }
 0x474   : > { %v9530_v17 = vpop.eup %9529 }
 0x475   : > { %v1355_v18 = vmul.f32 1.442695, %v1341_v16  ;;  %v1365_v19 = vsel %vm1310_vm3, %v9530_v17, 0.0  ;;  %v9080_v16 = vld [vmem:[#allocation11 + $0x20] sm:$0xff]  }
 0x476   : > { %v1334_v20 = vpop.xlane.xlu0 %1333  ;;  %1366 = vadd.xlane.f32.xlu1 %v1365_v19  ;;  %8582 = vmatpush3.bf16.msra.mxu0 %v9078_v14  ;;  %v9103_v14 = vld [vmem:[#allocation19 + $0x80] ss:$16 sps:$4 sm:$0xff]  }
 0x477   : > { %9537 = vpow2.f32 %v1355_v18  ;;  %v1342_v21 = vsub.f32 %v1306_v46, %v1334_v20  ;;  %8583 = vmatprep.subr.bf16.mxu0 %v10176_v0  ;;  %v9082_v18 = vld [vmem:[#allocation11 + $0x10] sm:$0xff]  }
 0x478   : > { %v9532_v22 = vpop.eup %9531 }
 0x479   : > { %v1357_v23 = vmul.f32 1.442695, %v1342_v21  ;;  %v1368_v24 = vsel %vm1310_vm3, %v9532_v22, 0.0  ;;  %v9083_v21 = vld [vmem:[#allocation11 + $0x8] sm:$0xff]  }
 0x47a   : > { %1369 = vadd.xlane.f32.xlu0 %v1368_v24  ;;  %8584 = vmatpush3.bf16.msra.mxu0 %v9079_v15  ;;  %v9106_v15 = vld [vmem:[#allocation19 + $0x88] ss:$16 sps:$4 sm:$0xff]  }
 0x47b   : > { %9539 = vpow2.f32 %v1357_v23  ;;  %8585 = vmatprep.subr.bf16.mxu0 %v10176_v0  ;;  %v9084_v23 = vld [vmem:[#allocation11] sm:$0xff]  }
 0x47c   : > { %v9534_v25 = vpop.eup %9533 }
 0x47d   : > { %v1371_v26 = vsel %vm1310_vm3, %v9534_v25, 0.0 }
 0x47e   : > { %1372 = vadd.xlane.f32.xlu1 %v1371_v26  ;;  %8586 = vmatpush3.bf16.msra.mxu0 %v9080_v16  ;;  %v9108_v16 = vld [vmem:[#allocation19 + $0x8c] ss:$16 sps:$4 sm:$0xff]  }
 0x47f   : > { %8587 = vmatprep.subr.bf16.mxu0 %v10176_v0 }
 0x480   : > { %v9536_v27 = vpop.eup %9535 }
 0x481   : > { %v1374_v28 = vsel %vm1310_vm3, %v9536_v27, 0.0 }
 0x482   : > { %1375 = vadd.xlane.f32.xlu0 %v1374_v28 }
 0x484   : > { %v9538_v29 = vpop.eup %9537 }
 0x485   : > { %v1377_v30 = vsel %vm1310_vm3, %v9538_v29, 0.0 }
 0x486   : > { %1378 = vadd.xlane.f32.xlu1 %v1377_v30 }
 0x488   : > { %v9540_v31 = vpop.eup %9539 }
 0x489   : > { %v1380_v32 = vsel %vm1310_vm3, %v9540_v31, 0.0 }
 0x48a   : > { %1381 = vadd.xlane.f32.xlu0 %v1380_v32 }
 0x48d   : > { %v1361_v33 = vpop.xlane.xlu1 %1360 }
 0x48e   : > { %9541 = vrcp.f32 %v1361_v33 }
 0x491   : > { %v1364_v34 = vpop.xlane.xlu0 %1363  ;;  %v1113_v40 = vpop.permute.xlu1 %1112 }
 0x492   : > { %9543 = vrcp.f32 %v1364_v34 }
 0x497   : > { %1118 = vrot.lane.b32.xlu1 %v10579_v8, %s10181_s26 }
 0x49b   : > { %v9542_v35 = vpop.eup %9541 }
 0x49c   : > { %v1391_v37 = vmul.f32 %v9542_v35, %v9526_v60 }
 0x49f   : > { %v9544_v36 = vpop.eup %9543 }
 0x4a0   : > { %1115 = vrot.lane.b32.xlu0 %v10579_v8, %s10179_s28  ;;  %v1392_v38 = vmul.f32 %v9544_v36, %v9528_v63 }
 0x4a2   : > { %v1399_v39 = vpack.c.bf16 %v1392_v38, %v1391_v37 }
 0x4a4   : > { %8558 = vmatmul.mubr.msk.bf16.vlgmr.msra.gmra.mxu1 %vm1310_vm3, %v1399_v39 }
 0x4a5   : > { %8562 = vmatpush3.bf16.msra.mxu1 %v1113_v40  ;;  %8563 = vmatprep.mubr.msk.bf16.mxu1 %vm10177_vm0, %v10176_v0 }
 0x4a6   : > { %8567 = vmatprep.subr.bf16.mxu1 %v10176_v0 }
 0x4ff   : > { %v1367_v41 = vpop.xlane.xlu1 %1366 }
 0x500   : > { %9545 = vrcp.f32 %v1367_v41 }
 0x503   : > { %v1370_v43 = vpop.xlane.xlu0 %1369 }
 0x504   : > { %9547 = vrcp.f32 %v1370_v43  ;;  %v7749_v43 = vld [vmem:[%s11193_s7] ss:$0 sm:$0xff] }
 0x507   : > { %v1373_v44 = vpop.xlane.xlu1 %1372 }
 0x508   : > { %9549 = vrcp.f32 %v1373_v44 }
 0x50b   : > { %v1376_v45 = vpop.xlane.xlu0 %1375 }
 0x50c   : > { %9551 = vrcp.f32 %v1376_v45 }
 0x50d   : > { %v9546_v8 = vpop.eup %9545 }
 0x50e   : > { %v1393_v50 = vmul.f32 %v9546_v8, %v9530_v17  ;;  %v9081_v17 = vld [vmem:[#allocation11 + $0x18] sm:$0xff]  }
 0x50f   : > { %v1379_v46 = vpop.xlane.xlu1 %1378  ;;  %8588 = vmatpush3.bf16.msra.mxu0 %v9081_v17  ;;  %v9111_v17 = vld [vmem:[#allocation19 + $0x64] ss:$16 sps:$4 sm:$0xff]  }
 0x510   : > { %9553 = vrcp.f32 %v1379_v46  ;;  %8589 = vmatprep.subr.bf16.mxu0 %v10176_v0 }
 0x511   : > { %v9548_v49 = vpop.eup %9547 }
 0x512   : > { %v1394_v51 = vmul.f32 %v9548_v49, %v9532_v22 }
 0x513   : > { %v1382_v54 = vpop.xlane.xlu0 %1381  ;;  %v1119_v1 = vpop.permute.xlu1 %1118  ;;  %8590 = vmatpush3.bf16.msra.mxu0 %v9082_v18  ;;  %v9114_v18 = vld [vmem:[#allocation19 + $0x6c] ss:$16 sps:$4 sm:$0xff]  }
 0x514   : > { %9555 = vrcp.f32 %v1382_v54  ;;  %v1400_v56 = vpack.c.bf16 %v1394_v51, %v1393_v50  ;;  %8591 = vmatprep.subr.bf16.mxu0 %v10176_v0 }
 0x515   : > { %v9550_v57 = vpop.eup %9549 }
 0x516   : > { %8564 = vmatmul.mubr.msk.bf16.vlgmr.msra.gmra.mxu1 %vm1310_vm3, %v1400_v56  ;;  %v1395_v60 = vmul.f32 %v9550_v57, %v9534_v25  ;;  %v9085_v56 = vld [vmem:[#allocation19 + $0xe0] ss:$16 sps:$4 sm:$0xff]   ;;  %v9087_v57 = vld [vmem:[#allocation19 + $0xe4] ss:$16 sps:$4 sm:$0xff]  }
 0x517   : > { %v1116_v58 = vpop.permute.xlu0 %1115  ;;  %8569 = vmatprep.mubr.msk.bf16.mxu1 %vm10177_vm0, %v10176_v0  ;;  %8592 = vmatpush3.bf16.msra.mxu0 %v9083_v21  ;;  %v9117_v21 = vld [vmem:[#allocation19 + $0x44] ss:$16 sps:$4 sm:$0xff]  }
 0x518   : > { %8568 = vmatpush3.bf16.msra.mxu1 %v1116_v58  ;;  %8593 = vmatprep.subr.bf16.mxu0 %v10176_v0  ;;  %v9088_v58 = vld [vmem:[#allocation19 + $0xe8] ss:$16 sps:$4 sm:$0xff]  }
 0x519   : > { %v9552_v59 = vpop.eup %9551  ;;  %8573 = vmatprep.subr.bf16.mxu1 %v10176_v0 }
 0x51a   : > { %v1396_v62 = vmul.f32 %v9552_v59, %v9536_v27  ;;  %v9090_v59 = vld [vmem:[#allocation19 + $0xec] ss:$16 sps:$4 sm:$0xff]  }
 0x51b   : > { %8594 = vmatpush3.bf16.msra.mxu0 %v9084_v23  ;;  %v9115_v23 = vld [vmem:[#allocation19 + $0x40] ss:$16 sps:$4 sm:$0xff]  }
 0x51c   : > { %v1401_v63 = vpack.c.bf16 %v1396_v62, %v1395_v60  ;;  %2015 = vmatprep.subr.bf16.mxu0 %v9090_v59  ;;  %v9137_v59 = vld [vmem:[#allocation20 + $0x70] sm:$0xff]  }
 0x51d   : > { %v9554_v2 = vpop.eup %9553 }
 0x51e   : > { %8570 = vmatmul.mubr.msk.bf16.vlgmr.msra.gmra.mxu1 %vm1310_vm3, %v1401_v63  ;;  %v1397_v4 = vmul.f32 %v9554_v2, %v9538_v29 }
 0x51f   : > { %8574 = vmatpush3.bf16.msra.mxu1 %v1119_v1  ;;  %8575 = vmatprep.mubr.msk.bf16.mxu1 %vm10177_vm0, %v10176_v0 }
 0x520   : > { %1972 = vmatprep.subr.bf16.mxu1 %v9087_v57  ;;  %v9135_v57 = vld [vmem:[#allocation20 + $0x38] sm:$0xff]  }
 0x521   : > { %v9556_v3 = vpop.eup %9555 }
 0x522   : > { %v1398_v5 = vmul.f32 %v9556_v3, %v9540_v31 }
 0x524   : > { %v1402_v6 = vpack.c.bf16 %v1398_v5, %v1397_v4  ;;  %v9093_v4 = vld [vmem:[#allocation19 + $0xc4] ss:$16 sps:$4 sm:$0xff]   ;;  %v9096_v5 = vld [vmem:[#allocation19 + $0xcc] ss:$16 sps:$4 sm:$0xff]  }
 0x526   : > { %8576 = vmatmul.mubr.msk.bf16.vlgmr.msra.gmra.mxu1 %vm1310_vm3, %v1402_v6  ;;  %v9091_v6 = vld [vmem:[#allocation19 + $0xc0] ss:$16 sps:$4 sm:$0xff]  }
 0x527   : > { %2004 = vmatprep.mubr.bf16.mxu1 %v10178_v42  ;;  %1973 = vmatpush1.bf16.msra.mxu1 %v9085_v56  ;;  %v9134_v56 = vld [vmem:[#allocation20 + $0xf8] sm:$0xff]  }
 0x528   : > { %1974 = vmatprep.subr.bf16.mxu1 %v9093_v4  ;;  %v9146_v4 = vld [vmem:[#allocation20 + $0xe0] sm:$0xff]  }
 0x52b   : > { %1975 = vmatpush1.bf16.msra.mxu1 %v9091_v6  ;;  %v9148_v6 = vld [vmem:[#allocation20 + $0xa0] sm:$0xff]  }
 0x564   : > { %v1440_v7 = vpop.f32.mrf.mxu1 }
 0x566   : > { %v8559_v9 = vpop.f32.mrf.mxu1 }
 0x567   : > { %v9099_v9 = vld [vmem:[#allocation19 + $0xa4] ss:$16 sps:$4 sm:$0xff]  }
 0x568   : > { %v1443_v10 = vpop.f32.mrf.mxu1  ;;  %1976 = vmatprep.subr.bf16.mxu1 %v9099_v9  ;;  %v9150_v9 = vld [vmem:[#allocation20 + $0xd8] sm:$0xff]  }
 0x569   : > { %v1579_v11 = vpack.c.bf16 %v1443_v10, %v1440_v7  ;;  %v9094_v7 = vld [vmem:[#allocation19 + $0xc8] ss:$16 sps:$4 sm:$0xff]   ;;  %v9102_v10 = vld [vmem:[#allocation19 + $0xac] ss:$16 sps:$4 sm:$0xff]  }
 0x56a   : > { %v8560_v12 = vpop.f32.mrf.mxu1 }
 0x56b   : > { %v9100_v12 = vld [vmem:[#allocation19 + $0xa8] ss:$16 sps:$4 sm:$0xff]  }
 0x5d6   : > { %v1484_v19 = vpop.f32.mrf.mxu1 }
 0x5d8   : > { %v8565_v20 = vpop.f32.mrf.mxu1 }
 0x5d9   : > { %v9112_v20 = vld [vmem:[#allocation19 + $0x68] ss:$16 sps:$4 sm:$0xff]  }
 0x5da   : > { %v1487_v22 = vpop.f32.mrf.mxu1 }
 0x5db   : > { %v1580_v24 = vpack.c.bf16 %v1487_v22, %v1484_v19  ;;  %v9109_v19 = vld [vmem:[#allocation19 + $0x60] ss:$16 sps:$4 sm:$0xff]   ;;  %v9120_v22 = vld [vmem:[#allocation19 + $0x4c] ss:$16 sps:$4 sm:$0xff]  }
 0x5dc   : > { %v8566_v25 = vpop.f32.mrf.mxu1 }
 0x5dd   : > { %1584 = vrot.lane.b32.xlu1 %v1580_v24, %s10181_s26  ;;  %v9118_v24 = vld [vmem:[#allocation19 + $0x48] ss:$16 sps:$4 sm:$0xff]   ;;  %v9123_v25 = vld [vmem:[#allocation19 + $0x24] ss:$16 sps:$4 sm:$0xff]  }
 0x5de   : > { %v1528_v26 = vpop.f32.mrf.mxu1 }
 0x5e0   : > { %v8571_v27 = vpop.f32.mrf.mxu1 }
 0x5e1   : > { %v9121_v27 = vld [vmem:[#allocation19 + $0x20] ss:$16 sps:$4 sm:$0xff]  }
 0x5e2   : > { %v1531_v28 = vpop.f32.mrf.mxu1 }
 0x5e3   : > { %v1581_v29 = vpack.c.bf16 %v1531_v28, %v1528_v26  ;;  %v9126_v26 = vld [vmem:[#allocation19 + $0x2c] ss:$16 sps:$4 sm:$0xff]   ;;  %v9124_v28 = vld [vmem:[#allocation19 + $0x28] ss:$16 sps:$4 sm:$0xff]  }
 0x5e4   : > { %v8572_v30 = vpop.f32.mrf.mxu1 }
 0x5e5   : > { %1587 = vrot.lane.b32.xlu0 %v1581_v29, %s10179_s28  ;;  %v9129_v29 = vld [vmem:[#allocation19 + $0x4] ss:$16 sps:$4 sm:$0xff]   ;;  %v9132_v30 = vld [vmem:[#allocation19 + $0xc] ss:$16 sps:$4 sm:$0xff]  }
 0x5e6   : > { %v1572_v31 = vpop.f32.mrf.mxu1 }
 0x5e8   : > { %v8577_v32 = vpop.f32.mrf.mxu1 }
 0x5e9   : > { %v9130_v32 = vld [vmem:[#allocation19 + $0x8] ss:$16 sps:$4 sm:$0xff]  }
 0x5ea   : > { %v1575_v33 = vpop.f32.mrf.mxu1 }
 0x5eb   : > { %v1582_v34 = vpack.c.bf16 %v1575_v33, %v1572_v31  ;;  %v9127_v31 = vld [vmem:[#allocation19] ss:$16 sps:$4 sm:$0xff]  }
 0x5ec   : > { %v8578_v35 = vpop.f32.mrf.mxu1 }
 0x5ed   : > { %1590 = vrot.lane.b32.xlu1 %v1582_v34, %s10180_s20 }
 0x64f   : > { %v1585_v36 = vpop.permute.xlu1 %1584 }
 0x650   : > { %v1594_v38 = vsel %vm1121_vm2, %v1579_v11, %v1585_v36  ;;  %v9097_v11 = vld [vmem:[#allocation19 + $0xa0] ss:$16 sps:$4 sm:$0xff]  }
 0x651   : > { %1977 = vmatpush1.bf16.msra.mxu1 %v9097_v11  ;;  %v9152_v11 = vld [vmem:[#allocation20 + $0x98] sm:$0xff]  }
 0x652   : > { %1978 = vmatprep.subr.bf16.mxu1 %v9105_v13  ;;  %v9154_v13 = vld [vmem:[#allocation20 + $0xd0] sm:$0xff]  }
 0x655   : > { %1979 = vmatpush1.bf16.msra.mxu1 %v9103_v14  ;;  %v9155_v14 = vld [vmem:[#allocation20 + $0x10] sm:$0xff]  }
 0x656   : > { %1980 = vmatprep.subr.bf16.mxu1 %v9111_v17  ;;  %v9158_v17 = vld [vmem:[#allocation20 + $0xc8] sm:$0xff]  }
 0x657   : > { %v1588_v37 = vpop.permute.xlu0 %1587 }
 0x658   : > { %v1597_v39 = vsel %vm1595_vm4, %v1594_v38, %v1588_v37 }
 0x659   : > { %1981 = vmatpush1.bf16.msra.mxu1 %v9109_v19  ;;  %v9160_v19 = vld [vmem:[#allocation20 + $0x88] sm:$0xff]  }
 0x65a   : > { %1982 = vmatprep.subr.bf16.mxu1 %v9117_v21  ;;  %v9162_v21 = vld [vmem:[#allocation20 + $0xc0] sm:$0xff]  }
 0x65d   : > { %1983 = vmatpush1.bf16.msra.mxu1 %v9115_v23  ;;  %v9164_v23 = vld [vmem:[#allocation20 + $0x80] sm:$0xff]  }
 0x65e   : > { %1984 = vmatprep.subr.bf16.mxu1 %v9123_v25  ;;  %v10684_v25 = vsub.s32 3, %v10565_v52 }
 0x65f   : > { %v1591_v40 = vpop.permute.xlu1 %1590 }
 0x660   : > { %v1600_v41 = vsel %vm1598_vm5, %v1597_v39, %v1591_v40 }
 0x661   : > { %8596 = vmatmul.mubr.bf16.vlgmr.msra.gmra.mxu0 %v1600_v41  ;;  %1985 = vmatpush1.bf16.msra.mxu1 %v9121_v27  ;;  %v7758_v41 = vld [vmem:[#allocation13] ss:$0 sm:$0xff] }
 0x662   : > { %2047 = vmatprep.mubr.bf16.mxu0 %v10178_v42  ;;  %2016 = vmatpush1.bf16.msra.mxu0 %v9088_v58  ;;  %v9136_v58 = vld [vmem:[#allocation20 + $0xb8] sm:$0xff]  }
 0x663   : > { %2017 = vmatprep.subr.bf16.mxu0 %v9096_v5  ;;  %1986 = vmatprep.subr.bf16.mxu1 %v9129_v29  ;;  %v9147_v5 = vld [vmem:[#allocation20 + $0x20] sm:$0xff]  }
 0x665   : > { %1987 = vmatpush1.bf16.msra.mxu1 %v9127_v31 }
 0x666   : > { %2018 = vmatpush1.bf16.msra.mxu0 %v9094_v7  ;;  %v9149_v7 = vld [vmem:[#allocation20 + $0x58] sm:$0xff]  }
 0x667   : > { %2019 = vmatprep.subr.bf16.mxu0 %v9102_v10  ;;  %v9151_v10 = vld [vmem:[#allocation20 + $0x18] sm:$0xff]  }
 0x66a   : > { %2020 = vmatpush1.bf16.msra.mxu0 %v9100_v12  ;;  %v9153_v12 = vld [vmem:[#allocation20 + $0x50] sm:$0xff]  }
 0x66b   : > { %2021 = vmatprep.subr.bf16.mxu0 %v9108_v16  ;;  %v9157_v16 = vld [vmem:[#allocation20 + $0x48] sm:$0xff]  }
 0x66e   : > { %2022 = vmatpush1.bf16.msra.mxu0 %v9106_v15  ;;  %v9156_v15 = vld [vmem:[#allocation20 + $0x90] sm:$0xff]  }
 0x66f   : > { %2023 = vmatprep.subr.bf16.mxu0 %v9114_v18  ;;  %v9159_v18 = vld [vmem:[#allocation20 + $0x8] sm:$0xff]  }
 0x672   : > { %2024 = vmatpush1.bf16.msra.mxu0 %v9112_v20  ;;  %v9161_v20 = vld [vmem:[#allocation20 + $0x40] sm:$0xff]  }
 0x673   : > { %2025 = vmatprep.subr.bf16.mxu0 %v9120_v22  ;;  %v9163_v22 = vld [vmem:[#allocation20] sm:$0xff]  }
 0x676   : > { %2026 = vmatpush1.bf16.msra.mxu0 %v9118_v24  ;;  %v1790_v24 = vld [vmem:[%s11199_s13] sm:$0xf] }
 0x677   : > { %2027 = vmatprep.subr.bf16.mxu0 %v9126_v26  ;;  %v1795_v26 = vrot.slane %v1790_v24, %v10575_v61  ;;  %v1803_v27 = vrot.slane %v1790_v24, %v10568_v53  ;;  %v1807_v31 = vrot.slane %v1790_v24, %v10684_v25 }
 0x67a   : > { %2028 = vmatpush1.bf16.msra.mxu0 %v9124_v28 }
 0x67b   : > { %2029 = vmatprep.subr.bf16.mxu0 %v9132_v30  ;;  %v1799_v30 = vrot.slane %v1790_v24, %v10571_v55 }
 0x67e   : > { %2030 = vmatpush1.bf16.msra.mxu0 %v9130_v32 }
 0x67f   : > { %8235 = vmatprep.subr.bf16.mxu0 %v9134_v56 }
 0x721   : > { %v1707_v44 = vpop.f32.mrf.mxu0 }
 0x722   : > { %v1708_v45 = vadd.f32 %v7749_v43, %v1707_v44 }
 0x723   : > { %v8597_v8 = vpop.f32.mrf.mxu0 }
 0x724   : > { %v1714_v46 = vadd.f32 %v1708_v45, %v10555_v47  ;;  %v7759_v8 = vld [vmem:[#allocation14] ss:$0 sm:$0xff] }
 0x725   : > { %v1710_v49 = vpop.f32.mrf.mxu0 }
 0x726   : > { %v1711_v50 = vadd.f32 %v7749_v43, %v1710_v49  ;;  %1718 = vadd.xlane.f32.xlu0 %v1714_v46 }
 0x727   : > { %v8598_v51 = vpop.f32.mrf.mxu0 }
 0x728   : > { %v1715_v54 = vadd.f32 %v1711_v50, %v10557_v48 }
 0x72a   : > { %1720 = vadd.xlane.f32.xlu1 %v1715_v54 }
 0x7af   : > { %v1719_v60 = vpop.xlane.xlu0 %1718 }
 0x7b0   : > { %v1723_v62 = vmul.f32 0.0078125, %v1719_v60  ;;  %v9138_v60 = vld [vmem:[#allocation20 + $0xf0] sm:$0xff]  }
 0x7b2   : > { %v10663_v63 = vsub.f32 %v1714_v46, %v1723_v62  ;;  %v9139_v62 = vld [vmem:[#allocation20 + $0x30] sm:$0xff]  }
 0x7b3   : > { %v1721_v47 = vpop.xlane.xlu1 %1720 }
 0x7b4   : > { %v1724_v1 = vmul.f32 0.0078125, %v1721_v47  ;;  %v1727_v2 = vmul.f32 %v10663_v63, %v10663_v63  ;;  %v9141_v47 = vld [vmem:[#allocation20 + $0x68] sm:$0xff]  }
 0x7b6   : > { %1729 = vadd.xlane.f32.xlu0 %v1727_v2  ;;  %v10667_v48 = vsub.f32 %v1715_v54, %v1724_v1  ;;  %v9133_v54 = vld [vmem:[#allocation20 + $0x78] sm:$0xff]   ;;  %v9142_v1 = vld [vmem:[#allocation20 + $0xe8] sm:$0xff]  }
 0x7b7   : > { %8213 = vmatprep.subr.bf16.mxu1 %v9133_v54  ;;  %v9143_v2 = vld [vmem:[#allocation20 + $0x28] sm:$0xff]  }
 0x7b8   : > { %v1728_v3 = vmul.f32 %v10667_v48, %v10667_v48 }
 0x7ba   : > { %1731 = vadd.xlane.f32.xlu0 %v1728_v3  ;;  %v9145_v3 = vld [vmem:[#allocation20 + $0x60] sm:$0xff]  }
 0x83f   : > { %v1730_v33 = vpop.xlane.xlu0 %1729 }
 0x840   : > { %v1733_v34 = vmul.f32 0.0078125, %v1730_v33 }
 0x842   : > { %v1735_v35 = vadd.f32 1e-05, %v1733_v34 }
 0x843   : > { %v1732_v36 = vpop.xlane.xlu0 %1731 }
 0x844   : > { %9557 = vrsqrt.f32 %v1735_v35  ;;  %v1734_v37 = vmul.f32 0.0078125, %v1732_v36 }
 0x846   : > { %v1736_v38 = vadd.f32 1e-05, %v1734_v37 }
 0x848   : > { %9559 = vrsqrt.f32 %v1736_v38 }
 0x851   : > { %v9558_v39 = vpop.eup %9557 }
 0x852   : > { %v1739_v40 = vmul.f32 %v9558_v39, %v10663_v63  ;;  %v9140_v63 = vld [vmem:[#allocation20 + $0xb0] sm:$0xff]  }
 0x854   : > { %v1747_v45 = vmul.f32 %v7758_v41, %v1739_v40 }
 0x855   : > { %v9560_v43 = vpop.eup %9559 }
 0x856   : > { %v1740_v44 = vmul.f32 %v9560_v43, %v10667_v48  ;;  %v10673_v49 = vadd.f32 %v7759_v8, %v1747_v45  ;;  %v9144_v48 = vld [vmem:[#allocation20 + $0xa8] sm:$0xff]  }
 0x858   : > { %v1748_v46 = vmul.f32 %v7758_v41, %v1740_v44 }
 0x85a   : > { %v10675_v50 = vadd.f32 %v7759_v8, %v1748_v46 }
 0x85c   : > { %v1757_v51 = vpack.c.bf16 %v10675_v50, %v10673_v49 }
 0x85e   : > { %2005 = vmatmul.mubr.bf16.vlgmr.msra.gmra.mxu1 %v1757_v51  ;;  %2048 = vmatmul.mubr.bf16.vlgmr.msra.gmra.mxu0 %v1757_v51 }
 0x85f   : > { %8214 = vmatpush3.bf16.msra.mxu1 %v9135_v57  ;;  %8236 = vmatpush3.bf16.msra.mxu0 %v9136_v58 }
 0x860   : > { %8215 = vmatprep.subr.bf16.mxu1 %v9137_v59  ;;  %8237 = vmatprep.subr.bf16.mxu0 %v9138_v60 }
 0x863   : > { %8216 = vmatpush3.bf16.msra.mxu1 %v9139_v62  ;;  %8238 = vmatpush3.bf16.msra.mxu0 %v9140_v63 }
 0x864   : > { %8217 = vmatprep.subr.bf16.mxu1 %v9141_v47  ;;  %8239 = vmatprep.subr.bf16.mxu0 %v9142_v1 }
 0x867   : > { %8218 = vmatpush3.bf16.msra.mxu1 %v9143_v2  ;;  %8240 = vmatpush3.bf16.msra.mxu0 %v9144_v48 }
 0x868   : > { %8219 = vmatprep.subr.bf16.mxu1 %v9145_v3  ;;  %8241 = vmatprep.subr.bf16.mxu0 %v9146_v4 }
 0x86b   : > { %8220 = vmatpush3.bf16.msra.mxu1 %v9147_v5  ;;  %8242 = vmatpush3.bf16.msra.mxu0 %v9148_v6 }
 0x86c   : > { %8221 = vmatprep.subr.bf16.mxu1 %v9149_v7  ;;  %8243 = vmatprep.subr.bf16.mxu0 %v9150_v9 }
 0x86f   : > { %8222 = vmatpush3.bf16.msra.mxu1 %v9151_v10  ;;  %8244 = vmatpush3.bf16.msra.mxu0 %v9152_v11 }
 0x870   : > { %8223 = vmatprep.subr.bf16.mxu1 %v9153_v12  ;;  %8245 = vmatprep.subr.bf16.mxu0 %v9154_v13 }
 0x873   : > { %8224 = vmatpush3.bf16.msra.mxu1 %v9155_v14  ;;  %8246 = vmatpush3.bf16.msra.mxu0 %v9156_v15 }
 0x874   : > { %8225 = vmatprep.subr.bf16.mxu1 %v9157_v16  ;;  %8247 = vmatprep.subr.bf16.mxu0 %v9158_v17 }
 0x877   : > { %8226 = vmatpush3.bf16.msra.mxu1 %v9159_v18  ;;  %8248 = vmatpush3.bf16.msra.mxu0 %v9160_v19 }
 0x878   : > { %8227 = vmatprep.subr.bf16.mxu1 %v9161_v20  ;;  %8249 = vmatprep.subr.bf16.mxu0 %v9162_v21 }
 0x87b   : > { %8228 = vmatpush3.bf16.msra.mxu1 %v9163_v22  ;;  %8250 = vmatpush3.bf16.msra.mxu0 %v9164_v23 }
 0x87c   : > { %8599 = vmatprep.subr.bf16.mxu0 %v10176_v0 }
 0x91e   : > { %v2006_v28 = vpop.f32.mrf.mxu1  ;;  %v2049_v29 = vpop.f32.mrf.mxu0 }
 0x91f   : > { %v2007_v32 = vadd.f32 %v2006_v28, %v1795_v26  ;;  %v2050_v33 = vadd.f32 %v2049_v29, %v1803_v27 }
 0x920   : > { %v2008_v34 = vpop.f32.mrf.mxu1  ;;  %v2051_v35 = vpop.f32.mrf.mxu0 }
 0x921   : > { %v2066_v36 = vmul.f32 0.70710677, %v2007_v32  ;;  %v2068_v37 = vmul.f32 0.70710677, %v2050_v33  ;;  %v2009_v38 = vadd.f32 %v2008_v34, %v1799_v30  ;;  %v2052_v39 = vadd.f32 %v2051_v35, %v1807_v31 }
 0x922   : > { %v2010_v52 = vpop.f32.mrf.mxu1  ;;  %v2053_v40 = vpop.f32.mrf.mxu0  ;;  %v2058_v48 = vmul.f32 0.5, %v2007_v32  ;;  %v2060_v21 = vmul.f32 0.5, %v2050_v33 }
 0x923   : > { %v2011_v41 = vadd.f32 %v2010_v52, %v1795_v26  ;;  %v2054_v43 = vadd.f32 %v2053_v40, %v1803_v27  ;;  %9561 = verf.f32 %v2066_v36  ;;  %v2067_v44 = vmul.f32 0.70710677, %v2009_v38  ;;  %v7792_v36 = vld [vmem:[%s11264_s10] ss:$0 sm:$0xff] }
 0x924   : > { %v2012_v45 = vpop.f32.mrf.mxu1  ;;  %v2055_v8 = vpop.f32.mrf.mxu0  ;;  %9563 = verf.f32 %v2068_v37  ;;  %v2069_v46 = vmul.f32 0.70710677, %v2052_v39  ;;  %v2059_v3 = vmul.f32 0.5, %v2009_v38  ;;  %v2061_v17 = vmul.f32 0.5, %v2052_v39 }
 0x925   : > { %v2070_v51 = vmul.f32 0.70710677, %v2011_v41  ;;  %9565 = verf.f32 %v2067_v44  ;;  %v2072_v54 = vmul.f32 0.70710677, %v2054_v43  ;;  %v2013_v56 = vadd.f32 %v2012_v45, %v1799_v30 }
 0x926   : > { %v2056_v57 = vadd.f32 %v2055_v8, %v1807_v31  ;;  %9567 = verf.f32 %v2069_v46  ;;  %v2062_v10 = vmul.f32 0.5, %v2011_v41  ;;  %v2064_v14 = vmul.f32 0.5, %v2054_v43 }
 0x927   : > { %9569 = verf.f32 %v2070_v51  ;;  %v2071_v58 = vmul.f32 0.70710677, %v2013_v56  ;;  %v2063_v15 = vmul.f32 0.5, %v2013_v56 }
 0x928   : > { %9571 = verf.f32 %v2072_v54  ;;  %v2073_v59 = vmul.f32 0.70710677, %v2056_v57  ;;  %v2065_v19 = vmul.f32 0.5, %v2056_v57 }
 0x929   : > { %9573 = verf.f32 %v2071_v58 }
 0x92a   : > { %9575 = verf.f32 %v2073_v59  ;;  %v9165_v59 = vld [vmem:[#allocation8 + $0x168] ss:$12 sps:$4 sm:$0xff]  }
 0x930   : > { %v9562_v60 = vpop.eup %9561 }
 0x931   : > { %v9564_v62 = vpop.eup %9563  ;;  %v2082_v7 = vadd.f32 1.0, %v9562_v60  ;;  %v9167_v60 = vld [vmem:[#allocation8 + $0x16c] ss:$12 sps:$4 sm:$0xff]  }
 0x932   : > { %v9566_v63 = vpop.eup %9565  ;;  %v2084_v13 = vadd.f32 1.0, %v9564_v62  ;;  %v9168_v62 = vld [vmem:[#allocation8 + $0x170] ss:$12 sps:$4 sm:$0xff]   ;;  %2669 = vmatprep.subr.bf16.mxu1 %v9167_v60 }
 0x933   : > { %v9568_v47 = vpop.eup %9567  ;;  %v2083_v4 = vadd.f32 1.0, %v9566_v63  ;;  %v2090_v26 = vmul.f32 %v2082_v7, %v2058_v48  ;;  %v9175_v7 = vld [vmem:[#allocation8 + $0x13c] ss:$12 sps:$4 sm:$0xff]  }
 0x934   : > { %v9570_v1 = vpop.eup %9569  ;;  %v2085_v9 = vadd.f32 1.0, %v9568_v47  ;;  %v2092_v29 = vmul.f32 %v2084_v13, %v2060_v21  ;;  %v9180_v13 = vld [vmem:[#allocation8 + $0x128] ss:$12 sps:$4 sm:$0xff]   ;;  %v9189_v21 = vld [vmem:[#allocation8 + $0xd8] ss:$12 sps:$4 sm:$0xff]  }
 0x935   : > { %v9572_v2 = vpop.eup %9571  ;;  %v2086_v5 = vadd.f32 1.0, %v9570_v1  ;;  %v2091_v22 = vmul.f32 %v2083_v4, %v2059_v3  ;;  %v9171_v4 = vld [vmem:[#allocation8 + $0x154] ss:$12 sps:$4 sm:$0xff]  }
 0x936   : > { %v9574_v6 = vpop.eup %9573  ;;  %v2088_v11 = vadd.f32 1.0, %v9572_v2  ;;  %v2093_v27 = vmul.f32 %v2085_v9, %v2061_v17  ;;  %v9173_v9 = vld [vmem:[#allocation8 + $0x138] ss:$12 sps:$4 sm:$0xff]   ;;  %v9187_v17 = vld [vmem:[#allocation8 + $0xf4] ss:$12 sps:$4 sm:$0xff]  }
 0x937   : > { %v9576_v12 = vpop.eup %9575  ;;  %v2087_v16 = vadd.f32 1.0, %v9574_v6  ;;  %v2094_v18 = vmul.f32 %v2086_v5, %v2062_v10  ;;  %v9169_v5 = vld [vmem:[#allocation8 + $0x150] ss:$12 sps:$4 sm:$0xff]   ;;  %v9172_v6 = vld [vmem:[#allocation8 + $0x158] ss:$12 sps:$4 sm:$0xff]  }
 0x938   : > { %v2089_v20 = vadd.f32 1.0, %v9576_v12  ;;  %v2096_v23 = vmul.f32 %v2088_v11, %v2064_v14  ;;  %v9176_v10 = vld [vmem:[#allocation8 + $0x140] ss:$12 sps:$4 sm:$0xff]   ;;  %v9179_v12 = vld [vmem:[#allocation8 + $0x124] ss:$12 sps:$4 sm:$0xff]  }
 0x939   : > { %v2095_v24 = vmul.f32 %v2087_v16, %v2063_v15  ;;  %v2098_v31 = vpack.c.bf16 %v2094_v18, %v2090_v26  ;;  %v9177_v11 = vld [vmem:[#allocation8 + $0x120] ss:$12 sps:$4 sm:$0xff]   ;;  %v9181_v15 = vld [vmem:[#allocation8 + $0x108] ss:$12 sps:$4 sm:$0xff]   ;;  %v9184_v16 = vld [vmem:[#allocation8 + $0x110] ss:$12 sps:$4 sm:$0xff]  }
 0x93a   : > { %v2097_v28 = vmul.f32 %v2089_v20, %v2065_v19  ;;  %v2100_v34 = vpack.c.bf16 %v2096_v23, %v2092_v29  ;;  %v9183_v14 = vld [vmem:[#allocation8 + $0x10c] ss:$12 sps:$4 sm:$0xff]   ;;  %v9185_v18 = vld [vmem:[#allocation8 + $0xf0] ss:$12 sps:$4 sm:$0xff]   ;;  %v9196_v26 = vld [vmem:[#allocation8 + $0xc8] ss:$12 sps:$4 sm:$0xff]  }
 0x93b   : > { %v2099_v30 = vpack.c.bf16 %v2095_v24, %v2091_v22  ;;  %v9188_v19 = vld [vmem:[#allocation8 + $0xf8] ss:$12 sps:$4 sm:$0xff]   ;;  %v9191_v20 = vld [vmem:[#allocation8 + $0xdc] ss:$12 sps:$4 sm:$0xff]   ;;  %v9192_v22 = vld [vmem:[#allocation8 + $0xe0] ss:$12 sps:$4 sm:$0xff]  }
 0x93c   : > { %v2101_v32 = vpack.c.bf16 %v2097_v28, %v2093_v27  ;;  %v9195_v23 = vld [vmem:[#allocation8 + $0xc4] ss:$12 sps:$4 sm:$0xff]   ;;  %v9193_v24 = vld [vmem:[#allocation8 + $0xc0] ss:$12 sps:$4 sm:$0xff]  }
 0x93d   : > { %2397 = vmatprep.mubr.bf16.mxu1 %v2099_v30 }
 0x93e   : > { %2438 = vmatprep.mubr.bf16.mxu0 %v2101_v32  ;;  %2398 = vmatmul.mubr.bf16.vlgmr.msra.gmra.mxu1 %v2098_v31 }
 0x93f   : > { %2439 = vmatmul.mubr.bf16.vlgmr.msra.gmra.mxu0 %v2100_v34  ;;  %2701 = vmatprep.mubr.bf16.mxu1 %v10178_v42 }
 0x940   : > { %8615 = vmatprep.mubr.msk.bf16.mxu0 %vm10177_vm0, %v10176_v0  ;;  %8600 = vmatpush3.bf16.msra.mxu0 %v9168_v62 }
 0x941   : > { %2670 = vmatpush1.bf16.msra.mxu1 %v9165_v59  ;;  %8601 = vmatprep.subr.bf16.mxu0 %v10176_v0 }
 0x942   : > { %2671 = vmatprep.subr.bf16.mxu1 %v9171_v4 }
 0x944   : > { %8602 = vmatpush3.bf16.msra.mxu0 %v9172_v6 }
 0x945   : > { %2672 = vmatpush1.bf16.msra.mxu1 %v9169_v5  ;;  %8603 = vmatprep.subr.bf16.mxu0 %v10176_v0 }
 0x946   : > { %2673 = vmatprep.subr.bf16.mxu1 %v9175_v7 }
 0x948   : > { %8604 = vmatpush3.bf16.msra.mxu0 %v9176_v10 }
 0x949   : > { %2674 = vmatpush1.bf16.msra.mxu1 %v9173_v9  ;;  %8605 = vmatprep.subr.bf16.mxu0 %v10176_v0 }
 0x94a   : > { %2675 = vmatprep.subr.bf16.mxu1 %v9179_v12 }
 0x94c   : > { %8606 = vmatpush3.bf16.msra.mxu0 %v9180_v13 }
 0x94d   : > { %2676 = vmatpush1.bf16.msra.mxu1 %v9177_v11  ;;  %8607 = vmatprep.subr.bf16.mxu0 %v10176_v0 }
 0x94e   : > { %2677 = vmatprep.subr.bf16.mxu1 %v9183_v14 }
 0x950   : > { %8608 = vmatpush3.bf16.msra.mxu0 %v9184_v16 }
 0x951   : > { %2678 = vmatpush1.bf16.msra.mxu1 %v9181_v15  ;;  %8609 = vmatprep.subr.bf16.mxu0 %v10176_v0 }
 0x952   : > { %2679 = vmatprep.subr.bf16.mxu1 %v9187_v17 }
 0x954   : > { %8610 = vmatpush3.bf16.msra.mxu0 %v9188_v19 }
 0x955   : > { %2680 = vmatpush1.bf16.msra.mxu1 %v9185_v18  ;;  %8611 = vmatprep.subr.bf16.mxu0 %v10176_v0 }
 0x956   : > { %2681 = vmatprep.subr.bf16.mxu1 %v9191_v20 }
 0x958   : > { %8612 = vmatpush3.bf16.msra.mxu0 %v9192_v22 }
 0x959   : > { %2682 = vmatpush1.bf16.msra.mxu1 %v9189_v21  ;;  %8613 = vmatprep.subr.bf16.mxu0 %v10176_v0 }
 0x95a   : > { %2683 = vmatprep.subr.bf16.mxu1 %v9195_v23 }
 0x95c   : > { %8614 = vmatpush3.bf16.msra.mxu0 %v9196_v26 }
 0x95d   : > { %2684 = vmatpush1.bf16.msra.mxu1 %v9193_v24  ;;  %8643 = vmatprep.subr.bf16.mxu0 %v10176_v0 }
 0x95e   : > { %8619 = vmatprep.subr.bf16.mxu1 %v10176_v0 }
 0x9fe   : > { %v8229_v33 = vpop.f32.mrf.mxu1 }
 0x9ff   : > { %v8251_v35 = vpop.f32.mrf.mxu0 }
 0xa00   : > { %v8230_v37 = vpop.f32.mrf.mxu1 }
 0xa01   : > { %v8231_v38 = vadd.f32 %v8230_v37, %v8229_v33  ;;  %v8252_v39 = vpop.f32.mrf.mxu0 }
 0xa02   : > { %v8232_v52 = vpop.f32.mrf.mxu1  ;;  %v8253_v41 = vadd.f32 %v8252_v39, %v8251_v35  ;;  %v7825_v35 = vld [vmem:[#allocation16] ss:$0 sm:$0xff]  ;;  %v7826_v39 = vld [vmem:[#allocation17] ss:$0 sm:$0xff] }
 0xa03   : > { %v2400_v40 = vadd.f32 %v8231_v38, %v7792_v36  ;;  %v8254_v43 = vpop.f32.mrf.mxu0 }
 0xa04   : > { %v8233_v44 = vpop.f32.mrf.mxu1 }
 0xa05   : > { %v2441_v45 = vadd.f32 %v8253_v41, %v2400_v40  ;;  %v8234_v8 = vadd.f32 %v8233_v44, %v8232_v52  ;;  %v8255_v46 = vpop.f32.mrf.mxu0  ;;  %v2524_v44 = vld [vmem:[#allocation10 + $0x3] sm:$0x7] }
 0xa06   : > { %v8256_v54 = vadd.f32 %v8255_v46, %v8254_v43  ;;  %v2529_v46 = vrot.slane %v2524_v44, %v10575_v61 }
 0xa07   : > { %v2403_v51 = vadd.f32 %v8234_v8, %v7792_v36  ;;  %v2447_v56 = vadd.f32 %v2441_v45, %v10673_v49 }
 0xa09   : > { %v2444_v57 = vadd.f32 %v8256_v54, %v2403_v51  ;;  %2451 = vadd.xlane.f32.xlu1 %v2447_v56  ;;  %v2537_v51 = vrot.slane %v2524_v44, %v10568_v53 }
 0xa0b   : > { %v2448_v58 = vadd.f32 %v2444_v57, %v10675_v50  ;;  %v2533_v57 = vrot.slane %v2524_v44, %v10571_v55 }
 0xa0d   : > { %2453 = vadd.xlane.f32.xlu0 %v2448_v58 }
 0xa92   : > { %v2452_v63 = vpop.xlane.xlu1 %2451 }
 0xa93   : > { %v2455_v47 = vmul.f32 0.0078125, %v2452_v63 }
 0xa95   : > { %v10699_v1 = vsub.f32 %v2447_v56, %v2455_v47 }
 0xa96   : > { %v2454_v2 = vpop.xlane.xlu0 %2453 }
 0xa97   : > { %v2456_v48 = vmul.f32 0.0078125, %v2454_v2  ;;  %v2459_v49 = vmul.f32 %v10699_v1, %v10699_v1 }
 0xa99   : > { %2461 = vadd.xlane.f32.xlu1 %v2459_v49  ;;  %v10703_v50 = vsub.f32 %v2448_v58, %v2456_v48 }
 0xa9b   : > { %v2460_v3 = vmul.f32 %v10703_v50, %v10703_v50 }
 0xa9d   : > { %2463 = vadd.xlane.f32.xlu0 %v2460_v3 }
 0xb22   : > { %v2462_v27 = vpop.xlane.xlu1 %2461 }
 0xb23   : > { %v2465_v28 = vmul.f32 0.0078125, %v2462_v27 }
 0xb25   : > { %v2467_v29 = vadd.f32 1e-05, %v2465_v28 }
 0xb26   : > { %v2464_v30 = vpop.xlane.xlu0 %2463 }
 0xb27   : > { %9577 = vrsqrt.f32 %v2467_v29  ;;  %v2466_v31 = vmul.f32 0.0078125, %v2464_v30 }
 0xb29   : > { %v2468_v32 = vadd.f32 1e-05, %v2466_v31 }
 0xb2b   : > { %9579 = vrsqrt.f32 %v2468_v32 }
 0xb34   : > { %v9578_v34 = vpop.eup %9577 }
 0xb35   : > { %v2471_v33 = vmul.f32 %v9578_v34, %v10699_v1 }
 0xb37   : > { %v2479_v38 = vmul.f32 %v7825_v35, %v2471_v33 }
 0xb38   : > { %v9580_v36 = vpop.eup %9579 }
 0xb39   : > { %v2472_v37 = vmul.f32 %v9580_v36, %v10703_v50  ;;  %v10717_v40 = vadd.f32 %v7826_v39, %v2479_v38 }
 0xb3b   : > { %v2480_v52 = vmul.f32 %v7825_v35, %v2472_v37 }
 0xb3d   : > { %v10719_v41 = vadd.f32 %v7826_v39, %v2480_v52 }
 0xb3f   : > { %v2489_v43 = vpack.c.bf16 %v10719_v41, %v10717_v40 }
 0xb41   : > { %2702 = vmatmul.mubr.bf16.vlgmr.msra.gmra.mxu1 %v2489_v43  ;;  %8616 = vmatmul.mubr.bf16.vlgmr.msra.gmra.mxu0 %v2489_v43 }
 0xb42   : > { %8621 = vmatprep.mubr.msk.bf16.mxu1 %vm10177_vm0, %v10176_v0  ;;  %8645 = vmatprep.mubr.msk.bf16.mxu0 %vm10177_vm0, %v10176_v0 }
 0xc01   : > { %v2703_v45 = vpop.f32.mrf.mxu1  ;;  %v2746_v8 = vpop.f32.mrf.mxu0 }
 0xc02   : > { %v2704_v60 = vadd.f32 %v2703_v45, %v2529_v46  ;;  %v2747_v62 = vadd.f32 %v2746_v8, %v2537_v51 }
 0xc03   : > { %v2705_v54 = vpop.f32.mrf.mxu1  ;;  %v8617_v56 = vpop.f32.mrf.mxu0 }
 0xc04   : > { %v2706_v48 = vadd.f32 %v2705_v54, %v2533_v57 }
 0xc05   : > { %v2707_v58 = vpop.f32.mrf.mxu1  ;;  %v2749_v59 = vpop.f32.mrf.mxu0 }
 0xc06   : > { %v2708_v63 = vadd.f32 %v2707_v58, %v2529_v46  ;;  %v2750_v47 = vadd.f32 %v2749_v59, %v2537_v51 }
 0xc07   : > { %v2709_v1 = vpop.f32.mrf.mxu1  ;;  %v8618_v2 = vpop.f32.mrf.mxu0 }
 0xc08   : > { %v2753_v49 = vpack.c.bf16 %v2708_v63, %v2704_v60  ;;  %v10730_v50 = vpack.c.bf16 %v2750_v47, %v2747_v62  ;;  %v2710_v3 = vadd.f32 %v2709_v1, %v2533_v57 }
 0xc0a   : > { %v2754_v4 = vpack.c.bf16 %v2710_v3, %v2706_v48  ;;  %8644 = vmatpush3.bf16.msra.mxu0 %v10730_v50  ;;  %2757 = vrot.lane.b32.xlu0 %v2753_v49, %s10180_s20 }
 0xc0b   : > { %8655 = vmatprep.subr.bf16.mxu0 %v10176_v0 }
 0xc0c   : > { %2764 = vrot.lane.b32.xlu1 %v2754_v4, %s10180_s20  ;;  %v2784_v5 = vsel %vm1121_vm2, %v2754_v4, 0 }
 0xc0d   : > { %8620 = vmatpush3.bf16.xpose.msra.mxu1 %v2784_v5 }
 0xc0e   : > { %2768 = vrot.lane.b32.xlu0 %v2754_v4, %s10181_s26  ;;  %8625 = vmatprep.subr.bf16.mxu1 %v10176_v0 }
 0xc10   : > { %2766 = vrot.lane.b32.xlu1 %v2754_v4, %s10179_s28 }
 0xc14   : > { %2759 = vrot.lane.b32.xlu1 %v2753_v49, %s10179_s28  ;;  %8622 = vmatmul.mubr.msk.bf16.vlgmr.msra.gmra.mxu1 %vm1121_vm2, %v2753_v49 }
 0xc15   : > { %8627 = vmatprep.mubr.msk.bf16.mxu1 %vm10177_vm0, %v10176_v0 }
 0xc18   : > { %2761 = vrot.lane.b32.xlu1 %v2753_v49, %s10181_s26 }
 0xc7c   : > { %v2758_v10 = vpop.permute.xlu0 %2757 }
 0xc7e   : > { %v2765_v6 = vpop.permute.xlu1 %2764 }
 0xc7f   : > { %v2831_v7 = vsel %vm1121_vm2, %v2765_v6, 0 }
 0xc80   : > { %8626 = vmatpush3.bf16.xpose.msra.mxu1 %v2831_v7  ;;  %v2769_v12 = vpop.permute.xlu0 %2768 }
 0xc81   : > { %8631 = vmatprep.subr.bf16.mxu1 %v10176_v0  ;;  %v2925_v14 = vsel %vm1121_vm2, %v2769_v12, 0 }
 0xc82   : > { %v2767_v9 = vpop.permute.xlu1 %2766 }
 0xc83   : > { %v2878_v11 = vsel %vm1121_vm2, %v2767_v9, 0 }
 0xc86   : > { %v2760_v13 = vpop.permute.xlu1 %2759 }
 0xc87   : > { %8628 = vmatmul.mubr.msk.bf16.vlgmr.msra.gmra.mxu1 %vm1121_vm2, %v2758_v10 }
 0xc88   : > { %8632 = vmatpush3.bf16.xpose.msra.mxu1 %v2878_v11  ;;  %8633 = vmatprep.mubr.msk.bf16.mxu1 %vm10177_vm0, %v10176_v0 }
 0xc89   : > { %8637 = vmatprep.subr.bf16.mxu1 %v10176_v0 }
 0xc8a   : > { %v2762_v15 = vpop.permute.xlu1 %2761 }
 0xc8f   : > { %8634 = vmatmul.mubr.msk.bf16.vlgmr.msra.gmra.mxu1 %vm1121_vm2, %v2760_v13 }
 0xc90   : > { %8638 = vmatpush3.bf16.xpose.msra.mxu1 %v2925_v14  ;;  %8639 = vmatprep.mubr.msk.bf16.mxu1 %vm10177_vm0, %v10176_v0 }
 0xc91   : > { %8649 = vmatprep.subr.bf16.mxu1 %v10176_v0 }
 0xc97   : > { %8640 = vmatmul.mubr.msk.bf16.vlgmr.msra.gmra.mxu1 %vm1121_vm2, %v2762_v15 }
 0xc98   : > { %8651 = vmatprep.mubr.msk.bf16.mxu1 %vm10177_vm0, %v10176_v0 }
 0xcd4   : > { %v2820_v16 = vpop.f32.mrf.mxu1 }
 0xcd5   : > { %v2968_v17 = vsel %vm1310_vm3, %v2820_v16, -inf }
 0xcd6   : > { %2969 = vmax.xlane.f32.xlu0 %v2968_v17  ;;  %v8623_v18 = vpop.f32.mrf.mxu1 }
 0xcd8   : > { %v2823_v19 = vpop.f32.mrf.mxu1 }
 0xcd9   : > { %v2971_v20 = vsel %vm1310_vm3, %v2823_v19, -inf }
 0xcda   : > { %2972 = vmax.xlane.f32.xlu1 %v2971_v20  ;;  %v8624_v21 = vpop.f32.mrf.mxu1 }
 0xd47   : > { %v2867_v22 = vpop.f32.mrf.mxu1 }
 0xd48   : > { %v2974_v23 = vsel %vm1310_vm3, %v2867_v22, -inf }
 0xd49   : > { %2975 = vmax.xlane.f32.xlu0 %v2974_v23  ;;  %v8629_v24 = vpop.f32.mrf.mxu1 }
 0xd4b   : > { %v2870_v26 = vpop.f32.mrf.mxu1 }
 0xd4c   : > { %v2977_v27 = vsel %vm1310_vm3, %v2870_v26, -inf }
 0xd4d   : > { %2978 = vmax.xlane.f32.xlu0 %v2977_v27  ;;  %v8630_v28 = vpop.f32.mrf.mxu1 }
 0xd4f   : > { %v2914_v29 = vpop.f32.mrf.mxu1 }
 0xd50   : > { %v2980_v30 = vsel %vm1310_vm3, %v2914_v29, -inf }
 0xd51   : > { %2981 = vmax.xlane.f32.xlu1 %v2980_v30  ;;  %v8635_v31 = vpop.f32.mrf.mxu1 }
 0xd53   : > { %v2917_v32 = vpop.f32.mrf.mxu1 }
 0xd54   : > { %v2983_v34 = vsel %vm1310_vm3, %v2917_v32, -inf }
 0xd55   : > { %2984 = vmax.xlane.f32.xlu0 %v2983_v34  ;;  %v8636_v33 = vpop.f32.mrf.mxu1 }
 0xd57   : > { %v2961_v35 = vpop.f32.mrf.mxu1 }
 0xd58   : > { %v2986_v36 = vsel %vm1310_vm3, %v2961_v35, -inf }
 0xd59   : > { %2987 = vmax.xlane.f32.xlu1 %v2986_v36  ;;  %v8641_v37 = vpop.f32.mrf.mxu1 }
 0xd5b   : > { %v2964_v38 = vpop.f32.mrf.mxu1 }
 0xd5c   : > { %v2989_v39 = vsel %vm1310_vm3, %v2964_v38, -inf }
 0xd5d   : > { %2990 = vmax.xlane.f32.xlu0 %v2989_v39  ;;  %v8642_v52 = vpop.f32.mrf.mxu1 }
 0xd5f   : > { %v2970_v8 = vpop.xlane.xlu0 %2969 }
 0xd60   : > { %v2992_v51 = vsub.f32 %v2820_v16, %v2970_v8 }
 0xd62   : > { %v3000_v56 = vmul.f32 1.442695, %v2992_v51 }
 0xd63   : > { %v2973_v43 = vpop.xlane.xlu1 %2972 }
 0xd64   : > { %v2993_v44 = vsub.f32 %v2823_v19, %v2973_v43 }
 0xd66   : > { %v3002_v45 = vmul.f32 1.442695, %v2993_v44 }
 0xd68   : > { %9581 = vpow2.f32 %v3002_v45 }
 0xd69   : > { %9583 = vpow2.f32 %v3000_v56 }
 0xd6a   : > { %2771 = vrot.lane.b32.xlu1 %v10730_v50, %s10180_s20 }
 0xd75   : > { %v10770_v46 = vpop.eup %9581 }
 0xd76   : > { %v3019_v54 = vsel %vm1310_vm3, %v10770_v46, 0.0  ;;  %v9584_v57 = vpop.eup %9583 }
 0xd77   : > { %3020 = vadd.xlane.f32.xlu0 %v3019_v54  ;;  %v3016_v58 = vsel %vm1310_vm3, %v9584_v57, 0.0 }
 0xd8e   : > { %3017 = vadd.xlane.f32.xlu1 %v3016_v58 }
 0xdd2   : > { %v2976_v59 = vpop.xlane.xlu0 %2975 }
 0xdd3   : > { %v2994_v60 = vsub.f32 %v2867_v22, %v2976_v59 }
 0xdd5   : > { %v3004_v62 = vmul.f32 1.442695, %v2994_v60 }
 0xdd6   : > { %v2979_v63 = vpop.xlane.xlu0 %2978 }
 0xdd7   : > { %9585 = vpow2.f32 %v3004_v62  ;;  %v2995_v47 = vsub.f32 %v2870_v26, %v2979_v63 }
 0xdd9   : > { %v3006_v1 = vmul.f32 1.442695, %v2995_v47 }
 0xdda   : > { %v2982_v2 = vpop.xlane.xlu1 %2981 }
 0xddb   : > { %9587 = vpow2.f32 %v3006_v1  ;;  %v2996_v48 = vsub.f32 %v2914_v29, %v2982_v2  ;;  %v9197_v1 = vld [vmem:[#allocation11 + $0x78] sm:$0xff]   ;;  %v9198_v2 = vld [vmem:[#allocation11 + $0x70] sm:$0xff]  }
 0xddd   : > { %v3008_v49 = vmul.f32 1.442695, %v2996_v48  ;;  %v9199_v48 = vld [vmem:[#allocation11 + $0x68] sm:$0xff]  }
 0xdde   : > { %v2985_v3 = vpop.xlane.xlu0 %2984 }
 0xddf   : > { %9589 = vpow2.f32 %v3008_v49  ;;  %v2997_v4 = vsub.f32 %v2917_v32, %v2985_v3  ;;  %v9200_v49 = vld [vmem:[#allocation11 + $0x60] sm:$0xff]  }
 0xde1   : > { %v3010_v5 = vmul.f32 1.442695, %v2997_v4 }
 0xde2   : > { %v2988_v6 = vpop.xlane.xlu1 %2987 }
 0xde3   : > { %9591 = vpow2.f32 %v3010_v5  ;;  %v2998_v7 = vsub.f32 %v2961_v35, %v2988_v6 }
 0xde4   : > { %v9586_v9 = vpop.eup %9585 }
 0xde5   : > { %v3012_v10 = vmul.f32 1.442695, %v2998_v7  ;;  %v3022_v11 = vsel %vm1310_vm3, %v9586_v9, 0.0 }
 0xde6   : > { %3023 = vadd.xlane.f32.xlu1 %v3022_v11  ;;  %v2772_v12 = vpop.permute.xlu1 %2771  ;;  %v2991_v13 = vpop.xlane.xlu0 %2990 }
 0xde7   : > { %9593 = vpow2.f32 %v3012_v10  ;;  %v2999_v14 = vsub.f32 %v2964_v38, %v2991_v13  ;;  %8650 = vmatpush3.bf16.msra.mxu1 %v2772_v12  ;;  %v9202_v10 = vld [vmem:[#allocation11 + $0x50] sm:$0xff]   ;;  %v9203_v13 = vld [vmem:[#allocation11 + $0x48] sm:$0xff]  }
 0xde8   : > { %v9588_v15 = vpop.eup %9587  ;;  %8661 = vmatprep.subr.bf16.mxu1 %v10176_v0 }
 0xde9   : > { %v3014_v16 = vmul.f32 1.442695, %v2999_v14  ;;  %v3025_v17 = vsel %vm1310_vm3, %v9588_v15, 0.0 }
 0xdea   : > { %3026 = vadd.xlane.f32.xlu0 %v3025_v17 }
 0xdeb   : > { %9595 = vpow2.f32 %v3014_v16 }
 0xdec   : > { %v9590_v18 = vpop.eup %9589 }
 0xded   : > { %v3028_v19 = vsel %vm1310_vm3, %v9590_v18, 0.0 }
 0xdee   : > { %3029 = vadd.xlane.f32.xlu1 %v3028_v19 }
 0xdf0   : > { %v9592_v20 = vpop.eup %9591 }
 0xdf1   : > { %v3031_v21 = vsel %vm1310_vm3, %v9592_v20, 0.0 }
 0xdf2   : > { %3032 = vadd.xlane.f32.xlu0 %v3031_v21 }
 0xdf4   : > { %v9594_v22 = vpop.eup %9593 }
 0xdf5   : > { %v3034_v23 = vsel %vm1310_vm3, %v9594_v22, 0.0 }
 0xdf6   : > { %3035 = vadd.xlane.f32.xlu1 %v3034_v23 }
 0xdf8   : > { %v9596_v24 = vpop.eup %9595 }
 0xdf9   : > { %v3037_v26 = vsel %vm1310_vm3, %v9596_v24, 0.0 }
 0xdfa   : > { %3038 = vadd.xlane.f32.xlu0 %v3037_v26 }
 0xe00   : > { %v3021_v27 = vpop.xlane.xlu0 %3020 }
 0xe01   : > { %9597 = vrcp.f32 %v3021_v27 }
 0xe07   : > { %2777 = vrot.lane.b32.xlu1 %v10730_v50, %s10181_s26 }
 0xe0e   : > { %v9598_v29 = vpop.eup %9597 }
 0xe0f   : > { %v3049_v32 = vmul.f32 %v9598_v29, %v10770_v46 }
 0xe10   : > { %2774 = vrot.lane.b32.xlu0 %v10730_v50, %s10179_s28 }
 0xe17   : > { %v3018_v28 = vpop.xlane.xlu1 %3017 }
 0xe18   : > { %9599 = vrcp.f32 %v3018_v28 }
 0xe25   : > { %v9600_v30 = vpop.eup %9599 }
 0xe26   : > { %v3048_v31 = vmul.f32 %v9600_v30, %v9584_v57 }
 0xe28   : > { %v3056_v34 = vpack.c.bf16 %v3049_v32, %v3048_v31 }
 0xe2a   : > { %8646 = vmatmul.mubr.msk.bf16.vlgmr.msra.gmra.mxu0 %vm1310_vm3, %v3056_v34 }
 0xe2b   : > { %8657 = vmatprep.mubr.msk.bf16.mxu0 %vm10177_vm0, %v10176_v0 }
 0xe6f   : > { %v3024_v33 = vpop.xlane.xlu1 %3023 }
 0xe70   : > { %9601 = vrcp.f32 %v3024_v33 }
 0xe73   : > { %v3027_v35 = vpop.xlane.xlu0 %3026 }
 0xe74   : > { %9603 = vrcp.f32 %v3027_v35  ;;  %v7860_v35 = vld [vmem:[%s11193_s7 + $0x1] ss:$0 sm:$0xff] }
 0xe77   : > { %v3030_v50 = vpop.xlane.xlu1 %3029 }
 0xe78   : > { %9605 = vrcp.f32 %v3030_v50 }
 0xe7b   : > { %v3033_v36 = vpop.xlane.xlu0 %3032 }
 0xe7c   : > { %9607 = vrcp.f32 %v3033_v36 }
 0xe7d   : > { %v9602_v37 = vpop.eup %9601 }
 0xe7e   : > { %v3050_v52 = vmul.f32 %v9602_v37, %v9586_v9  ;;  %v9201_v9 = vld [vmem:[#allocation11 + $0x58] sm:$0xff]  }
 0xe7f   : > { %v3036_v38 = vpop.xlane.xlu1 %3035 }
 0xe80   : > { %9609 = vrcp.f32 %v3036_v38 }
 0xe81   : > { %v9604_v39 = vpop.eup %9603 }
 0xe82   : > { %v3051_v43 = vmul.f32 %v9604_v39, %v9588_v15  ;;  %v9204_v15 = vld [vmem:[#allocation11 + $0x40] sm:$0xff]  }
 0xe83   : > { %v3039_v44 = vpop.xlane.xlu0 %3038  ;;  %v2778_v8 = vpop.permute.xlu1 %2777 }
 0xe84   : > { %9611 = vrcp.f32 %v3039_v44  ;;  %v3057_v45 = vpack.c.bf16 %v3051_v43, %v3050_v52 }
 0xe85   : > { %v9606_v46 = vpop.eup %9605 }
 0xe86   : > { %8652 = vmatmul.mubr.msk.bf16.vlgmr.msra.gmra.mxu1 %vm1310_vm3, %v3057_v45  ;;  %v3052_v56 = vmul.f32 %v9606_v46, %v9590_v18  ;;  %v9205_v45 = vld [vmem:[#allocation19 + $0x1e0] ss:$16 sps:$4 sm:$0xff]   ;;  %v9208_v46 = vld [vmem:[#allocation19 + $0x1e8] ss:$16 sps:$4 sm:$0xff]  }
 0xe87   : > { %8662 = vmatpush3.bf16.msra.mxu1 %v2778_v8  ;;  %v2775_v51 = vpop.permute.xlu0 %2774  ;;  %8663 = vmatprep.mubr.msk.bf16.mxu1 %vm10177_vm0, %v10176_v0  ;;  %v9207_v8 = vld [vmem:[#allocation19 + $0x1e4] ss:$16 sps:$4 sm:$0xff]  }
 0xe88   : > { %8656 = vmatpush3.bf16.msra.mxu0 %v2775_v51  ;;  %v9210_v51 = vld [vmem:[#allocation19 + $0x1ec] ss:$16 sps:$4 sm:$0xff]   ;;  %3632 = vmatprep.subr.bf16.mxu1 %v9207_v8 }
 0xe89   : > { %v9608_v54 = vpop.eup %9607  ;;  %8667 = vmatprep.subr.bf16.mxu0 %v10176_v0  ;;  %v9255_v8 = vld [vmem:[#allocation20 + $0x138] sm:$0xff]  }
 0xe8a   : > { %v3053_v57 = vmul.f32 %v9608_v54, %v9592_v20 }
 0xe8c   : > { %v3058_v58 = vpack.c.bf16 %v3053_v57, %v3052_v56 }
 0xe8d   : > { %v9610_v59 = vpop.eup %9609 }
 0xe8e   : > { %8658 = vmatmul.mubr.msk.bf16.vlgmr.msra.gmra.mxu0 %vm1310_vm3, %v3058_v58  ;;  %v3054_v62 = vmul.f32 %v9610_v59, %v9594_v22 }
 0xe8f   : > { %8683 = vmatprep.mubr.msk.bf16.mxu0 %vm10177_vm0, %v10176_v0  ;;  %8668 = vmatpush3.bf16.msra.mxu0 %v9197_v1  ;;  %v9214_v1 = vld [vmem:[#allocation19 + $0x1c8] ss:$16 sps:$4 sm:$0xff]  }
 0xe90   : > { %8669 = vmatprep.subr.bf16.mxu0 %v10176_v0 }
 0xe91   : > { %v9612_v60 = vpop.eup %9611 }
 0xe92   : > { %v3055_v63 = vmul.f32 %v9612_v60, %v9596_v24 }
 0xe93   : > { %8670 = vmatpush3.bf16.msra.mxu0 %v9198_v2  ;;  %v9219_v2 = vld [vmem:[#allocation19 + $0x1a4] ss:$16 sps:$4 sm:$0xff]  }
 0xe94   : > { %v3059_v47 = vpack.c.bf16 %v3055_v63, %v3054_v62  ;;  %8671 = vmatprep.subr.bf16.mxu0 %v10176_v0  ;;  %v9213_v62 = vld [vmem:[#allocation19 + $0x1c4] ss:$16 sps:$4 sm:$0xff]   ;;  %v9216_v63 = vld [vmem:[#allocation19 + $0x1cc] ss:$16 sps:$4 sm:$0xff]  }
 0xe96   : > { %8664 = vmatmul.mubr.msk.bf16.vlgmr.msra.gmra.mxu1 %vm1310_vm3, %v3059_v47  ;;  %v9211_v47 = vld [vmem:[#allocation19 + $0x1c0] ss:$16 sps:$4 sm:$0xff]  }
 0xe97   : > { %3664 = vmatprep.mubr.bf16.mxu1 %v10178_v42  ;;  %8672 = vmatpush3.bf16.msra.mxu0 %v9199_v48  ;;  %v9222_v48 = vld [vmem:[#allocation19 + $0x1ac] ss:$16 sps:$4 sm:$0xff]  }
 0xe98   : > { %8673 = vmatprep.subr.bf16.mxu0 %v10176_v0  ;;  %3633 = vmatpush1.bf16.msra.mxu1 %v9205_v45  ;;  %v9254_v45 = vld [vmem:[#allocation20 + $0x1f8] sm:$0xff]  }
 0xe99   : > { %3634 = vmatprep.subr.bf16.mxu1 %v9213_v62  ;;  %v9266_v62 = vld [vmem:[#allocation20 + $0x1e0] sm:$0xff]  }
 0xe9b   : > { %8674 = vmatpush3.bf16.msra.mxu0 %v9200_v49  ;;  %v9217_v49 = vld [vmem:[#allocation19 + $0x1a0] ss:$16 sps:$4 sm:$0xff]  }
 0xe9c   : > { %8675 = vmatprep.subr.bf16.mxu0 %v10176_v0  ;;  %3635 = vmatpush1.bf16.msra.mxu1 %v9211_v47  ;;  %v9268_v47 = vld [vmem:[#allocation20 + $0x1a0] sm:$0xff]  }
 0xe9d   : > { %3636 = vmatprep.subr.bf16.mxu1 %v9219_v2  ;;  %v9270_v2 = vld [vmem:[#allocation20 + $0x1d8] sm:$0xff]  }
 0xe9f   : > { %8676 = vmatpush3.bf16.msra.mxu0 %v9201_v9  ;;  %v9231_v9 = vld [vmem:[#allocation19 + $0x164] ss:$16 sps:$4 sm:$0xff]  }
 0xea0   : > { %8677 = vmatprep.subr.bf16.mxu0 %v10176_v0  ;;  %3637 = vmatpush1.bf16.msra.mxu1 %v9217_v49  ;;  %v9272_v49 = vld [vmem:[#allocation20 + $0x198] sm:$0xff]  }
 0xea3   : > { %8678 = vmatpush3.bf16.msra.mxu0 %v9202_v10  ;;  %v9234_v10 = vld [vmem:[#allocation19 + $0x16c] ss:$16 sps:$4 sm:$0xff]  }
 0xea4   : > { %8679 = vmatprep.subr.bf16.mxu0 %v10176_v0 }
 0xea7   : > { %8680 = vmatpush3.bf16.msra.mxu0 %v9203_v13  ;;  %v9237_v13 = vld [vmem:[#allocation19 + $0x144] ss:$16 sps:$4 sm:$0xff]  }
 0xea8   : > { %8681 = vmatprep.subr.bf16.mxu0 %v10176_v0 }
 0xeab   : > { %8682 = vmatpush3.bf16.msra.mxu0 %v9204_v15  ;;  %v9235_v15 = vld [vmem:[#allocation19 + $0x140] ss:$16 sps:$4 sm:$0xff]  }
 0xeac   : > { %3675 = vmatprep.subr.bf16.mxu0 %v9210_v51  ;;  %v9257_v51 = vld [vmem:[#allocation20 + $0x170] sm:$0xff]  }
 0xeea   : > { %v3097_v3 = vpop.f32.mrf.mxu0 }
 0xeec   : > { %v8647_v4 = vpop.f32.mrf.mxu0 }
 0xeed   : > { %v9223_v4 = vld [vmem:[#allocation19 + $0x180] ss:$16 sps:$4 sm:$0xff]  }
 0xeee   : > { %v3100_v5 = vpop.f32.mrf.mxu0 }
 0xeef   : > { %v3236_v6 = vpack.c.bf16 %v3100_v5, %v3097_v3  ;;  %v9220_v3 = vld [vmem:[#allocation19 + $0x1a8] ss:$16 sps:$4 sm:$0xff]   ;;  %v9225_v5 = vld [vmem:[#allocation19 + $0x184] ss:$16 sps:$4 sm:$0xff]  }
 0xef0   : > { %v8648_v7 = vpop.f32.mrf.mxu0  ;;  %3638 = vmatprep.subr.bf16.mxu1 %v9225_v5  ;;  %v9275_v5 = vld [vmem:[#allocation20 + $0x110] sm:$0xff]  }
 0xef1   : > { %v9228_v7 = vld [vmem:[#allocation19 + $0x18c] ss:$16 sps:$4 sm:$0xff]   ;;  %3639 = vmatpush1.bf16.msra.mxu1 %v9223_v4  ;;  %v9274_v4 = vld [vmem:[#allocation20 + $0x1d0] sm:$0xff]  }
 0xef2   : > { %3640 = vmatprep.subr.bf16.mxu1 %v9231_v9  ;;  %v9278_v9 = vld [vmem:[#allocation20 + $0x1c8] sm:$0xff]  }
 0xf46   : > { %v3141_v11 = vpop.f32.mrf.mxu1 }
 0xf48   : > { %v8653_v12 = vpop.f32.mrf.mxu1 }
 0xf49   : > { %v9232_v12 = vld [vmem:[#allocation19 + $0x168] ss:$16 sps:$4 sm:$0xff]  }
 0xf4a   : > { %v3144_v14 = vpop.f32.mrf.mxu1 }
 0xf4b   : > { %v3237_v16 = vpack.c.bf16 %v3144_v14, %v3141_v11  ;;  %v9229_v11 = vld [vmem:[#allocation19 + $0x160] ss:$16 sps:$4 sm:$0xff]   ;;  %v9240_v14 = vld [vmem:[#allocation19 + $0x14c] ss:$16 sps:$4 sm:$0xff]  }
 0xf4c   : > { %v8654_v17 = vpop.f32.mrf.mxu1  ;;  %3641 = vmatpush1.bf16.msra.mxu1 %v9229_v11  ;;  %v9280_v11 = vld [vmem:[#allocation20 + $0x188] sm:$0xff]  }
 0xf4d   : > { %3241 = vrot.lane.b32.xlu1 %v3237_v16, %s10181_s26  ;;  %v9238_v16 = vld [vmem:[#allocation19 + $0x148] ss:$16 sps:$4 sm:$0xff]   ;;  %3642 = vmatprep.subr.bf16.mxu1 %v9237_v13  ;;  %v9243_v17 = vld [vmem:[#allocation19 + $0x124] ss:$16 sps:$4 sm:$0xff]  }
 0xf4e   : > { %v3185_v18 = vpop.f32.mrf.mxu0  ;;  %v9282_v13 = vld [vmem:[#allocation20 + $0x1c0] sm:$0xff]  }
 0xf50   : > { %v8659_v19 = vpop.f32.mrf.mxu0  ;;  %3643 = vmatpush1.bf16.msra.mxu1 %v9235_v15  ;;  %v9284_v15 = vld [vmem:[#allocation20 + $0x180] sm:$0xff]  }
 0xf51   : > { %v9241_v19 = vld [vmem:[#allocation19 + $0x120] ss:$16 sps:$4 sm:$0xff]   ;;  %3644 = vmatprep.subr.bf16.mxu1 %v9243_v17 }
 0xf52   : > { %v3188_v20 = vpop.f32.mrf.mxu0 }
 0xf53   : > { %v3238_v21 = vpack.c.bf16 %v3188_v20, %v3185_v18  ;;  %v9246_v18 = vld [vmem:[#allocation19 + $0x12c] ss:$16 sps:$4 sm:$0xff]   ;;  %v9244_v20 = vld [vmem:[#allocation19 + $0x128] ss:$16 sps:$4 sm:$0xff]  }
 0xf54   : > { %v8660_v22 = vpop.f32.mrf.mxu0  ;;  %3645 = vmatpush1.bf16.msra.mxu1 %v9241_v19 }
 0xf55   : > { %3244 = vrot.lane.b32.xlu0 %v3238_v21, %s10179_s28  ;;  %v9249_v21 = vld [vmem:[#allocation19 + $0x104] ss:$16 sps:$4 sm:$0xff]   ;;  %v9252_v22 = vld [vmem:[#allocation19 + $0x10c] ss:$16 sps:$4 sm:$0xff]  }
 0xf56   : > { %v3229_v23 = vpop.f32.mrf.mxu1  ;;  %3646 = vmatprep.subr.bf16.mxu1 %v9249_v21 }
 0xf58   : > { %v8665_v24 = vpop.f32.mrf.mxu1 }
 0xf59   : > { %v9250_v24 = vld [vmem:[#allocation19 + $0x108] ss:$16 sps:$4 sm:$0xff]  }
 0xf5a   : > { %v3232_v26 = vpop.f32.mrf.mxu1 }
 0xf5b   : > { %v3239_v27 = vpack.c.bf16 %v3232_v26, %v3229_v23  ;;  %v9247_v23 = vld [vmem:[#allocation19 + $0x100] ss:$16 sps:$4 sm:$0xff]  }
 0xf5c   : > { %v8666_v28 = vpop.f32.mrf.mxu1  ;;  %3647 = vmatpush1.bf16.msra.mxu1 %v9247_v23 }
 0xf5d   : > { %3247 = vrot.lane.b32.xlu1 %v3239_v27, %s10180_s20 }
 0xfbf   : > { %v3242_v29 = vpop.permute.xlu1 %3241 }
 0xfc0   : > { %v3251_v31 = vsel %vm1121_vm2, %v3236_v6, %v3242_v29  ;;  %v9226_v6 = vld [vmem:[#allocation19 + $0x188] ss:$16 sps:$4 sm:$0xff]  }
 0xfc7   : > { %v3245_v30 = vpop.permute.xlu0 %3244 }
 0xfc8   : > { %v3253_v32 = vsel %vm1595_vm4, %v3251_v31, %v3245_v30 }
 0xfcf   : > { %v3248_v34 = vpop.permute.xlu1 %3247 }
 0xfd0   : > { %v3255_v33 = vsel %vm1598_vm5, %v3253_v32, %v3248_v34 }
 0xfd1   : > { %8684 = vmatmul.mubr.bf16.vlgmr.msra.gmra.mxu0 %v3255_v33  ;;  %v7869_v33 = vld [vmem:[#allocation13 + $0x1] ss:$0 sm:$0xff] }
 0xfd2   : > { %3707 = vmatprep.mubr.bf16.mxu0 %v10178_v42  ;;  %3676 = vmatpush1.bf16.msra.mxu0 %v9208_v46  ;;  %v9256_v46 = vld [vmem:[#allocation20 + $0x1b8] sm:$0xff]  }
 0xfd3   : > { %3677 = vmatprep.subr.bf16.mxu0 %v9216_v63  ;;  %v9267_v63 = vld [vmem:[#allocation20 + $0x120] sm:$0xff]  }
 0xfd6   : > { %3678 = vmatpush1.bf16.msra.mxu0 %v9214_v1  ;;  %v9269_v1 = vld [vmem:[#allocation20 + $0x158] sm:$0xff]  }
 0xfd7   : > { %3679 = vmatprep.subr.bf16.mxu0 %v9222_v48  ;;  %v9271_v48 = vld [vmem:[#allocation20 + $0x118] sm:$0xff]  }
 0xfda   : > { %3680 = vmatpush1.bf16.msra.mxu0 %v9220_v3  ;;  %v9273_v3 = vld [vmem:[#allocation20 + $0x150] sm:$0xff]  }
 0xfdb   : > { %3681 = vmatprep.subr.bf16.mxu0 %v9228_v7  ;;  %v9277_v7 = vld [vmem:[#allocation20 + $0x148] sm:$0xff]  }
 0xfde   : > { %3682 = vmatpush1.bf16.msra.mxu0 %v9226_v6  ;;  %v9276_v6 = vld [vmem:[#allocation20 + $0x190] sm:$0xff]  }
 0xfdf   : > { %3683 = vmatprep.subr.bf16.mxu0 %v9234_v10  ;;  %v9279_v10 = vld [vmem:[#allocation20 + $0x108] sm:$0xff]  }
 0xfe2   : > { %3684 = vmatpush1.bf16.msra.mxu0 %v9232_v12  ;;  %v9281_v12 = vld [vmem:[#allocation20 + $0x140] sm:$0xff]  }
 0xfe3   : > { %3685 = vmatprep.subr.bf16.mxu0 %v9240_v14  ;;  %v9283_v14 = vld [vmem:[#allocation20 + $0x100] sm:$0xff]  }
 0xfe6   : > { %3686 = vmatpush1.bf16.msra.mxu0 %v9238_v16  ;;  %v7871_v16 = vld [vmem:[%s11199_s13 + $0x4] sm:$0xf] }
 0xfe7   : > { %3687 = vmatprep.subr.bf16.mxu0 %v9246_v18  ;;  %v3455_v17 = vrot.slane %v7871_v16, %v10575_v61  ;;  %v3463_v18 = vrot.slane %v7871_v16, %v10568_v53  ;;  %v3459_v21 = vrot.slane %v7871_v16, %v10571_v55 }
 0xfea   : > { %3688 = vmatpush1.bf16.msra.mxu0 %v9244_v20 }
 0xfeb   : > { %3689 = vmatprep.subr.bf16.mxu0 %v9252_v22  ;;  %v3467_v22 = vrot.slane %v7871_v16, %v10684_v25 }
 0xfee   : > { %3690 = vmatpush1.bf16.msra.mxu0 %v9250_v24 }
 0xfef   : > { %8313 = vmatprep.subr.bf16.mxu0 %v9254_v45 }
0x1091   : > { %v3364_v50 = vpop.f32.mrf.mxu0 }
0x1092   : > { %v3365_v36 = vadd.f32 %v7860_v35, %v3364_v50 }
0x1093   : > { %v8685_v37 = vpop.f32.mrf.mxu0 }
0x1094   : > { %v3371_v38 = vadd.f32 %v3365_v36, %v10717_v40  ;;  %v7870_v37 = vld [vmem:[#allocation14 + $0x1] ss:$0 sm:$0xff] }
0x1095   : > { %v3367_v39 = vpop.f32.mrf.mxu0 }
0x1096   : > { %v3368_v52 = vadd.f32 %v7860_v35, %v3367_v39  ;;  %3377 = vadd.xlane.f32.xlu0 %v3371_v38 }
0x1097   : > { %v8686_v43 = vpop.f32.mrf.mxu0 }
0x1098   : > { %v3372_v44 = vadd.f32 %v3368_v52, %v10719_v41 }
0x109a   : > { %3379 = vadd.xlane.f32.xlu1 %v3372_v44 }
0x111f   : > { %v3378_v54 = vpop.xlane.xlu0 %3377 }
0x1120   : > { %v3381_v56 = vmul.f32 0.0078125, %v3378_v54  ;;  %v9258_v54 = vld [vmem:[#allocation20 + $0x1f0] sm:$0xff]  }
0x1122   : > { %v10818_v57 = vsub.f32 %v3371_v38, %v3381_v56  ;;  %v9259_v56 = vld [vmem:[#allocation20 + $0x130] sm:$0xff]  }
0x1123   : > { %v3380_v40 = vpop.xlane.xlu1 %3379 }
0x1124   : > { %v3382_v58 = vmul.f32 0.0078125, %v3380_v40  ;;  %v3385_v59 = vmul.f32 %v10818_v57, %v10818_v57  ;;  %v9261_v40 = vld [vmem:[#allocation20 + $0x168] sm:$0xff]  }
0x1126   : > { %v10822_v60 = vsub.f32 %v3372_v44, %v3382_v58  ;;  %3387 = vadd.xlane.f32.xlu0 %v3385_v59  ;;  %v9253_v44 = vld [vmem:[#allocation20 + $0x178] sm:$0xff]   ;;  %v9262_v58 = vld [vmem:[#allocation20 + $0x1e8] sm:$0xff]  }
0x1127   : > { %8291 = vmatprep.subr.bf16.mxu1 %v9253_v44  ;;  %v9263_v59 = vld [vmem:[#allocation20 + $0x128] sm:$0xff]  }
0x1128   : > { %v3386_v41 = vmul.f32 %v10822_v60, %v10822_v60 }
0x112a   : > { %3389 = vadd.xlane.f32.xlu0 %v3386_v41  ;;  %v9265_v41 = vld [vmem:[#allocation20 + $0x160] sm:$0xff]  }
0x11af   : > { %v3388_v26 = vpop.xlane.xlu0 %3387 }
0x11b0   : > { %v3391_v27 = vmul.f32 0.0078125, %v3388_v26 }
0x11b2   : > { %v3393_v28 = vadd.f32 1e-05, %v3391_v27 }
0x11b3   : > { %v3390_v29 = vpop.xlane.xlu0 %3389 }
0x11b4   : > { %9613 = vrsqrt.f32 %v3393_v28  ;;  %v3392_v30 = vmul.f32 0.0078125, %v3390_v29 }
0x11b6   : > { %v3394_v31 = vadd.f32 1e-05, %v3392_v30 }
0x11b8   : > { %9615 = vrsqrt.f32 %v3394_v31 }
0x11c1   : > { %v9614_v32 = vpop.eup %9613 }
0x11c2   : > { %v3397_v34 = vmul.f32 %v9614_v32, %v10818_v57  ;;  %v9260_v57 = vld [vmem:[#allocation20 + $0x1b0] sm:$0xff]  }
0x11c4   : > { %v3405_v36 = vmul.f32 %v7869_v33, %v3397_v34 }
0x11c5   : > { %v9616_v35 = vpop.eup %9615 }
0x11c6   : > { %v3398_v50 = vmul.f32 %v9616_v35, %v10822_v60  ;;  %v10828_v39 = vadd.f32 %v7870_v37, %v3405_v36  ;;  %v9264_v60 = vld [vmem:[#allocation20 + $0x1a8] sm:$0xff]  }
0x11c8   : > { %v3406_v38 = vmul.f32 %v7869_v33, %v3398_v50 }
0x11ca   : > { %v10830_v52 = vadd.f32 %v7870_v37, %v3406_v38 }
0x11cc   : > { %v3415_v43 = vpack.c.bf16 %v10830_v52, %v10828_v39 }
0x11ce   : > { %3665 = vmatmul.mubr.bf16.vlgmr.msra.gmra.mxu1 %v3415_v43  ;;  %3708 = vmatmul.mubr.bf16.vlgmr.msra.gmra.mxu0 %v3415_v43 }
0x11cf   : > { %8292 = vmatpush3.bf16.msra.mxu1 %v9255_v8  ;;  %8314 = vmatpush3.bf16.msra.mxu0 %v9256_v46 }
0x11d0   : > { %8293 = vmatprep.subr.bf16.mxu1 %v9257_v51  ;;  %8315 = vmatprep.subr.bf16.mxu0 %v9258_v54 }
0x11d3   : > { %8294 = vmatpush3.bf16.msra.mxu1 %v9259_v56  ;;  %8316 = vmatpush3.bf16.msra.mxu0 %v9260_v57 }
0x11d4   : > { %8295 = vmatprep.subr.bf16.mxu1 %v9261_v40  ;;  %8317 = vmatprep.subr.bf16.mxu0 %v9262_v58 }
0x11d7   : > { %8296 = vmatpush3.bf16.msra.mxu1 %v9263_v59  ;;  %8318 = vmatpush3.bf16.msra.mxu0 %v9264_v60 }
0x11d8   : > { %8297 = vmatprep.subr.bf16.mxu1 %v9265_v41  ;;  %8319 = vmatprep.subr.bf16.mxu0 %v9266_v62 }
0x11db   : > { %8298 = vmatpush3.bf16.msra.mxu1 %v9267_v63  ;;  %8320 = vmatpush3.bf16.msra.mxu0 %v9268_v47 }
0x11dc   : > { %8299 = vmatprep.subr.bf16.mxu1 %v9269_v1  ;;  %8321 = vmatprep.subr.bf16.mxu0 %v9270_v2 }
0x11df   : > { %8300 = vmatpush3.bf16.msra.mxu1 %v9271_v48  ;;  %8322 = vmatpush3.bf16.msra.mxu0 %v9272_v49 }
0x11e0   : > { %8301 = vmatprep.subr.bf16.mxu1 %v9273_v3  ;;  %8323 = vmatprep.subr.bf16.mxu0 %v9274_v4 }
0x11e3   : > { %8302 = vmatpush3.bf16.msra.mxu1 %v9275_v5  ;;  %8324 = vmatpush3.bf16.msra.mxu0 %v9276_v6 }
0x11e4   : > { %8303 = vmatprep.subr.bf16.mxu1 %v9277_v7  ;;  %8325 = vmatprep.subr.bf16.mxu0 %v9278_v9 }
0x11e7   : > { %8304 = vmatpush3.bf16.msra.mxu1 %v9279_v10  ;;  %8326 = vmatpush3.bf16.msra.mxu0 %v9280_v11 }
0x11e8   : > { %8305 = vmatprep.subr.bf16.mxu1 %v9281_v12  ;;  %8327 = vmatprep.subr.bf16.mxu0 %v9282_v13 }
0x11eb   : > { %8306 = vmatpush3.bf16.msra.mxu1 %v9283_v14  ;;  %8328 = vmatpush3.bf16.msra.mxu0 %v9284_v15 }
0x11ec   : > { %8687 = vmatprep.subr.bf16.mxu0 %v10176_v0 }
0x128e   : > { %v3666_v19 = vpop.f32.mrf.mxu1  ;;  %v3709_v20 = vpop.f32.mrf.mxu0 }
0x128f   : > { %v3667_v23 = vadd.f32 %v3666_v19, %v3455_v17  ;;  %v3710_v24 = vadd.f32 %v3709_v20, %v3463_v18 }
0x1290   : > { %v3668_v26 = vpop.f32.mrf.mxu1  ;;  %v3711_v27 = vpop.f32.mrf.mxu0 }
0x1291   : > { %v3726_v28 = vmul.f32 0.70710677, %v3667_v23  ;;  %v3728_v29 = vmul.f32 0.70710677, %v3710_v24  ;;  %v3669_v30 = vadd.f32 %v3668_v26, %v3459_v21  ;;  %v3712_v31 = vadd.f32 %v3711_v27, %v3467_v22 }
0x1292   : > { %v3670_v32 = vpop.f32.mrf.mxu1  ;;  %v3713_v34 = vpop.f32.mrf.mxu0  ;;  %v3718_v60 = vmul.f32 0.5, %v3667_v23  ;;  %v3720_v13 = vmul.f32 0.5, %v3710_v24 }
0x1293   : > { %v3671_v33 = vadd.f32 %v3670_v32, %v3455_v17  ;;  %v3714_v35 = vadd.f32 %v3713_v34, %v3463_v18  ;;  %9617 = verf.f32 %v3726_v28  ;;  %v3727_v50 = vmul.f32 0.70710677, %v3669_v30  ;;  %v7905_v28 = vld [vmem:[%s11264_s10 + $0x1] ss:$0 sm:$0xff] }
0x1294   : > { %v3672_v36 = vpop.f32.mrf.mxu1  ;;  %v3715_v37 = vpop.f32.mrf.mxu0  ;;  %9619 = verf.f32 %v3728_v29  ;;  %v3729_v38 = vmul.f32 0.70710677, %v3712_v31  ;;  %v3719_v41 = vmul.f32 0.5, %v3669_v30  ;;  %v3721_v9 = vmul.f32 0.5, %v3712_v31 }
0x1295   : > { %v3730_v43 = vmul.f32 0.70710677, %v3671_v33  ;;  %9621 = verf.f32 %v3727_v50  ;;  %v3732_v44 = vmul.f32 0.70710677, %v3714_v35  ;;  %v3673_v45 = vadd.f32 %v3672_v36, %v3459_v21 }
0x1296   : > { %v3716_v8 = vadd.f32 %v3715_v37, %v3467_v22  ;;  %9623 = verf.f32 %v3729_v38  ;;  %v3722_v48 = vmul.f32 0.5, %v3671_v33  ;;  %v3724_v5 = vmul.f32 0.5, %v3714_v35 }
0x1297   : > { %9625 = verf.f32 %v3730_v43  ;;  %v3731_v46 = vmul.f32 0.70710677, %v3673_v45  ;;  %v3723_v6 = vmul.f32 0.5, %v3673_v45 }
0x1298   : > { %9627 = verf.f32 %v3732_v44  ;;  %v3733_v51 = vmul.f32 0.70710677, %v3716_v8  ;;  %v3725_v11 = vmul.f32 0.5, %v3716_v8 }
0x1299   : > { %9629 = verf.f32 %v3731_v46 }
0x129a   : > { %9631 = verf.f32 %v3733_v51  ;;  %v9285_v51 = vld [vmem:[#allocation8 + $0x228] ss:$12 sps:$4 sm:$0xff]  }
0x12a0   : > { %v9618_v54 = vpop.eup %9617 }
0x12a1   : > { %v9620_v56 = vpop.eup %9619  ;;  %v3742_v1 = vadd.f32 1.0, %v9618_v54  ;;  %v9287_v54 = vld [vmem:[#allocation8 + $0x22c] ss:$12 sps:$4 sm:$0xff]  }
0x12a2   : > { %v9622_v57 = vpop.eup %9621  ;;  %v3744_v4 = vadd.f32 1.0, %v9620_v56  ;;  %v9288_v56 = vld [vmem:[#allocation8 + $0x230] ss:$12 sps:$4 sm:$0xff]   ;;  %4333 = vmatprep.subr.bf16.mxu1 %v9287_v54 }
0x12a3   : > { %v9624_v40 = vpop.eup %9623  ;;  %v3743_v62 = vadd.f32 1.0, %v9622_v57  ;;  %v3750_v17 = vmul.f32 %v3742_v1, %v3718_v60  ;;  %v9295_v1 = vld [vmem:[#allocation8 + $0x1fc] ss:$12 sps:$4 sm:$0xff]  }
0x12a4   : > { %v9626_v58 = vpop.eup %9625  ;;  %v3745_v2 = vadd.f32 1.0, %v9624_v40  ;;  %v3752_v20 = vmul.f32 %v3744_v4, %v3720_v13  ;;  %v9300_v4 = vld [vmem:[#allocation8 + $0x1e8] ss:$12 sps:$4 sm:$0xff]   ;;  %v9309_v13 = vld [vmem:[#allocation8 + $0x198] ss:$12 sps:$4 sm:$0xff]  }
0x12a5   : > { %v9628_v59 = vpop.eup %9627  ;;  %v3746_v63 = vadd.f32 1.0, %v9626_v58  ;;  %v3751_v14 = vmul.f32 %v3743_v62, %v3719_v41  ;;  %v9291_v62 = vld [vmem:[#allocation8 + $0x214] ss:$12 sps:$4 sm:$0xff]  }
0x12a6   : > { %v9630_v47 = vpop.eup %9629  ;;  %v3748_v49 = vadd.f32 1.0, %v9628_v59  ;;  %v3753_v18 = vmul.f32 %v3745_v2, %v3721_v9  ;;  %v9293_v2 = vld [vmem:[#allocation8 + $0x1f8] ss:$12 sps:$4 sm:$0xff]   ;;  %v9307_v9 = vld [vmem:[#allocation8 + $0x1b4] ss:$12 sps:$4 sm:$0xff]  }
0x12a7   : > { %v9632_v3 = vpop.eup %9631  ;;  %v3747_v7 = vadd.f32 1.0, %v9630_v47  ;;  %v3754_v10 = vmul.f32 %v3746_v63, %v3722_v48  ;;  %v9289_v63 = vld [vmem:[#allocation8 + $0x210] ss:$12 sps:$4 sm:$0xff]   ;;  %v9292_v47 = vld [vmem:[#allocation8 + $0x218] ss:$12 sps:$4 sm:$0xff]  }
0x12a8   : > { %v3749_v12 = vadd.f32 1.0, %v9632_v3  ;;  %v3756_v15 = vmul.f32 %v3748_v49, %v3724_v5  ;;  %v9296_v48 = vld [vmem:[#allocation8 + $0x200] ss:$12 sps:$4 sm:$0xff]   ;;  %v9299_v3 = vld [vmem:[#allocation8 + $0x1e4] ss:$12 sps:$4 sm:$0xff]  }
0x12a9   : > { %v3755_v16 = vmul.f32 %v3747_v7, %v3723_v6  ;;  %v3758_v22 = vpack.c.bf16 %v3754_v10, %v3750_v17  ;;  %v9297_v49 = vld [vmem:[#allocation8 + $0x1e0] ss:$12 sps:$4 sm:$0xff]   ;;  %v9301_v6 = vld [vmem:[#allocation8 + $0x1c8] ss:$12 sps:$4 sm:$0xff]   ;;  %v9304_v7 = vld [vmem:[#allocation8 + $0x1d0] ss:$12 sps:$4 sm:$0xff]  }
0x12aa   : > { %v3757_v19 = vmul.f32 %v3749_v12, %v3725_v11  ;;  %v3760_v26 = vpack.c.bf16 %v3756_v15, %v3752_v20  ;;  %v9303_v5 = vld [vmem:[#allocation8 + $0x1cc] ss:$12 sps:$4 sm:$0xff]   ;;  %v9305_v10 = vld [vmem:[#allocation8 + $0x1b0] ss:$12 sps:$4 sm:$0xff]   ;;  %v9316_v17 = vld [vmem:[#allocation8 + $0x188] ss:$12 sps:$4 sm:$0xff]  }
0x12ab   : > { %v3759_v21 = vpack.c.bf16 %v3755_v16, %v3751_v14  ;;  %v9308_v11 = vld [vmem:[#allocation8 + $0x1b8] ss:$12 sps:$4 sm:$0xff]   ;;  %v9311_v12 = vld [vmem:[#allocation8 + $0x19c] ss:$12 sps:$4 sm:$0xff]   ;;  %v9312_v14 = vld [vmem:[#allocation8 + $0x1a0] ss:$12 sps:$4 sm:$0xff]  }
0x12ac   : > { %v3761_v23 = vpack.c.bf16 %v3757_v19, %v3753_v18  ;;  %v9315_v15 = vld [vmem:[#allocation8 + $0x184] ss:$12 sps:$4 sm:$0xff]   ;;  %v9313_v16 = vld [vmem:[#allocation8 + $0x180] ss:$12 sps:$4 sm:$0xff]  }
0x12ad   : > { %4059 = vmatprep.mubr.bf16.mxu1 %v3759_v21 }
0x12ae   : > { %4100 = vmatprep.mubr.bf16.mxu0 %v3761_v23  ;;  %4060 = vmatmul.mubr.bf16.vlgmr.msra.gmra.mxu1 %v3758_v22 }
0x12af   : > { %4101 = vmatmul.mubr.bf16.vlgmr.msra.gmra.mxu0 %v3760_v26  ;;  %4365 = vmatprep.mubr.bf16.mxu1 %v10178_v42 }
0x12b0   : > { %8703 = vmatprep.mubr.msk.bf16.mxu0 %vm10177_vm0, %v10176_v0  ;;  %8688 = vmatpush3.bf16.msra.mxu0 %v9288_v56 }
0x12b1   : > { %4334 = vmatpush1.bf16.msra.mxu1 %v9285_v51  ;;  %8689 = vmatprep.subr.bf16.mxu0 %v10176_v0 }
0x12b2   : > { %4335 = vmatprep.subr.bf16.mxu1 %v9291_v62 }
0x12b4   : > { %8690 = vmatpush3.bf16.msra.mxu0 %v9292_v47 }
0x12b5   : > { %4336 = vmatpush1.bf16.msra.mxu1 %v9289_v63  ;;  %8691 = vmatprep.subr.bf16.mxu0 %v10176_v0 }
0x12b6   : > { %4337 = vmatprep.subr.bf16.mxu1 %v9295_v1 }
0x12b8   : > { %8692 = vmatpush3.bf16.msra.mxu0 %v9296_v48 }
0x12b9   : > { %4338 = vmatpush1.bf16.msra.mxu1 %v9293_v2  ;;  %8693 = vmatprep.subr.bf16.mxu0 %v10176_v0 }
0x12ba   : > { %4339 = vmatprep.subr.bf16.mxu1 %v9299_v3 }
0x12bc   : > { %8694 = vmatpush3.bf16.msra.mxu0 %v9300_v4 }
0x12bd   : > { %4340 = vmatpush1.bf16.msra.mxu1 %v9297_v49  ;;  %8695 = vmatprep.subr.bf16.mxu0 %v10176_v0 }
0x12be   : > { %4341 = vmatprep.subr.bf16.mxu1 %v9303_v5 }
0x12c0   : > { %8696 = vmatpush3.bf16.msra.mxu0 %v9304_v7 }
0x12c1   : > { %4342 = vmatpush1.bf16.msra.mxu1 %v9301_v6  ;;  %8697 = vmatprep.subr.bf16.mxu0 %v10176_v0 }
0x12c2   : > { %4343 = vmatprep.subr.bf16.mxu1 %v9307_v9 }
0x12c4   : > { %8698 = vmatpush3.bf16.msra.mxu0 %v9308_v11 }
0x12c5   : > { %4344 = vmatpush1.bf16.msra.mxu1 %v9305_v10  ;;  %8699 = vmatprep.subr.bf16.mxu0 %v10176_v0 }
0x12c6   : > { %4345 = vmatprep.subr.bf16.mxu1 %v9311_v12 }
0x12c8   : > { %8700 = vmatpush3.bf16.msra.mxu0 %v9312_v14 }
0x12c9   : > { %4346 = vmatpush1.bf16.msra.mxu1 %v9309_v13  ;;  %8701 = vmatprep.subr.bf16.mxu0 %v10176_v0 }
0x12ca   : > { %4347 = vmatprep.subr.bf16.mxu1 %v9315_v15 }
0x12cc   : > { %8702 = vmatpush3.bf16.msra.mxu0 %v9316_v17 }
0x12cd   : > { %4348 = vmatpush1.bf16.msra.mxu1 %v9313_v16  ;;  %8731 = vmatprep.subr.bf16.mxu0 %v10176_v0 }
0x12ce   : > { %8707 = vmatprep.subr.bf16.mxu1 %v10176_v0 }
0x136e   : > { %v8307_v24 = vpop.f32.mrf.mxu1 }
0x136f   : > { %v8329_v27 = vpop.f32.mrf.mxu0 }
0x1370   : > { %v8308_v29 = vpop.f32.mrf.mxu1 }
0x1371   : > { %v8309_v30 = vadd.f32 %v8308_v29, %v8307_v24  ;;  %v8330_v31 = vpop.f32.mrf.mxu0 }
0x1372   : > { %v8310_v32 = vpop.f32.mrf.mxu1  ;;  %v8331_v33 = vadd.f32 %v8330_v31, %v8329_v27  ;;  %v7938_v27 = vld [vmem:[#allocation16 + $0x1] ss:$0 sm:$0xff]  ;;  %v7939_v31 = vld [vmem:[#allocation17 + $0x1] ss:$0 sm:$0xff] }
0x1373   : > { %v4062_v34 = vadd.f32 %v8309_v30, %v7905_v28  ;;  %v8332_v35 = vpop.f32.mrf.mxu0 }
0x1374   : > { %v8311_v50 = vpop.f32.mrf.mxu1 }
0x1375   : > { %v4103_v36 = vadd.f32 %v8331_v33, %v4062_v34  ;;  %v8312_v37 = vadd.f32 %v8311_v50, %v8310_v32  ;;  %v8333_v38 = vpop.f32.mrf.mxu0  ;;  %v4188_v50 = vld [vmem:[#allocation10 + $0x6] sm:$0x7] }
0x1376   : > { %v8334_v44 = vadd.f32 %v8333_v38, %v8332_v35  ;;  %v4193_v38 = vrot.slane %v4188_v50, %v10575_v61 }
0x1377   : > { %v4065_v43 = vadd.f32 %v8312_v37, %v7905_v28  ;;  %v4109_v45 = vadd.f32 %v4103_v36, %v10828_v39 }
0x1379   : > { %v4106_v8 = vadd.f32 %v8334_v44, %v4065_v43  ;;  %4115 = vadd.xlane.f32.xlu1 %v4109_v45  ;;  %v4201_v43 = vrot.slane %v4188_v50, %v10568_v53 }
0x137b   : > { %v4110_v46 = vadd.f32 %v4106_v8, %v10830_v52  ;;  %v4197_v8 = vrot.slane %v4188_v50, %v10571_v55 }
0x137d   : > { %4117 = vadd.xlane.f32.xlu0 %v4110_v46 }
0x1402   : > { %v4116_v57 = vpop.xlane.xlu1 %4115 }
0x1403   : > { %v4119_v40 = vmul.f32 0.0078125, %v4116_v57 }
0x1405   : > { %v10851_v58 = vsub.f32 %v4109_v45, %v4119_v40 }
0x1406   : > { %v4118_v59 = vpop.xlane.xlu0 %4117 }
0x1407   : > { %v4120_v60 = vmul.f32 0.0078125, %v4118_v59  ;;  %v4123_v39 = vmul.f32 %v10851_v58, %v10851_v58 }
0x1409   : > { %v10855_v41 = vsub.f32 %v4110_v46, %v4120_v60  ;;  %4125 = vadd.xlane.f32.xlu1 %v4123_v39 }
0x140b   : > { %v4124_v52 = vmul.f32 %v10855_v41, %v10855_v41 }
0x140d   : > { %4127 = vadd.xlane.f32.xlu0 %v4124_v52 }
0x1492   : > { %v4126_v18 = vpop.xlane.xlu1 %4125 }
0x1493   : > { %v4129_v19 = vmul.f32 0.0078125, %v4126_v18 }
0x1495   : > { %v4131_v20 = vadd.f32 1e-05, %v4129_v19 }
0x1496   : > { %v4128_v21 = vpop.xlane.xlu0 %4127 }
0x1497   : > { %9633 = vrsqrt.f32 %v4131_v20  ;;  %v4130_v22 = vmul.f32 0.0078125, %v4128_v21 }
0x1499   : > { %v4132_v23 = vadd.f32 1e-05, %v4130_v22 }
0x149b   : > { %9635 = vrsqrt.f32 %v4132_v23 }
0x14a4   : > { %v9634_v26 = vpop.eup %9633 }
0x14a5   : > { %v4135_v24 = vmul.f32 %v9634_v26, %v10851_v58 }
0x14a7   : > { %v4143_v30 = vmul.f32 %v7938_v27, %v4135_v24 }
0x14a8   : > { %v9636_v28 = vpop.eup %9635 }
0x14a9   : > { %v4136_v29 = vmul.f32 %v9636_v28, %v10855_v41  ;;  %v10869_v34 = vadd.f32 %v7939_v31, %v4143_v30 }
0x14ab   : > { %v4144_v32 = vmul.f32 %v7938_v27, %v4136_v29 }
0x14ad   : > { %v10871_v33 = vadd.f32 %v7939_v31, %v4144_v32 }
0x14af   : > { %v4153_v35 = vpack.c.bf16 %v10871_v33, %v10869_v34 }
0x14b1   : > { %4366 = vmatmul.mubr.bf16.vlgmr.msra.gmra.mxu1 %v4153_v35  ;;  %8704 = vmatmul.mubr.bf16.vlgmr.msra.gmra.mxu0 %v4153_v35 }
0x14b2   : > { %8709 = vmatprep.mubr.msk.bf16.mxu1 %vm10177_vm0, %v10176_v0  ;;  %8733 = vmatprep.mubr.msk.bf16.mxu0 %vm10177_vm0, %v10176_v0 }
0x1571   : > { %v4367_v36 = vpop.f32.mrf.mxu1  ;;  %v4410_v37 = vpop.f32.mrf.mxu0 }
0x1572   : > { %v4368_v54 = vadd.f32 %v4367_v36, %v4193_v38  ;;  %v4411_v56 = vadd.f32 %v4410_v37, %v4201_v43 }
0x1573   : > { %v4369_v44 = vpop.f32.mrf.mxu1  ;;  %v8705_v45 = vpop.f32.mrf.mxu0 }
0x1574   : > { %v4370_v60 = vadd.f32 %v4369_v44, %v4197_v8 }
0x1575   : > { %v4371_v46 = vpop.f32.mrf.mxu1  ;;  %v4413_v51 = vpop.f32.mrf.mxu0 }
0x1576   : > { %v4372_v57 = vadd.f32 %v4371_v46, %v4193_v38  ;;  %v4414_v40 = vadd.f32 %v4413_v51, %v4201_v43 }
0x1577   : > { %v4373_v58 = vpop.f32.mrf.mxu1  ;;  %v8706_v59 = vpop.f32.mrf.mxu0 }
0x1578   : > { %v4417_v39 = vpack.c.bf16 %v4372_v57, %v4368_v54  ;;  %v10882_v41 = vpack.c.bf16 %v4414_v40, %v4411_v56  ;;  %v4374_v52 = vadd.f32 %v4373_v58, %v4197_v8 }
0x157a   : > { %v4418_v62 = vpack.c.bf16 %v4374_v52, %v4370_v60  ;;  %8732 = vmatpush3.bf16.msra.mxu0 %v10882_v41  ;;  %4421 = vrot.lane.b32.xlu0 %v4417_v39, %s10180_s20 }
0x157b   : > { %8743 = vmatprep.subr.bf16.mxu0 %v10176_v0 }
0x157c   : > { %4428 = vrot.lane.b32.xlu1 %v4418_v62, %s10180_s20  ;;  %v4448_v63 = vsel %vm1121_vm2, %v4418_v62, 0 }
0x157d   : > { %8708 = vmatpush3.bf16.xpose.msra.mxu1 %v4448_v63 }
0x157e   : > { %4432 = vrot.lane.b32.xlu0 %v4418_v62, %s10181_s26  ;;  %8713 = vmatprep.subr.bf16.mxu1 %v10176_v0 }
0x1580   : > { %4430 = vrot.lane.b32.xlu1 %v4418_v62, %s10179_s28 }
0x1584   : > { %4423 = vrot.lane.b32.xlu1 %v4417_v39, %s10179_s28  ;;  %8710 = vmatmul.mubr.msk.bf16.vlgmr.msra.gmra.mxu1 %vm1121_vm2, %v4417_v39 }
0x1585   : > { %8715 = vmatprep.mubr.msk.bf16.mxu1 %vm10177_vm0, %v10176_v0 }
0x1588   : > { %4425 = vrot.lane.b32.xlu1 %v4417_v39, %s10181_s26 }
0x15ec   : > { %v4422_v48 = vpop.permute.xlu0 %4421 }
0x15ee   : > { %v4429_v47 = vpop.permute.xlu1 %4428 }
0x15ef   : > { %v4495_v1 = vsel %vm1121_vm2, %v4429_v47, 0 }
0x15f0   : > { %8714 = vmatpush3.bf16.xpose.msra.mxu1 %v4495_v1  ;;  %v4433_v3 = vpop.permute.xlu0 %4432 }
0x15f1   : > { %8719 = vmatprep.subr.bf16.mxu1 %v10176_v0  ;;  %v4589_v5 = vsel %vm1121_vm2, %v4433_v3, 0 }
0x15f2   : > { %v4431_v2 = vpop.permute.xlu1 %4430 }
0x15f3   : > { %v4542_v49 = vsel %vm1121_vm2, %v4431_v2, 0 }
0x15f6   : > { %v4424_v4 = vpop.permute.xlu1 %4423 }
0x15f7   : > { %8716 = vmatmul.mubr.msk.bf16.vlgmr.msra.gmra.mxu1 %vm1121_vm2, %v4422_v48 }
0x15f8   : > { %8720 = vmatpush3.bf16.xpose.msra.mxu1 %v4542_v49  ;;  %8721 = vmatprep.mubr.msk.bf16.mxu1 %vm10177_vm0, %v10176_v0 }
0x15f9   : > { %8725 = vmatprep.subr.bf16.mxu1 %v10176_v0 }
0x15fa   : > { %v4426_v6 = vpop.permute.xlu1 %4425 }
0x15ff   : > { %8722 = vmatmul.mubr.msk.bf16.vlgmr.msra.gmra.mxu1 %vm1121_vm2, %v4424_v4 }
0x1600   : > { %8726 = vmatpush3.bf16.xpose.msra.mxu1 %v4589_v5  ;;  %8727 = vmatprep.mubr.msk.bf16.mxu1 %vm10177_vm0, %v10176_v0 }
0x1601   : > { %8737 = vmatprep.subr.bf16.mxu1 %v10176_v0 }
0x1607   : > { %8728 = vmatmul.mubr.msk.bf16.vlgmr.msra.gmra.mxu1 %vm1121_vm2, %v4426_v6 }
0x1608   : > { %8739 = vmatprep.mubr.msk.bf16.mxu1 %vm10177_vm0, %v10176_v0 }
0x1644   : > { %v4484_v7 = vpop.f32.mrf.mxu1 }
0x1645   : > { %v4632_v9 = vsel %vm1310_vm3, %v4484_v7, -inf }
0x1646   : > { %4633 = vmax.xlane.f32.xlu0 %v4632_v9  ;;  %v8711_v10 = vpop.f32.mrf.mxu1 }
0x1648   : > { %v4487_v11 = vpop.f32.mrf.mxu1 }
0x1649   : > { %v4635_v12 = vsel %vm1310_vm3, %v4487_v11, -inf }
0x164a   : > { %4636 = vmax.xlane.f32.xlu1 %v4635_v12  ;;  %v8712_v13 = vpop.f32.mrf.mxu1 }
0x16b7   : > { %v4531_v14 = vpop.f32.mrf.mxu1 }
0x16b8   : > { %v4638_v15 = vsel %vm1310_vm3, %v4531_v14, -inf }
0x16b9   : > { %4639 = vmax.xlane.f32.xlu0 %v4638_v15  ;;  %v8717_v16 = vpop.f32.mrf.mxu1 }
0x16bb   : > { %v4534_v17 = vpop.f32.mrf.mxu1 }
0x16bc   : > { %v4641_v18 = vsel %vm1310_vm3, %v4534_v17, -inf }
0x16bd   : > { %4642 = vmax.xlane.f32.xlu0 %v4641_v18  ;;  %v8718_v19 = vpop.f32.mrf.mxu1 }
0x16bf   : > { %v4578_v20 = vpop.f32.mrf.mxu1 }
0x16c0   : > { %v4644_v21 = vsel %vm1310_vm3, %v4578_v20, -inf }
0x16c1   : > { %4645 = vmax.xlane.f32.xlu1 %v4644_v21  ;;  %v8723_v22 = vpop.f32.mrf.mxu1 }
0x16c3   : > { %v4581_v23 = vpop.f32.mrf.mxu1 }
0x16c4   : > { %v4647_v26 = vsel %vm1310_vm3, %v4581_v23, -inf }
0x16c5   : > { %4648 = vmax.xlane.f32.xlu0 %v4647_v26  ;;  %v8724_v24 = vpop.f32.mrf.mxu1 }
0x16c7   : > { %v4625_v27 = vpop.f32.mrf.mxu1 }
0x16c8   : > { %v4650_v28 = vsel %vm1310_vm3, %v4625_v27, -inf }
0x16c9   : > { %4651 = vmax.xlane.f32.xlu1 %v4650_v28  ;;  %v8729_v29 = vpop.f32.mrf.mxu1 }
0x16cb   : > { %v4628_v30 = vpop.f32.mrf.mxu1 }
0x16cc   : > { %v4653_v31 = vsel %vm1310_vm3, %v4628_v30, -inf }
0x16cd   : > { %4654 = vmax.xlane.f32.xlu0 %v4653_v31  ;;  %v8730_v32 = vpop.f32.mrf.mxu1 }
0x16cf   : > { %v4634_v37 = vpop.xlane.xlu0 %4633 }
0x16d0   : > { %v4656_v43 = vsub.f32 %v4484_v7, %v4634_v37 }
0x16d2   : > { %v4664_v45 = vmul.f32 1.442695, %v4656_v43 }
0x16d3   : > { %v4637_v35 = vpop.xlane.xlu1 %4636 }
0x16d4   : > { %v4657_v50 = vsub.f32 %v4487_v11, %v4637_v35 }
0x16d6   : > { %v4666_v36 = vmul.f32 1.442695, %v4657_v50 }
0x16d8   : > { %9637 = vpow2.f32 %v4666_v36 }
0x16d9   : > { %9639 = vpow2.f32 %v4664_v45 }
0x16da   : > { %4435 = vrot.lane.b32.xlu1 %v10882_v41, %s10180_s20 }
0x16e5   : > { %v10922_v38 = vpop.eup %9637 }
0x16e6   : > { %v4683_v44 = vsel %vm1310_vm3, %v10922_v38, 0.0  ;;  %v9640_v8 = vpop.eup %9639 }
0x16e7   : > { %4684 = vadd.xlane.f32.xlu0 %v4683_v44  ;;  %v4680_v46 = vsel %vm1310_vm3, %v9640_v8, 0.0 }
0x16fe   : > { %4681 = vadd.xlane.f32.xlu1 %v4680_v46 }
0x1742   : > { %v4640_v51 = vpop.xlane.xlu0 %4639 }
0x1743   : > { %v4658_v54 = vsub.f32 %v4531_v14, %v4640_v51 }
0x1745   : > { %v4668_v56 = vmul.f32 1.442695, %v4658_v54 }
0x1746   : > { %v4643_v57 = vpop.xlane.xlu0 %4642 }
0x1747   : > { %9641 = vpow2.f32 %v4668_v56  ;;  %v4659_v40 = vsub.f32 %v4534_v17, %v4643_v57 }
0x1749   : > { %v4670_v58 = vmul.f32 1.442695, %v4659_v40 }
0x174a   : > { %v4646_v59 = vpop.xlane.xlu1 %4645 }
0x174b   : > { %9643 = vpow2.f32 %v4670_v58  ;;  %v4660_v60 = vsub.f32 %v4578_v20, %v4646_v59  ;;  %v9317_v58 = vld [vmem:[#allocation11 + $0xb8] sm:$0xff]   ;;  %v9318_v59 = vld [vmem:[#allocation11 + $0xb0] sm:$0xff]  }
0x174d   : > { %v4672_v39 = vmul.f32 1.442695, %v4660_v60  ;;  %v9319_v60 = vld [vmem:[#allocation11 + $0xa8] sm:$0xff]  }
0x174e   : > { %v4649_v52 = vpop.xlane.xlu0 %4648 }
0x174f   : > { %9645 = vpow2.f32 %v4672_v39  ;;  %v4661_v62 = vsub.f32 %v4581_v23, %v4649_v52  ;;  %v9320_v39 = vld [vmem:[#allocation11 + $0xa0] sm:$0xff]  }
0x1751   : > { %v4674_v63 = vmul.f32 1.442695, %v4661_v62 }
0x1752   : > { %v4652_v47 = vpop.xlane.xlu1 %4651 }
0x1753   : > { %9647 = vpow2.f32 %v4674_v63  ;;  %v4662_v1 = vsub.f32 %v4625_v27, %v4652_v47 }
0x1754   : > { %v9642_v2 = vpop.eup %9641 }
0x1755   : > { %v4676_v48 = vmul.f32 1.442695, %v4662_v1  ;;  %v4686_v49 = vsel %vm1310_vm3, %v9642_v2, 0.0 }
0x1756   : > { %4687 = vadd.xlane.f32.xlu1 %v4686_v49  ;;  %v4436_v3 = vpop.permute.xlu1 %4435  ;;  %v4655_v4 = vpop.xlane.xlu0 %4654 }
0x1757   : > { %9649 = vpow2.f32 %v4676_v48  ;;  %v4663_v5 = vsub.f32 %v4628_v30, %v4655_v4  ;;  %8738 = vmatpush3.bf16.msra.mxu1 %v4436_v3  ;;  %v9322_v48 = vld [vmem:[#allocation11 + $0x90] sm:$0xff]   ;;  %v9323_v4 = vld [vmem:[#allocation11 + $0x88] sm:$0xff]  }
0x1758   : > { %v9644_v6 = vpop.eup %9643  ;;  %8749 = vmatprep.subr.bf16.mxu1 %v10176_v0 }
0x1759   : > { %v4678_v7 = vmul.f32 1.442695, %v4663_v5  ;;  %v4689_v9 = vsel %vm1310_vm3, %v9644_v6, 0.0 }
0x175a   : > { %4690 = vadd.xlane.f32.xlu0 %v4689_v9 }
0x175b   : > { %9651 = vpow2.f32 %v4678_v7 }
0x175c   : > { %v9646_v10 = vpop.eup %9645 }
0x175d   : > { %v4692_v11 = vsel %vm1310_vm3, %v9646_v10, 0.0 }
0x175e   : > { %4693 = vadd.xlane.f32.xlu1 %v4692_v11 }
0x1760   : > { %v9648_v12 = vpop.eup %9647 }
0x1761   : > { %v4695_v13 = vsel %vm1310_vm3, %v9648_v12, 0.0 }
0x1762   : > { %4696 = vadd.xlane.f32.xlu0 %v4695_v13 }
0x1764   : > { %v9650_v14 = vpop.eup %9649 }
0x1765   : > { %v4698_v15 = vsel %vm1310_vm3, %v9650_v14, 0.0 }
0x1766   : > { %4699 = vadd.xlane.f32.xlu1 %v4698_v15 }
0x1768   : > { %v9652_v16 = vpop.eup %9651 }
0x1769   : > { %v4701_v17 = vsel %vm1310_vm3, %v9652_v16, 0.0 }
0x176a   : > { %4702 = vadd.xlane.f32.xlu0 %v4701_v17 }
0x1770   : > { %v4685_v18 = vpop.xlane.xlu0 %4684 }
0x1771   : > { %9653 = vrcp.f32 %v4685_v18 }
0x1777   : > { %4441 = vrot.lane.b32.xlu1 %v10882_v41, %s10181_s26 }
0x177e   : > { %v9654_v20 = vpop.eup %9653 }
0x177f   : > { %v4713_v23 = vmul.f32 %v9654_v20, %v10922_v38 }
0x1780   : > { %4438 = vrot.lane.b32.xlu0 %v10882_v41, %s10179_s28 }
0x1787   : > { %v4682_v19 = vpop.xlane.xlu1 %4681 }
0x1788   : > { %9655 = vrcp.f32 %v4682_v19 }
0x1795   : > { %v9656_v21 = vpop.eup %9655 }
0x1796   : > { %v4712_v22 = vmul.f32 %v9656_v21, %v9640_v8 }
0x1798   : > { %v4720_v26 = vpack.c.bf16 %v4713_v23, %v4712_v22 }
0x179a   : > { %8734 = vmatmul.mubr.msk.bf16.vlgmr.msra.gmra.mxu0 %vm1310_vm3, %v4720_v26 }
0x179b   : > { %8745 = vmatprep.mubr.msk.bf16.mxu0 %vm10177_vm0, %v10176_v0 }
0x17df   : > { %v4688_v24 = vpop.xlane.xlu1 %4687 }
0x17e0   : > { %9657 = vrcp.f32 %v4688_v24 }
0x17e3   : > { %v4691_v27 = vpop.xlane.xlu0 %4690 }
0x17e4   : > { %9659 = vrcp.f32 %v4691_v27  ;;  %v7973_v27 = vld [vmem:[%s11193_s7 + $0x2] ss:$0 sm:$0xff] }
0x17e7   : > { %v4694_v41 = vpop.xlane.xlu1 %4693 }
0x17e8   : > { %9661 = vrcp.f32 %v4694_v41 }
0x17eb   : > { %v4697_v28 = vpop.xlane.xlu0 %4696 }
0x17ec   : > { %9663 = vrcp.f32 %v4697_v28 }
0x17ed   : > { %v9658_v29 = vpop.eup %9657 }
0x17ee   : > { %v4714_v32 = vmul.f32 %v9658_v29, %v9642_v2  ;;  %v9321_v2 = vld [vmem:[#allocation11 + $0x98] sm:$0xff]  }
0x17ef   : > { %v4700_v30 = vpop.xlane.xlu1 %4699 }
0x17f0   : > { %9665 = vrcp.f32 %v4700_v30 }
0x17f1   : > { %v9660_v31 = vpop.eup %9659 }
0x17f2   : > { %v4715_v35 = vmul.f32 %v9660_v31, %v9644_v6  ;;  %v9324_v6 = vld [vmem:[#allocation11 + $0x80] sm:$0xff]  }
0x17f3   : > { %v4703_v50 = vpop.xlane.xlu0 %4702  ;;  %v4442_v37 = vpop.permute.xlu1 %4441 }
0x17f4   : > { %9667 = vrcp.f32 %v4703_v50  ;;  %v4721_v36 = vpack.c.bf16 %v4715_v35, %v4714_v32 }
0x17f5   : > { %v9662_v38 = vpop.eup %9661 }
0x17f6   : > { %8740 = vmatmul.mubr.msk.bf16.vlgmr.msra.gmra.mxu1 %vm1310_vm3, %v4721_v36  ;;  %v4716_v45 = vmul.f32 %v9662_v38, %v9646_v10  ;;  %v9325_v36 = vld [vmem:[#allocation19 + $0x2e0] ss:$16 sps:$4 sm:$0xff]   ;;  %v9328_v38 = vld [vmem:[#allocation19 + $0x2e8] ss:$16 sps:$4 sm:$0xff]  }
0x17f7   : > { %8750 = vmatpush3.bf16.msra.mxu1 %v4442_v37  ;;  %v4439_v43 = vpop.permute.xlu0 %4438  ;;  %8751 = vmatprep.mubr.msk.bf16.mxu1 %vm10177_vm0, %v10176_v0  ;;  %v9327_v37 = vld [vmem:[#allocation19 + $0x2e4] ss:$16 sps:$4 sm:$0xff]  }
0x17f8   : > { %8744 = vmatpush3.bf16.msra.mxu0 %v4439_v43  ;;  %v9330_v43 = vld [vmem:[#allocation19 + $0x2ec] ss:$16 sps:$4 sm:$0xff]   ;;  %5296 = vmatprep.subr.bf16.mxu1 %v9327_v37 }
0x17f9   : > { %v9664_v44 = vpop.eup %9663  ;;  %8755 = vmatprep.subr.bf16.mxu0 %v10176_v0  ;;  %v9375_v37 = vld [vmem:[#allocation20 + $0x238] sm:$0xff]  }
0x17fa   : > { %v4717_v8 = vmul.f32 %v9664_v44, %v9648_v12 }
0x17fc   : > { %v4722_v46 = vpack.c.bf16 %v4717_v8, %v4716_v45 }
0x17fd   : > { %v9666_v51 = vpop.eup %9665 }
0x17fe   : > { %8746 = vmatmul.mubr.msk.bf16.vlgmr.msra.gmra.mxu0 %vm1310_vm3, %v4722_v46  ;;  %v4718_v56 = vmul.f32 %v9666_v51, %v9650_v14 }
0x17ff   : > { %8771 = vmatprep.mubr.msk.bf16.mxu0 %vm10177_vm0, %v10176_v0  ;;  %8756 = vmatpush3.bf16.msra.mxu0 %v9317_v58  ;;  %v9334_v58 = vld [vmem:[#allocation19 + $0x2c8] ss:$16 sps:$4 sm:$0xff]  }
0x1800   : > { %8757 = vmatprep.subr.bf16.mxu0 %v10176_v0 }
0x1801   : > { %v9668_v54 = vpop.eup %9667 }
0x1802   : > { %v4719_v57 = vmul.f32 %v9668_v54, %v9652_v16 }
0x1803   : > { %8758 = vmatpush3.bf16.msra.mxu0 %v9318_v59  ;;  %v9339_v59 = vld [vmem:[#allocation19 + $0x2a4] ss:$16 sps:$4 sm:$0xff]  }
0x1804   : > { %v4723_v40 = vpack.c.bf16 %v4719_v57, %v4718_v56  ;;  %8759 = vmatprep.subr.bf16.mxu0 %v10176_v0  ;;  %v9333_v56 = vld [vmem:[#allocation19 + $0x2c4] ss:$16 sps:$4 sm:$0xff]   ;;  %v9336_v57 = vld [vmem:[#allocation19 + $0x2cc] ss:$16 sps:$4 sm:$0xff]  }
0x1806   : > { %8752 = vmatmul.mubr.msk.bf16.vlgmr.msra.gmra.mxu1 %vm1310_vm3, %v4723_v40  ;;  %v9331_v40 = vld [vmem:[#allocation19 + $0x2c0] ss:$16 sps:$4 sm:$0xff]  }
0x1807   : > { %5328 = vmatprep.mubr.bf16.mxu1 %v10178_v42  ;;  %8760 = vmatpush3.bf16.msra.mxu0 %v9319_v60  ;;  %v9342_v60 = vld [vmem:[#allocation19 + $0x2ac] ss:$16 sps:$4 sm:$0xff]  }
0x1808   : > { %8761 = vmatprep.subr.bf16.mxu0 %v10176_v0  ;;  %5297 = vmatpush1.bf16.msra.mxu1 %v9325_v36  ;;  %v9374_v36 = vld [vmem:[#allocation20 + $0x2f8] sm:$0xff]  }
0x1809   : > { %5298 = vmatprep.subr.bf16.mxu1 %v9333_v56  ;;  %v9386_v56 = vld [vmem:[#allocation20 + $0x2e0] sm:$0xff]  }
0x180b   : > { %8762 = vmatpush3.bf16.msra.mxu0 %v9320_v39  ;;  %v9337_v39 = vld [vmem:[#allocation19 + $0x2a0] ss:$16 sps:$4 sm:$0xff]  }
0x180c   : > { %8763 = vmatprep.subr.bf16.mxu0 %v10176_v0  ;;  %5299 = vmatpush1.bf16.msra.mxu1 %v9331_v40  ;;  %v9388_v40 = vld [vmem:[#allocation20 + $0x2a0] sm:$0xff]  }
0x180d   : > { %5300 = vmatprep.subr.bf16.mxu1 %v9339_v59  ;;  %v9390_v59 = vld [vmem:[#allocation20 + $0x2d8] sm:$0xff]  }
0x180f   : > { %8764 = vmatpush3.bf16.msra.mxu0 %v9321_v2  ;;  %v9351_v2 = vld [vmem:[#allocation19 + $0x264] ss:$16 sps:$4 sm:$0xff]  }
0x1810   : > { %8765 = vmatprep.subr.bf16.mxu0 %v10176_v0  ;;  %5301 = vmatpush1.bf16.msra.mxu1 %v9337_v39  ;;  %v9392_v39 = vld [vmem:[#allocation20 + $0x298] sm:$0xff]  }
0x1813   : > { %8766 = vmatpush3.bf16.msra.mxu0 %v9322_v48  ;;  %v9354_v48 = vld [vmem:[#allocation19 + $0x26c] ss:$16 sps:$4 sm:$0xff]  }
0x1814   : > { %8767 = vmatprep.subr.bf16.mxu0 %v10176_v0 }
0x1817   : > { %8768 = vmatpush3.bf16.msra.mxu0 %v9323_v4  ;;  %v9357_v4 = vld [vmem:[#allocation19 + $0x244] ss:$16 sps:$4 sm:$0xff]  }
0x1818   : > { %8769 = vmatprep.subr.bf16.mxu0 %v10176_v0 }
0x181b   : > { %8770 = vmatpush3.bf16.msra.mxu0 %v9324_v6  ;;  %v9355_v6 = vld [vmem:[#allocation19 + $0x240] ss:$16 sps:$4 sm:$0xff]  }
0x181c   : > { %5339 = vmatprep.subr.bf16.mxu0 %v9330_v43  ;;  %v9377_v43 = vld [vmem:[#allocation20 + $0x270] sm:$0xff]  }
0x185a   : > { %v4761_v52 = vpop.f32.mrf.mxu0 }
0x185c   : > { %v8735_v62 = vpop.f32.mrf.mxu0 }
0x185d   : > { %v9343_v62 = vld [vmem:[#allocation19 + $0x280] ss:$16 sps:$4 sm:$0xff]  }
0x185e   : > { %v4764_v63 = vpop.f32.mrf.mxu0 }
0x185f   : > { %v4900_v47 = vpack.c.bf16 %v4764_v63, %v4761_v52  ;;  %v9340_v52 = vld [vmem:[#allocation19 + $0x2a8] ss:$16 sps:$4 sm:$0xff]   ;;  %v9345_v63 = vld [vmem:[#allocation19 + $0x284] ss:$16 sps:$4 sm:$0xff]  }
0x1860   : > { %v8736_v1 = vpop.f32.mrf.mxu0  ;;  %5302 = vmatprep.subr.bf16.mxu1 %v9345_v63  ;;  %v9395_v63 = vld [vmem:[#allocation20 + $0x210] sm:$0xff]  }
0x1861   : > { %v9348_v1 = vld [vmem:[#allocation19 + $0x28c] ss:$16 sps:$4 sm:$0xff]   ;;  %5303 = vmatpush1.bf16.msra.mxu1 %v9343_v62  ;;  %v9394_v62 = vld [vmem:[#allocation20 + $0x2d0] sm:$0xff]  }
0x1862   : > { %5304 = vmatprep.subr.bf16.mxu1 %v9351_v2  ;;  %v9398_v2 = vld [vmem:[#allocation20 + $0x2c8] sm:$0xff]  }
0x18b6   : > { %v4805_v49 = vpop.f32.mrf.mxu1 }
0x18b8   : > { %v8741_v3 = vpop.f32.mrf.mxu1 }
0x18b9   : > { %v9352_v3 = vld [vmem:[#allocation19 + $0x268] ss:$16 sps:$4 sm:$0xff]  }
0x18ba   : > { %v4808_v5 = vpop.f32.mrf.mxu1 }
0x18bb   : > { %v4901_v7 = vpack.c.bf16 %v4808_v5, %v4805_v49  ;;  %v9349_v49 = vld [vmem:[#allocation19 + $0x260] ss:$16 sps:$4 sm:$0xff]   ;;  %v9360_v5 = vld [vmem:[#allocation19 + $0x24c] ss:$16 sps:$4 sm:$0xff]  }
0x18bc   : > { %v8742_v9 = vpop.f32.mrf.mxu1  ;;  %5305 = vmatpush1.bf16.msra.mxu1 %v9349_v49  ;;  %v9400_v49 = vld [vmem:[#allocation20 + $0x288] sm:$0xff]  }
0x18bd   : > { %4905 = vrot.lane.b32.xlu1 %v4901_v7, %s10181_s26  ;;  %v9358_v7 = vld [vmem:[#allocation19 + $0x248] ss:$16 sps:$4 sm:$0xff]   ;;  %5306 = vmatprep.subr.bf16.mxu1 %v9357_v4  ;;  %v9363_v9 = vld [vmem:[#allocation19 + $0x224] ss:$16 sps:$4 sm:$0xff]  }
0x18be   : > { %v4849_v10 = vpop.f32.mrf.mxu0  ;;  %v9402_v4 = vld [vmem:[#allocation20 + $0x2c0] sm:$0xff]  }
0x18c0   : > { %v8747_v11 = vpop.f32.mrf.mxu0  ;;  %5307 = vmatpush1.bf16.msra.mxu1 %v9355_v6  ;;  %v9404_v6 = vld [vmem:[#allocation20 + $0x280] sm:$0xff]  }
0x18c1   : > { %v9361_v11 = vld [vmem:[#allocation19 + $0x220] ss:$16 sps:$4 sm:$0xff]   ;;  %5308 = vmatprep.subr.bf16.mxu1 %v9363_v9 }
0x18c2   : > { %v4852_v12 = vpop.f32.mrf.mxu0 }
0x18c3   : > { %v4902_v13 = vpack.c.bf16 %v4852_v12, %v4849_v10  ;;  %v9366_v10 = vld [vmem:[#allocation19 + $0x22c] ss:$16 sps:$4 sm:$0xff]   ;;  %v9364_v12 = vld [vmem:[#allocation19 + $0x228] ss:$16 sps:$4 sm:$0xff]  }
0x18c4   : > { %v8748_v14 = vpop.f32.mrf.mxu0  ;;  %5309 = vmatpush1.bf16.msra.mxu1 %v9361_v11 }
0x18c5   : > { %4908 = vrot.lane.b32.xlu0 %v4902_v13, %s10179_s28  ;;  %v9369_v13 = vld [vmem:[#allocation19 + $0x204] ss:$16 sps:$4 sm:$0xff]   ;;  %v9372_v14 = vld [vmem:[#allocation19 + $0x20c] ss:$16 sps:$4 sm:$0xff]  }
0x18c6   : > { %v4893_v15 = vpop.f32.mrf.mxu1  ;;  %5310 = vmatprep.subr.bf16.mxu1 %v9369_v13 }
0x18c8   : > { %v8753_v16 = vpop.f32.mrf.mxu1 }
0x18c9   : > { %v9370_v16 = vld [vmem:[#allocation19 + $0x208] ss:$16 sps:$4 sm:$0xff]  }
0x18ca   : > { %v4896_v17 = vpop.f32.mrf.mxu1 }
0x18cb   : > { %v4903_v18 = vpack.c.bf16 %v4896_v17, %v4893_v15  ;;  %v9367_v15 = vld [vmem:[#allocation19 + $0x200] ss:$16 sps:$4 sm:$0xff]  }
0x18cc   : > { %v8754_v19 = vpop.f32.mrf.mxu1  ;;  %5311 = vmatpush1.bf16.msra.mxu1 %v9367_v15 }
0x18cd   : > { %4911 = vrot.lane.b32.xlu1 %v4903_v18, %s10180_s20 }
0x192f   : > { %v4906_v20 = vpop.permute.xlu1 %4905 }
0x1930   : > { %v4915_v22 = vsel %vm1121_vm2, %v4900_v47, %v4906_v20  ;;  %v9346_v47 = vld [vmem:[#allocation19 + $0x288] ss:$16 sps:$4 sm:$0xff]  }
0x1937   : > { %v4909_v21 = vpop.permute.xlu0 %4908 }
0x1938   : > { %v4917_v23 = vsel %vm1595_vm4, %v4915_v22, %v4909_v21 }
0x193f   : > { %v4912_v26 = vpop.permute.xlu1 %4911 }
0x1940   : > { %v4919_v24 = vsel %vm1598_vm5, %v4917_v23, %v4912_v26 }
0x1941   : > { %8772 = vmatmul.mubr.bf16.vlgmr.msra.gmra.mxu0 %v4919_v24  ;;  %v7982_v24 = vld [vmem:[#allocation13 + $0x2] ss:$0 sm:$0xff] }
0x1942   : > { %5371 = vmatprep.mubr.bf16.mxu0 %v10178_v42  ;;  %5340 = vmatpush1.bf16.msra.mxu0 %v9328_v38  ;;  %v9376_v38 = vld [vmem:[#allocation20 + $0x2b8] sm:$0xff]  }
0x1943   : > { %5341 = vmatprep.subr.bf16.mxu0 %v9336_v57  ;;  %v9387_v57 = vld [vmem:[#allocation20 + $0x220] sm:$0xff]  }
0x1946   : > { %5342 = vmatpush1.bf16.msra.mxu0 %v9334_v58  ;;  %v9389_v58 = vld [vmem:[#allocation20 + $0x258] sm:$0xff]  }
0x1947   : > { %5343 = vmatprep.subr.bf16.mxu0 %v9342_v60  ;;  %v9391_v60 = vld [vmem:[#allocation20 + $0x218] sm:$0xff]  }
0x194a   : > { %5344 = vmatpush1.bf16.msra.mxu0 %v9340_v52  ;;  %v9393_v52 = vld [vmem:[#allocation20 + $0x250] sm:$0xff]  }
0x194b   : > { %5345 = vmatprep.subr.bf16.mxu0 %v9348_v1  ;;  %v9397_v1 = vld [vmem:[#allocation20 + $0x248] sm:$0xff]  }
0x194e   : > { %5346 = vmatpush1.bf16.msra.mxu0 %v9346_v47  ;;  %v9396_v47 = vld [vmem:[#allocation20 + $0x290] sm:$0xff]  }
0x194f   : > { %5347 = vmatprep.subr.bf16.mxu0 %v9354_v48  ;;  %v9399_v48 = vld [vmem:[#allocation20 + $0x208] sm:$0xff]  }
0x1952   : > { %5348 = vmatpush1.bf16.msra.mxu0 %v9352_v3  ;;  %v9401_v3 = vld [vmem:[#allocation20 + $0x240] sm:$0xff]  }
0x1953   : > { %5349 = vmatprep.subr.bf16.mxu0 %v9360_v5  ;;  %v9403_v5 = vld [vmem:[#allocation20 + $0x200] sm:$0xff]  }
0x1956   : > { %5350 = vmatpush1.bf16.msra.mxu0 %v9358_v7  ;;  %v7984_v7 = vld [vmem:[%s11199_s13 + $0x8] sm:$0xf] }
0x1957   : > { %5351 = vmatprep.subr.bf16.mxu0 %v9366_v10  ;;  %v5119_v9 = vrot.slane %v7984_v7, %v10575_v61  ;;  %v5127_v10 = vrot.slane %v7984_v7, %v10568_v53  ;;  %v5123_v13 = vrot.slane %v7984_v7, %v10571_v55 }
0x195a   : > { %5352 = vmatpush1.bf16.msra.mxu0 %v9364_v12 }
0x195b   : > { %5353 = vmatprep.subr.bf16.mxu0 %v9372_v14  ;;  %v5131_v14 = vrot.slane %v7984_v7, %v10684_v25 }
0x195e   : > { %5354 = vmatpush1.bf16.msra.mxu0 %v9370_v16 }
0x195f   : > { %8391 = vmatprep.subr.bf16.mxu0 %v9374_v36 }
0x1a01   : > { %v5028_v41 = vpop.f32.mrf.mxu0 }
0x1a02   : > { %v5029_v28 = vadd.f32 %v7973_v27, %v5028_v41 }
0x1a03   : > { %v8773_v29 = vpop.f32.mrf.mxu0 }
0x1a04   : > { %v5035_v30 = vadd.f32 %v5029_v28, %v10869_v34  ;;  %v7983_v29 = vld [vmem:[#allocation14 + $0x2] ss:$0 sm:$0xff] }
0x1a05   : > { %v5031_v31 = vpop.f32.mrf.mxu0 }
0x1a06   : > { %v5032_v32 = vadd.f32 %v7973_v27, %v5031_v31  ;;  %5041 = vadd.xlane.f32.xlu0 %v5035_v30 }
0x1a07   : > { %v8774_v35 = vpop.f32.mrf.mxu0 }
0x1a08   : > { %v5036_v50 = vadd.f32 %v5032_v32, %v10871_v33 }
0x1a0a   : > { %5043 = vadd.xlane.f32.xlu1 %v5036_v50 }
0x1a8f   : > { %v5042_v44 = vpop.xlane.xlu0 %5041 }
0x1a90   : > { %v5045_v45 = vmul.f32 0.0078125, %v5042_v44  ;;  %v9378_v44 = vld [vmem:[#allocation20 + $0x2f0] sm:$0xff]  }
0x1a92   : > { %v10970_v8 = vsub.f32 %v5035_v30, %v5045_v45  ;;  %v9379_v45 = vld [vmem:[#allocation20 + $0x230] sm:$0xff]  }
0x1a93   : > { %v5044_v34 = vpop.xlane.xlu1 %5043 }
0x1a94   : > { %v5046_v46 = vmul.f32 0.0078125, %v5044_v34  ;;  %v5049_v51 = vmul.f32 %v10970_v8, %v10970_v8  ;;  %v9381_v34 = vld [vmem:[#allocation20 + $0x268] sm:$0xff]  }
0x1a96   : > { %v10974_v54 = vsub.f32 %v5036_v50, %v5046_v46  ;;  %5051 = vadd.xlane.f32.xlu0 %v5049_v51  ;;  %v9373_v50 = vld [vmem:[#allocation20 + $0x278] sm:$0xff]   ;;  %v9382_v46 = vld [vmem:[#allocation20 + $0x2e8] sm:$0xff]  }
0x1a97   : > { %8369 = vmatprep.subr.bf16.mxu1 %v9373_v50  ;;  %v9383_v51 = vld [vmem:[#allocation20 + $0x228] sm:$0xff]  }
0x1a98   : > { %v5050_v33 = vmul.f32 %v10974_v54, %v10974_v54 }
0x1a9a   : > { %5053 = vadd.xlane.f32.xlu0 %v5050_v33  ;;  %v9385_v33 = vld [vmem:[#allocation20 + $0x260] sm:$0xff]  }
0x1b1f   : > { %v5052_v17 = vpop.xlane.xlu0 %5051 }
0x1b20   : > { %v5055_v18 = vmul.f32 0.0078125, %v5052_v17 }
0x1b22   : > { %v5057_v19 = vadd.f32 1e-05, %v5055_v18 }
0x1b23   : > { %v5054_v20 = vpop.xlane.xlu0 %5053 }
0x1b24   : > { %9669 = vrsqrt.f32 %v5057_v19  ;;  %v5056_v21 = vmul.f32 0.0078125, %v5054_v20 }
0x1b26   : > { %v5058_v22 = vadd.f32 1e-05, %v5056_v21 }
0x1b28   : > { %9671 = vrsqrt.f32 %v5058_v22 }
0x1b31   : > { %v9670_v23 = vpop.eup %9669 }
0x1b32   : > { %v5061_v26 = vmul.f32 %v9670_v23, %v10970_v8  ;;  %v9380_v8 = vld [vmem:[#allocation20 + $0x2b0] sm:$0xff]  }
0x1b34   : > { %v5069_v28 = vmul.f32 %v7982_v24, %v5061_v26 }
0x1b35   : > { %v9672_v27 = vpop.eup %9671 }
0x1b36   : > { %v5062_v41 = vmul.f32 %v9672_v27, %v10974_v54  ;;  %v10980_v31 = vadd.f32 %v7983_v29, %v5069_v28  ;;  %v9384_v54 = vld [vmem:[#allocation20 + $0x2a8] sm:$0xff]  }
0x1b38   : > { %v5070_v30 = vmul.f32 %v7982_v24, %v5062_v41 }
0x1b3a   : > { %v10982_v32 = vadd.f32 %v7983_v29, %v5070_v30 }
0x1b3c   : > { %v5079_v35 = vpack.c.bf16 %v10982_v32, %v10980_v31 }
0x1b3e   : > { %5329 = vmatmul.mubr.bf16.vlgmr.msra.gmra.mxu1 %v5079_v35  ;;  %5372 = vmatmul.mubr.bf16.vlgmr.msra.gmra.mxu0 %v5079_v35 }
0x1b3f   : > { %8370 = vmatpush3.bf16.msra.mxu1 %v9375_v37  ;;  %8392 = vmatpush3.bf16.msra.mxu0 %v9376_v38 }
0x1b40   : > { %8371 = vmatprep.subr.bf16.mxu1 %v9377_v43  ;;  %8393 = vmatprep.subr.bf16.mxu0 %v9378_v44 }
0x1b43   : > { %8372 = vmatpush3.bf16.msra.mxu1 %v9379_v45  ;;  %8394 = vmatpush3.bf16.msra.mxu0 %v9380_v8 }
0x1b44   : > { %8373 = vmatprep.subr.bf16.mxu1 %v9381_v34  ;;  %8395 = vmatprep.subr.bf16.mxu0 %v9382_v46 }
0x1b47   : > { %8374 = vmatpush3.bf16.msra.mxu1 %v9383_v51  ;;  %8396 = vmatpush3.bf16.msra.mxu0 %v9384_v54 }
0x1b48   : > { %8375 = vmatprep.subr.bf16.mxu1 %v9385_v33  ;;  %8397 = vmatprep.subr.bf16.mxu0 %v9386_v56 }
0x1b4b   : > { %8376 = vmatpush3.bf16.msra.mxu1 %v9387_v57  ;;  %8398 = vmatpush3.bf16.msra.mxu0 %v9388_v40 }
0x1b4c   : > { %8377 = vmatprep.subr.bf16.mxu1 %v9389_v58  ;;  %8399 = vmatprep.subr.bf16.mxu0 %v9390_v59 }
0x1b4f   : > { %8378 = vmatpush3.bf16.msra.mxu1 %v9391_v60  ;;  %8400 = vmatpush3.bf16.msra.mxu0 %v9392_v39 }
0x1b50   : > { %8379 = vmatprep.subr.bf16.mxu1 %v9393_v52  ;;  %8401 = vmatprep.subr.bf16.mxu0 %v9394_v62 }
0x1b53   : > { %8380 = vmatpush3.bf16.msra.mxu1 %v9395_v63  ;;  %8402 = vmatpush3.bf16.msra.mxu0 %v9396_v47 }
0x1b54   : > { %8381 = vmatprep.subr.bf16.mxu1 %v9397_v1  ;;  %8403 = vmatprep.subr.bf16.mxu0 %v9398_v2 }
0x1b57   : > { %8382 = vmatpush3.bf16.msra.mxu1 %v9399_v48  ;;  %8404 = vmatpush3.bf16.msra.mxu0 %v9400_v49 }
0x1b58   : > { %8383 = vmatprep.subr.bf16.mxu1 %v9401_v3  ;;  %8405 = vmatprep.subr.bf16.mxu0 %v9402_v4 }
0x1b5b   : > { %8384 = vmatpush3.bf16.msra.mxu1 %v9403_v5  ;;  %8406 = vmatpush3.bf16.msra.mxu0 %v9404_v6 }
0x1b5c   : > { %8775 = vmatprep.subr.bf16.mxu0 %v10176_v0 }
0x1bfe   : > { %v5330_v11 = vpop.f32.mrf.mxu1  ;;  %v5373_v12 = vpop.f32.mrf.mxu0 }
0x1bff   : > { %v5331_v15 = vadd.f32 %v5330_v11, %v5119_v9  ;;  %v5374_v16 = vadd.f32 %v5373_v12, %v5127_v10 }
0x1c00   : > { %v5332_v17 = vpop.f32.mrf.mxu1  ;;  %v5375_v18 = vpop.f32.mrf.mxu0 }
0x1c01   : > { %v5390_v19 = vmul.f32 0.70710677, %v5331_v15  ;;  %v5392_v20 = vmul.f32 0.70710677, %v5374_v16  ;;  %v5333_v21 = vadd.f32 %v5332_v17, %v5123_v13  ;;  %v5376_v22 = vadd.f32 %v5375_v18, %v5131_v14 }
0x1c02   : > { %v5334_v23 = vpop.f32.mrf.mxu1  ;;  %v5377_v26 = vpop.f32.mrf.mxu0  ;;  %v5382_v54 = vmul.f32 0.5, %v5331_v15  ;;  %v5384_v4 = vmul.f32 0.5, %v5374_v16 }
0x1c03   : > { %v5335_v24 = vadd.f32 %v5334_v23, %v5119_v9  ;;  %v5378_v27 = vadd.f32 %v5377_v26, %v5127_v10  ;;  %9673 = verf.f32 %v5390_v19  ;;  %v5391_v41 = vmul.f32 0.70710677, %v5333_v21  ;;  %v8018_v19 = vld [vmem:[%s11264_s10 + $0x2] ss:$0 sm:$0xff] }
0x1c04   : > { %v5336_v28 = vpop.f32.mrf.mxu1  ;;  %v5379_v29 = vpop.f32.mrf.mxu0  ;;  %9675 = verf.f32 %v5392_v20  ;;  %v5393_v30 = vmul.f32 0.70710677, %v5376_v22  ;;  %v5383_v33 = vmul.f32 0.5, %v5333_v21  ;;  %v5385_v2 = vmul.f32 0.5, %v5376_v22 }
0x1c05   : > { %v5394_v35 = vmul.f32 0.70710677, %v5335_v24  ;;  %9677 = verf.f32 %v5391_v41  ;;  %v5396_v50 = vmul.f32 0.70710677, %v5378_v27  ;;  %v5337_v36 = vadd.f32 %v5336_v28, %v5123_v13 }
0x1c06   : > { %v5380_v37 = vadd.f32 %v5379_v29, %v5131_v14  ;;  %9679 = verf.f32 %v5393_v30  ;;  %v5386_v60 = vmul.f32 0.5, %v5335_v24  ;;  %v5388_v63 = vmul.f32 0.5, %v5378_v27 }
0x1c07   : > { %9681 = verf.f32 %v5394_v35  ;;  %v5395_v38 = vmul.f32 0.70710677, %v5337_v36  ;;  %v5387_v47 = vmul.f32 0.5, %v5337_v36 }
0x1c08   : > { %9683 = verf.f32 %v5396_v50  ;;  %v5397_v43 = vmul.f32 0.70710677, %v5380_v37  ;;  %v5389_v49 = vmul.f32 0.5, %v5380_v37 }
0x1c09   : > { %9685 = verf.f32 %v5395_v38 }
0x1c0a   : > { %9687 = verf.f32 %v5397_v43  ;;  %v9405_v43 = vld [vmem:[#allocation8 + $0x2e8] ss:$12 sps:$4 sm:$0xff]  }
0x1c10   : > { %v9674_v44 = vpop.eup %9673 }
0x1c11   : > { %v9676_v45 = vpop.eup %9675  ;;  %v5406_v58 = vadd.f32 1.0, %v9674_v44  ;;  %v9407_v44 = vld [vmem:[#allocation8 + $0x2ec] ss:$12 sps:$4 sm:$0xff]  }
0x1c12   : > { %v9678_v8 = vpop.eup %9677  ;;  %v5408_v62 = vadd.f32 1.0, %v9676_v45  ;;  %v9408_v45 = vld [vmem:[#allocation8 + $0x2f0] ss:$12 sps:$4 sm:$0xff]   ;;  %5997 = vmatprep.subr.bf16.mxu1 %v9407_v44 }
0x1c13   : > { %v9680_v34 = vpop.eup %9679  ;;  %v5407_v56 = vadd.f32 1.0, %v9678_v8  ;;  %v5414_v9 = vmul.f32 %v5406_v58, %v5382_v54  ;;  %v9415_v58 = vld [vmem:[#allocation8 + $0x2bc] ss:$12 sps:$4 sm:$0xff]  }
0x1c14   : > { %v9682_v46 = vpop.eup %9681  ;;  %v5409_v59 = vadd.f32 1.0, %v9680_v34  ;;  %v5416_v12 = vmul.f32 %v5408_v62, %v5384_v4  ;;  %v9420_v62 = vld [vmem:[#allocation8 + $0x2a8] ss:$12 sps:$4 sm:$0xff]   ;;  %v9429_v4 = vld [vmem:[#allocation8 + $0x258] ss:$12 sps:$4 sm:$0xff]  }
0x1c15   : > { %v9684_v51 = vpop.eup %9683  ;;  %v5410_v57 = vadd.f32 1.0, %v9682_v46  ;;  %v5415_v5 = vmul.f32 %v5407_v56, %v5383_v33  ;;  %v9411_v56 = vld [vmem:[#allocation8 + $0x2d4] ss:$12 sps:$4 sm:$0xff]  }
0x1c16   : > { %v9686_v40 = vpop.eup %9685  ;;  %v5412_v39 = vadd.f32 1.0, %v9684_v51  ;;  %v5417_v10 = vmul.f32 %v5409_v59, %v5385_v2  ;;  %v9413_v59 = vld [vmem:[#allocation8 + $0x2b8] ss:$12 sps:$4 sm:$0xff]   ;;  %v9427_v2 = vld [vmem:[#allocation8 + $0x274] ss:$12 sps:$4 sm:$0xff]  }
0x1c17   : > { %v9688_v52 = vpop.eup %9687  ;;  %v5411_v1 = vadd.f32 1.0, %v9686_v40  ;;  %v5418_v48 = vmul.f32 %v5410_v57, %v5386_v60  ;;  %v9409_v57 = vld [vmem:[#allocation8 + $0x2d0] ss:$12 sps:$4 sm:$0xff]   ;;  %v9412_v40 = vld [vmem:[#allocation8 + $0x2d8] ss:$12 sps:$4 sm:$0xff]  }
0x1c18   : > { %v5413_v3 = vadd.f32 1.0, %v9688_v52  ;;  %v5420_v6 = vmul.f32 %v5412_v39, %v5388_v63  ;;  %v9416_v60 = vld [vmem:[#allocation8 + $0x2c0] ss:$12 sps:$4 sm:$0xff]   ;;  %v9419_v39 = vld [vmem:[#allocation8 + $0x2a4] ss:$12 sps:$4 sm:$0xff]  }
0x1c19   : > { %v5419_v7 = vmul.f32 %v5411_v1, %v5387_v47  ;;  %v5422_v14 = vpack.c.bf16 %v5418_v48, %v5414_v9  ;;  %v9417_v52 = vld [vmem:[#allocation8 + $0x2a0] ss:$12 sps:$4 sm:$0xff]   ;;  %v9421_v47 = vld [vmem:[#allocation8 + $0x288] ss:$12 sps:$4 sm:$0xff]   ;;  %v9424_v1 = vld [vmem:[#allocation8 + $0x290] ss:$12 sps:$4 sm:$0xff]  }
0x1c1a   : > { %v5421_v11 = vmul.f32 %v5413_v3, %v5389_v49  ;;  %v5424_v17 = vpack.c.bf16 %v5420_v6, %v5416_v12  ;;  %v9423_v63 = vld [vmem:[#allocation8 + $0x28c] ss:$12 sps:$4 sm:$0xff]   ;;  %v9425_v48 = vld [vmem:[#allocation8 + $0x270] ss:$12 sps:$4 sm:$0xff]   ;;  %v9436_v9 = vld [vmem:[#allocation8 + $0x248] ss:$12 sps:$4 sm:$0xff]  }
0x1c1b   : > { %v5423_v13 = vpack.c.bf16 %v5419_v7, %v5415_v5  ;;  %v9428_v49 = vld [vmem:[#allocation8 + $0x278] ss:$12 sps:$4 sm:$0xff]   ;;  %v9431_v3 = vld [vmem:[#allocation8 + $0x25c] ss:$12 sps:$4 sm:$0xff]   ;;  %v9432_v5 = vld [vmem:[#allocation8 + $0x260] ss:$12 sps:$4 sm:$0xff]  }
0x1c1c   : > { %v5425_v15 = vpack.c.bf16 %v5421_v11, %v5417_v10  ;;  %v9435_v6 = vld [vmem:[#allocation8 + $0x244] ss:$12 sps:$4 sm:$0xff]   ;;  %v9433_v7 = vld [vmem:[#allocation8 + $0x240] ss:$12 sps:$4 sm:$0xff]  }
0x1c1d   : > { %5723 = vmatprep.mubr.bf16.mxu1 %v5423_v13 }
0x1c1e   : > { %5764 = vmatprep.mubr.bf16.mxu0 %v5425_v15  ;;  %5724 = vmatmul.mubr.bf16.vlgmr.msra.gmra.mxu1 %v5422_v14 }
0x1c1f   : > { %5765 = vmatmul.mubr.bf16.vlgmr.msra.gmra.mxu0 %v5424_v17  ;;  %6029 = vmatprep.mubr.bf16.mxu1 %v10178_v42 }
0x1c20   : > { %8791 = vmatprep.mubr.msk.bf16.mxu0 %vm10177_vm0, %v10176_v0  ;;  %8776 = vmatpush3.bf16.msra.mxu0 %v9408_v45 }
0x1c21   : > { %5998 = vmatpush1.bf16.msra.mxu1 %v9405_v43  ;;  %8777 = vmatprep.subr.bf16.mxu0 %v10176_v0 }
0x1c22   : > { %5999 = vmatprep.subr.bf16.mxu1 %v9411_v56 }
0x1c24   : > { %8778 = vmatpush3.bf16.msra.mxu0 %v9412_v40 }
0x1c25   : > { %6000 = vmatpush1.bf16.msra.mxu1 %v9409_v57  ;;  %8779 = vmatprep.subr.bf16.mxu0 %v10176_v0 }
0x1c26   : > { %6001 = vmatprep.subr.bf16.mxu1 %v9415_v58 }
0x1c28   : > { %8780 = vmatpush3.bf16.msra.mxu0 %v9416_v60 }
0x1c29   : > { %6002 = vmatpush1.bf16.msra.mxu1 %v9413_v59  ;;  %8781 = vmatprep.subr.bf16.mxu0 %v10176_v0 }
0x1c2a   : > { %6003 = vmatprep.subr.bf16.mxu1 %v9419_v39 }
0x1c2c   : > { %8782 = vmatpush3.bf16.msra.mxu0 %v9420_v62 }
0x1c2d   : > { %6004 = vmatpush1.bf16.msra.mxu1 %v9417_v52  ;;  %8783 = vmatprep.subr.bf16.mxu0 %v10176_v0 }
0x1c2e   : > { %6005 = vmatprep.subr.bf16.mxu1 %v9423_v63 }
0x1c30   : > { %8784 = vmatpush3.bf16.msra.mxu0 %v9424_v1 }
0x1c31   : > { %6006 = vmatpush1.bf16.msra.mxu1 %v9421_v47  ;;  %8785 = vmatprep.subr.bf16.mxu0 %v10176_v0 }
0x1c32   : > { %6007 = vmatprep.subr.bf16.mxu1 %v9427_v2 }
0x1c34   : > { %8786 = vmatpush3.bf16.msra.mxu0 %v9428_v49 }
0x1c35   : > { %6008 = vmatpush1.bf16.msra.mxu1 %v9425_v48  ;;  %8787 = vmatprep.subr.bf16.mxu0 %v10176_v0 }
0x1c36   : > { %6009 = vmatprep.subr.bf16.mxu1 %v9431_v3 }
0x1c38   : > { %8788 = vmatpush3.bf16.msra.mxu0 %v9432_v5 }
0x1c39   : > { %6010 = vmatpush1.bf16.msra.mxu1 %v9429_v4  ;;  %8789 = vmatprep.subr.bf16.mxu0 %v10176_v0 }
0x1c3a   : > { %6011 = vmatprep.subr.bf16.mxu1 %v9435_v6 }
0x1c3c   : > { %8790 = vmatpush3.bf16.msra.mxu0 %v9436_v9 }
0x1c3d   : > { %6012 = vmatpush1.bf16.msra.mxu1 %v9433_v7  ;;  %8819 = vmatprep.subr.bf16.mxu0 %v10176_v0 }
0x1c3e   : > { %8795 = vmatprep.subr.bf16.mxu1 %v10176_v0 }
0x1cde   : > { %v8385_v16 = vpop.f32.mrf.mxu1 }
0x1cdf   : > { %v8407_v18 = vpop.f32.mrf.mxu0 }
0x1ce0   : > { %v8386_v20 = vpop.f32.mrf.mxu1 }
0x1ce1   : > { %v8387_v21 = vadd.f32 %v8386_v20, %v8385_v16  ;;  %v8408_v22 = vpop.f32.mrf.mxu0 }
0x1ce2   : > { %v8388_v23 = vpop.f32.mrf.mxu1  ;;  %v8409_v24 = vadd.f32 %v8408_v22, %v8407_v18  ;;  %v8051_v18 = vld [vmem:[#allocation16 + $0x2] ss:$0 sm:$0xff]  ;;  %v8052_v22 = vld [vmem:[#allocation17 + $0x2] ss:$0 sm:$0xff] }
0x1ce3   : > { %v5726_v26 = vadd.f32 %v8387_v21, %v8018_v19  ;;  %v8410_v27 = vpop.f32.mrf.mxu0 }
0x1ce4   : > { %v8389_v41 = vpop.f32.mrf.mxu1 }
0x1ce5   : > { %v5767_v28 = vadd.f32 %v8409_v24, %v5726_v26  ;;  %v8390_v29 = vadd.f32 %v8389_v41, %v8388_v23  ;;  %v8411_v30 = vpop.f32.mrf.mxu0  ;;  %v5852_v41 = vld [vmem:[#allocation10 + $0x9] sm:$0x7] }
0x1ce6   : > { %v8412_v50 = vadd.f32 %v8411_v30, %v8410_v27  ;;  %v5857_v30 = vrot.slane %v5852_v41, %v10575_v61 }
0x1ce7   : > { %v5729_v35 = vadd.f32 %v8390_v29, %v8018_v19  ;;  %v5773_v36 = vadd.f32 %v5767_v28, %v10980_v31 }
0x1ce9   : > { %v5770_v37 = vadd.f32 %v8412_v50, %v5729_v35  ;;  %5779 = vadd.xlane.f32.xlu1 %v5773_v36  ;;  %v5865_v35 = vrot.slane %v5852_v41, %v10568_v53 }
0x1ceb   : > { %v5774_v38 = vadd.f32 %v5770_v37, %v10982_v32  ;;  %v5861_v37 = vrot.slane %v5852_v41, %v10571_v55 }
0x1ced   : > { %5781 = vadd.xlane.f32.xlu0 %v5774_v38 }
0x1d72   : > { %v5780_v8 = vpop.xlane.xlu1 %5779 }
0x1d73   : > { %v5783_v34 = vmul.f32 0.0078125, %v5780_v8 }
0x1d75   : > { %v11003_v46 = vsub.f32 %v5773_v36, %v5783_v34 }
0x1d76   : > { %v5782_v51 = vpop.xlane.xlu0 %5781 }
0x1d77   : > { %v5784_v54 = vmul.f32 0.0078125, %v5782_v51  ;;  %v5787_v31 = vmul.f32 %v11003_v46, %v11003_v46 }
0x1d79   : > { %v11007_v33 = vsub.f32 %v5774_v38, %v5784_v54  ;;  %5789 = vadd.xlane.f32.xlu1 %v5787_v31 }
0x1d7b   : > { %v5788_v32 = vmul.f32 %v11007_v33, %v11007_v33 }
0x1d7d   : > { %5791 = vadd.xlane.f32.xlu0 %v5788_v32 }
0x1e02   : > { %v5790_v10 = vpop.xlane.xlu1 %5789 }
0x1e03   : > { %v5793_v11 = vmul.f32 0.0078125, %v5790_v10 }
0x1e05   : > { %v5795_v12 = vadd.f32 1e-05, %v5793_v11 }
0x1e06   : > { %v5792_v13 = vpop.xlane.xlu0 %5791 }
0x1e07   : > { %9689 = vrsqrt.f32 %v5795_v12  ;;  %v5794_v14 = vmul.f32 0.0078125, %v5792_v13 }
0x1e09   : > { %v5796_v15 = vadd.f32 1e-05, %v5794_v14 }
0x1e0b   : > { %9691 = vrsqrt.f32 %v5796_v15 }
0x1e14   : > { %v9690_v17 = vpop.eup %9689 }
0x1e15   : > { %v5799_v16 = vmul.f32 %v9690_v17, %v11003_v46 }
0x1e17   : > { %v5807_v21 = vmul.f32 %v8051_v18, %v5799_v16 }
0x1e18   : > { %v9692_v19 = vpop.eup %9691 }
0x1e19   : > { %v5800_v20 = vmul.f32 %v9692_v19, %v11007_v33  ;;  %v11021_v26 = vadd.f32 %v8052_v22, %v5807_v21 }
0x1e1b   : > { %v5808_v23 = vmul.f32 %v8051_v18, %v5800_v20 }
0x1e1d   : > { %v11023_v24 = vadd.f32 %v8052_v22, %v5808_v23 }
0x1e1f   : > { %v5817_v27 = vpack.c.bf16 %v11023_v24, %v11021_v26 }
0x1e21   : > { %6030 = vmatmul.mubr.bf16.vlgmr.msra.gmra.mxu1 %v5817_v27  ;;  %8792 = vmatmul.mubr.bf16.vlgmr.msra.gmra.mxu0 %v5817_v27 }
0x1e22   : > { %8797 = vmatprep.mubr.msk.bf16.mxu1 %vm10177_vm0, %v10176_v0  ;;  %8821 = vmatprep.mubr.msk.bf16.mxu0 %vm10177_vm0, %v10176_v0 }
0x1ee1   : > { %v6031_v28 = vpop.f32.mrf.mxu1  ;;  %v6074_v29 = vpop.f32.mrf.mxu0 }
0x1ee2   : > { %v6032_v44 = vadd.f32 %v6031_v28, %v5857_v30  ;;  %v6075_v45 = vadd.f32 %v6074_v29, %v5865_v35 }
0x1ee3   : > { %v6033_v50 = vpop.f32.mrf.mxu1  ;;  %v8793_v36 = vpop.f32.mrf.mxu0 }
0x1ee4   : > { %v6034_v54 = vadd.f32 %v6033_v50, %v5861_v37 }
0x1ee5   : > { %v6035_v38 = vpop.f32.mrf.mxu1  ;;  %v6077_v43 = vpop.f32.mrf.mxu0 }
0x1ee6   : > { %v6036_v8 = vadd.f32 %v6035_v38, %v5857_v30  ;;  %v6078_v34 = vadd.f32 %v6077_v43, %v5865_v35 }
0x1ee7   : > { %v6037_v46 = vpop.f32.mrf.mxu1  ;;  %v8794_v51 = vpop.f32.mrf.mxu0 }
0x1ee8   : > { %v6081_v31 = vpack.c.bf16 %v6036_v8, %v6032_v44  ;;  %v11034_v33 = vpack.c.bf16 %v6078_v34, %v6075_v45  ;;  %v6038_v32 = vadd.f32 %v6037_v46, %v5861_v37 }
0x1eea   : > { %v6082_v56 = vpack.c.bf16 %v6038_v32, %v6034_v54  ;;  %8820 = vmatpush3.bf16.msra.mxu0 %v11034_v33  ;;  %6085 = vrot.lane.b32.xlu0 %v6081_v31, %s10180_s20 }
0x1eeb   : > { %8831 = vmatprep.subr.bf16.mxu0 %v10176_v0 }
0x1eec   : > { %6092 = vrot.lane.b32.xlu1 %v6082_v56, %s10180_s20  ;;  %v6112_v57 = vsel %vm1121_vm2, %v6082_v56, 0 }
0x1eed   : > { %8796 = vmatpush3.bf16.xpose.msra.mxu1 %v6112_v57 }
0x1eee   : > { %6096 = vrot.lane.b32.xlu0 %v6082_v56, %s10181_s26  ;;  %8801 = vmatprep.subr.bf16.mxu1 %v10176_v0 }
0x1ef0   : > { %6094 = vrot.lane.b32.xlu1 %v6082_v56, %s10179_s28 }
0x1ef4   : > { %6087 = vrot.lane.b32.xlu1 %v6081_v31, %s10179_s28  ;;  %8798 = vmatmul.mubr.msk.bf16.vlgmr.msra.gmra.mxu1 %vm1121_vm2, %v6081_v31 }
0x1ef5   : > { %8803 = vmatprep.mubr.msk.bf16.mxu1 %vm10177_vm0, %v10176_v0 }
0x1ef8   : > { %6089 = vrot.lane.b32.xlu1 %v6081_v31, %s10181_s26 }
0x1f5c   : > { %v6086_v60 = vpop.permute.xlu0 %6085 }
0x1f5e   : > { %v6093_v40 = vpop.permute.xlu1 %6092 }
0x1f5f   : > { %v6159_v58 = vsel %vm1121_vm2, %v6093_v40, 0 }
0x1f60   : > { %8802 = vmatpush3.bf16.xpose.msra.mxu1 %v6159_v58  ;;  %v6097_v52 = vpop.permute.xlu0 %6096 }
0x1f61   : > { %8807 = vmatprep.subr.bf16.mxu1 %v10176_v0  ;;  %v6253_v63 = vsel %vm1121_vm2, %v6097_v52, 0 }
0x1f62   : > { %v6095_v59 = vpop.permute.xlu1 %6094 }
0x1f63   : > { %v6206_v39 = vsel %vm1121_vm2, %v6095_v59, 0 }
0x1f66   : > { %v6088_v62 = vpop.permute.xlu1 %6087 }
0x1f67   : > { %8804 = vmatmul.mubr.msk.bf16.vlgmr.msra.gmra.mxu1 %vm1121_vm2, %v6086_v60 }
0x1f68   : > { %8808 = vmatpush3.bf16.xpose.msra.mxu1 %v6206_v39  ;;  %8809 = vmatprep.mubr.msk.bf16.mxu1 %vm10177_vm0, %v10176_v0 }
0x1f69   : > { %8813 = vmatprep.subr.bf16.mxu1 %v10176_v0 }
0x1f6a   : > { %v6090_v47 = vpop.permute.xlu1 %6089 }
0x1f6f   : > { %8810 = vmatmul.mubr.msk.bf16.vlgmr.msra.gmra.mxu1 %vm1121_vm2, %v6088_v62 }
0x1f70   : > { %8814 = vmatpush3.bf16.xpose.msra.mxu1 %v6253_v63  ;;  %8815 = vmatprep.mubr.msk.bf16.mxu1 %vm10177_vm0, %v10176_v0 }
0x1f71   : > { %8825 = vmatprep.subr.bf16.mxu1 %v10176_v0 }
0x1f77   : > { %8816 = vmatmul.mubr.msk.bf16.vlgmr.msra.gmra.mxu1 %vm1121_vm2, %v6090_v47 }
0x1f78   : > { %8827 = vmatprep.mubr.msk.bf16.mxu1 %vm10177_vm0, %v10176_v0 }
0x1fb4   : > { %v6148_v1 = vpop.f32.mrf.mxu1 }
0x1fb5   : > { %v6296_v2 = vsel %vm1310_vm3, %v6148_v1, -inf }
0x1fb6   : > { %6297 = vmax.xlane.f32.xlu0 %v6296_v2  ;;  %v8799_v48 = vpop.f32.mrf.mxu1 }
0x1fb8   : > { %v6151_v49 = vpop.f32.mrf.mxu1 }
0x1fb9   : > { %v6299_v3 = vsel %vm1310_vm3, %v6151_v49, -inf }
0x1fba   : > { %6300 = vmax.xlane.f32.xlu1 %v6299_v3  ;;  %v8800_v4 = vpop.f32.mrf.mxu1 }
0x2027   : > { %v6195_v5 = vpop.f32.mrf.mxu1 }
0x2028   : > { %v6302_v6 = vsel %vm1310_vm3, %v6195_v5, -inf }
0x2029   : > { %6303 = vmax.xlane.f32.xlu0 %v6302_v6  ;;  %v8805_v7 = vpop.f32.mrf.mxu1 }
0x202b   : > { %v6198_v9 = vpop.f32.mrf.mxu1 }
0x202c   : > { %v6305_v10 = vsel %vm1310_vm3, %v6198_v9, -inf }
0x202d   : > { %6306 = vmax.xlane.f32.xlu0 %v6305_v10  ;;  %v8806_v11 = vpop.f32.mrf.mxu1 }
0x202f   : > { %v6242_v12 = vpop.f32.mrf.mxu1 }
0x2030   : > { %v6308_v13 = vsel %vm1310_vm3, %v6242_v12, -inf }
0x2031   : > { %6309 = vmax.xlane.f32.xlu1 %v6308_v13  ;;  %v8811_v14 = vpop.f32.mrf.mxu1 }
0x2033   : > { %v6245_v15 = vpop.f32.mrf.mxu1 }
0x2034   : > { %v6311_v17 = vsel %vm1310_vm3, %v6245_v15, -inf }
0x2035   : > { %6312 = vmax.xlane.f32.xlu0 %v6311_v17  ;;  %v8812_v16 = vpop.f32.mrf.mxu1 }
0x2037   : > { %v6289_v18 = vpop.f32.mrf.mxu1 }
0x2038   : > { %v6314_v19 = vsel %vm1310_vm3, %v6289_v18, -inf }
0x2039   : > { %6315 = vmax.xlane.f32.xlu1 %v6314_v19  ;;  %v8817_v20 = vpop.f32.mrf.mxu1 }
0x203b   : > { %v6292_v21 = vpop.f32.mrf.mxu1 }
0x203c   : > { %v6317_v22 = vsel %vm1310_vm3, %v6292_v21, -inf }
0x203d   : > { %6318 = vmax.xlane.f32.xlu0 %v6317_v22  ;;  %v8818_v23 = vpop.f32.mrf.mxu1 }
0x203f   : > { %v6298_v29 = vpop.xlane.xlu0 %6297 }
0x2040   : > { %v6320_v35 = vsub.f32 %v6148_v1, %v6298_v29 }
0x2042   : > { %v6328_v36 = vmul.f32 1.442695, %v6320_v35 }
0x2043   : > { %v6301_v27 = vpop.xlane.xlu1 %6300 }
0x2044   : > { %v6321_v41 = vsub.f32 %v6151_v49, %v6301_v27 }
0x2046   : > { %v6330_v28 = vmul.f32 1.442695, %v6321_v41 }
0x2048   : > { %9693 = vpow2.f32 %v6330_v28 }
0x2049   : > { %9695 = vpow2.f32 %v6328_v36 }
0x204a   : > { %6099 = vrot.lane.b32.xlu1 %v11034_v33, %s10180_s20 }
0x2055   : > { %v11074_v30 = vpop.eup %9693 }
0x2056   : > { %v6347_v50 = vsel %vm1310_vm3, %v11074_v30, 0.0  ;;  %v9696_v37 = vpop.eup %9695 }
0x2057   : > { %6348 = vadd.xlane.f32.xlu0 %v6347_v50  ;;  %v6344_v38 = vsel %vm1310_vm3, %v9696_v37, 0.0 }
0x206e   : > { %6345 = vadd.xlane.f32.xlu1 %v6344_v38 }
0x20b2   : > { %v6304_v43 = vpop.xlane.xlu0 %6303 }
0x20b3   : > { %v6322_v44 = vsub.f32 %v6195_v5, %v6304_v43 }
0x20b5   : > { %v6332_v45 = vmul.f32 1.442695, %v6322_v44 }
0x20b6   : > { %v6307_v8 = vpop.xlane.xlu0 %6306 }
0x20b7   : > { %9697 = vpow2.f32 %v6332_v45  ;;  %v6323_v34 = vsub.f32 %v6198_v9, %v6307_v8 }
0x20b9   : > { %v6334_v46 = vmul.f32 1.442695, %v6323_v34 }
0x20ba   : > { %v6310_v51 = vpop.xlane.xlu1 %6309 }
0x20bb   : > { %9699 = vpow2.f32 %v6334_v46  ;;  %v6324_v54 = vsub.f32 %v6242_v12, %v6310_v51  ;;  %v9437_v46 = vld [vmem:[#allocation11 + $0xf8] sm:$0xff]   ;;  %v9438_v51 = vld [vmem:[#allocation11 + $0xf0] sm:$0xff]  }
0x20bd   : > { %v6336_v31 = vmul.f32 1.442695, %v6324_v54  ;;  %v9439_v54 = vld [vmem:[#allocation11 + $0xe8] sm:$0xff]  }
0x20be   : > { %v6313_v32 = vpop.xlane.xlu0 %6312 }
0x20bf   : > { %9701 = vpow2.f32 %v6336_v31  ;;  %v6325_v56 = vsub.f32 %v6245_v15, %v6313_v32  ;;  %v9440_v31 = vld [vmem:[#allocation11 + $0xe0] sm:$0xff]  }
0x20c1   : > { %v6338_v57 = vmul.f32 1.442695, %v6325_v56 }
0x20c2   : > { %v6316_v40 = vpop.xlane.xlu1 %6315 }
0x20c3   : > { %9703 = vpow2.f32 %v6338_v57  ;;  %v6326_v58 = vsub.f32 %v6289_v18, %v6316_v40 }
0x20c4   : > { %v9698_v59 = vpop.eup %9697 }
0x20c5   : > { %v6340_v60 = vmul.f32 1.442695, %v6326_v58  ;;  %v6350_v39 = vsel %vm1310_vm3, %v9698_v59, 0.0 }
0x20c6   : > { %6351 = vadd.xlane.f32.xlu1 %v6350_v39  ;;  %v6100_v52 = vpop.permute.xlu1 %6099  ;;  %v6319_v62 = vpop.xlane.xlu0 %6318 }
0x20c7   : > { %9705 = vpow2.f32 %v6340_v60  ;;  %v6327_v63 = vsub.f32 %v6292_v21, %v6319_v62  ;;  %8826 = vmatpush3.bf16.msra.mxu1 %v6100_v52  ;;  %v9442_v60 = vld [vmem:[#allocation11 + $0xd0] sm:$0xff]   ;;  %v9443_v62 = vld [vmem:[#allocation11 + $0xc8] sm:$0xff]  }
0x20c8   : > { %v9700_v47 = vpop.eup %9699  ;;  %8837 = vmatprep.subr.bf16.mxu1 %v10176_v0 }
0x20c9   : > { %v6342_v1 = vmul.f32 1.442695, %v6327_v63  ;;  %v6353_v2 = vsel %vm1310_vm3, %v9700_v47, 0.0 }
0x20ca   : > { %6354 = vadd.xlane.f32.xlu0 %v6353_v2 }
0x20cb   : > { %9707 = vpow2.f32 %v6342_v1 }
0x20cc   : > { %v9702_v48 = vpop.eup %9701 }
0x20cd   : > { %v6356_v49 = vsel %vm1310_vm3, %v9702_v48, 0.0 }
0x20ce   : > { %6357 = vadd.xlane.f32.xlu1 %v6356_v49 }
0x20d0   : > { %v9704_v3 = vpop.eup %9703 }
0x20d1   : > { %v6359_v4 = vsel %vm1310_vm3, %v9704_v3, 0.0 }
0x20d2   : > { %6360 = vadd.xlane.f32.xlu0 %v6359_v4 }
0x20d4   : > { %v9706_v5 = vpop.eup %9705 }
0x20d5   : > { %v6362_v6 = vsel %vm1310_vm3, %v9706_v5, 0.0 }
0x20d6   : > { %6363 = vadd.xlane.f32.xlu1 %v6362_v6 }
0x20d8   : > { %v9708_v7 = vpop.eup %9707 }
0x20d9   : > { %v6365_v9 = vsel %vm1310_vm3, %v9708_v7, 0.0 }
0x20da   : > { %6366 = vadd.xlane.f32.xlu0 %v6365_v9 }
0x20e0   : > { %v6349_v10 = vpop.xlane.xlu0 %6348 }
0x20e1   : > { %9709 = vrcp.f32 %v6349_v10 }
0x20e7   : > { %6105 = vrot.lane.b32.xlu1 %v11034_v33, %s10181_s26 }
0x20ee   : > { %v9710_v12 = vpop.eup %9709 }
0x20ef   : > { %v6377_v15 = vmul.f32 %v9710_v12, %v11074_v30 }
0x20f0   : > { %6102 = vrot.lane.b32.xlu0 %v11034_v33, %s10179_s28 }
0x20f7   : > { %v6346_v11 = vpop.xlane.xlu1 %6345 }
0x20f8   : > { %9711 = vrcp.f32 %v6346_v11 }
0x2105   : > { %v9712_v13 = vpop.eup %9711 }
0x2106   : > { %v6376_v14 = vmul.f32 %v9712_v13, %v9696_v37 }
0x2108   : > { %v6384_v17 = vpack.c.bf16 %v6377_v15, %v6376_v14 }
0x210a   : > { %8822 = vmatmul.mubr.msk.bf16.vlgmr.msra.gmra.mxu0 %vm1310_vm3, %v6384_v17 }
0x210b   : > { %8833 = vmatprep.mubr.msk.bf16.mxu0 %vm10177_vm0, %v10176_v0 }
0x214f   : > { %v6352_v16 = vpop.xlane.xlu1 %6351 }
0x2150   : > { %9713 = vrcp.f32 %v6352_v16  ;;  %v8086_v16 = vld [vmem:[%s11193_s7 + $0x3] ss:$0 sm:$0xff] }
0x2153   : > { %v6355_v18 = vpop.xlane.xlu0 %6354 }
0x2154   : > { %9715 = vrcp.f32 %v6355_v18 }
0x2157   : > { %v6358_v33 = vpop.xlane.xlu1 %6357 }
0x2158   : > { %9717 = vrcp.f32 %v6358_v33 }
0x215b   : > { %v6361_v19 = vpop.xlane.xlu0 %6360 }
0x215c   : > { %9719 = vrcp.f32 %v6361_v19 }
0x215d   : > { %v9714_v20 = vpop.eup %9713 }
0x215e   : > { %v6378_v23 = vmul.f32 %v9714_v20, %v9698_v59  ;;  %v9441_v59 = vld [vmem:[#allocation11 + $0xd8] sm:$0xff]  }
0x215f   : > { %v6364_v21 = vpop.xlane.xlu1 %6363 }
0x2160   : > { %9721 = vrcp.f32 %v6364_v21 }
0x2161   : > { %v9716_v22 = vpop.eup %9715 }
0x2162   : > { %v6379_v27 = vmul.f32 %v9716_v22, %v9700_v47  ;;  %v9444_v47 = vld [vmem:[#allocation11 + $0xc0] sm:$0xff]  }
0x2163   : > { %v6367_v41 = vpop.xlane.xlu0 %6366  ;;  %v6106_v29 = vpop.permute.xlu1 %6105 }
0x2164   : > { %v6385_v28 = vpack.c.bf16 %v6379_v27, %v6378_v23  ;;  %9723 = vrcp.f32 %v6367_v41  ;;  %v9445_v41 = vld [vmem:[#allocation19 + $0x3e0] ss:$16 sps:$4 sm:$0xff]  }
0x2165   : > { %v9718_v30 = vpop.eup %9717 }
0x2166   : > { %8828 = vmatmul.mubr.msk.bf16.vlgmr.msra.gmra.mxu1 %vm1310_vm3, %v6385_v28  ;;  %v6380_v36 = vmul.f32 %v9718_v30, %v9702_v48  ;;  %v9447_v28 = vld [vmem:[#allocation19 + $0x3e4] ss:$16 sps:$4 sm:$0xff]  }
0x2167   : > { %8838 = vmatpush3.bf16.msra.mxu1 %v6106_v29  ;;  %v6103_v35 = vpop.permute.xlu0 %6102  ;;  %8839 = vmatprep.mubr.msk.bf16.mxu1 %vm10177_vm0, %v10176_v0  ;;  %v9448_v29 = vld [vmem:[#allocation19 + $0x3e8] ss:$16 sps:$4 sm:$0xff]  }
0x2168   : > { %8832 = vmatpush3.bf16.msra.mxu0 %v6103_v35  ;;  %6960 = vmatprep.subr.bf16.mxu1 %v9447_v28  ;;  %v9497_v28 = vld [vmem:[#allocation20 + $0x370] sm:$0xff]  }
0x2169   : > { %v9720_v50 = vpop.eup %9719  ;;  %8843 = vmatprep.subr.bf16.mxu0 %v10176_v0 }
0x216a   : > { %v6381_v37 = vmul.f32 %v9720_v50, %v9704_v3 }
0x216c   : > { %v6386_v38 = vpack.c.bf16 %v6381_v37, %v6380_v36 }
0x216d   : > { %v9722_v43 = vpop.eup %9721 }
0x216e   : > { %8834 = vmatmul.mubr.msk.bf16.vlgmr.msra.gmra.mxu0 %vm1310_vm3, %v6386_v38  ;;  %v6382_v45 = vmul.f32 %v9722_v43, %v9706_v5  ;;  %v9453_v43 = vld [vmem:[#allocation19 + $0x3c4] ss:$16 sps:$4 sm:$0xff]  }
0x216f   : > { %8859 = vmatprep.mubr.msk.bf16.mxu0 %vm10177_vm0, %v10176_v0  ;;  %8844 = vmatpush3.bf16.msra.mxu0 %v9437_v46  ;;  %v9462_v46 = vld [vmem:[#allocation19 + $0x3ac] ss:$16 sps:$4 sm:$0xff]  }
0x2170   : > { %8845 = vmatprep.subr.bf16.mxu0 %v10176_v0 }
0x2171   : > { %v9724_v44 = vpop.eup %9723 }
0x2172   : > { %v6383_v8 = vmul.f32 %v9724_v44, %v9708_v7  ;;  %v9456_v44 = vld [vmem:[#allocation19 + $0x3cc] ss:$16 sps:$4 sm:$0xff]  }
0x2173   : > { %8846 = vmatpush3.bf16.msra.mxu0 %v9438_v51  ;;  %v9457_v51 = vld [vmem:[#allocation19 + $0x3a0] ss:$16 sps:$4 sm:$0xff]  }
0x2174   : > { %v6387_v34 = vpack.c.bf16 %v6383_v8, %v6382_v45  ;;  %8847 = vmatprep.subr.bf16.mxu0 %v10176_v0  ;;  %v9451_v45 = vld [vmem:[#allocation19 + $0x3c0] ss:$16 sps:$4 sm:$0xff]   ;;  %v9454_v8 = vld [vmem:[#allocation19 + $0x3c8] ss:$16 sps:$4 sm:$0xff]  }
0x2176   : > { %8840 = vmatmul.mubr.msk.bf16.vlgmr.msra.gmra.mxu1 %vm1310_vm3, %v6387_v34  ;;  %v9459_v34 = vld [vmem:[#allocation19 + $0x3a4] ss:$16 sps:$4 sm:$0xff]  }
0x2177   : > { %6992 = vmatprep.mubr.bf16.mxu1 %v10178_v42  ;;  %8848 = vmatpush3.bf16.msra.mxu0 %v9439_v54  ;;  %v9460_v54 = vld [vmem:[#allocation19 + $0x3a8] ss:$16 sps:$4 sm:$0xff]  }
0x2178   : > { %8849 = vmatprep.subr.bf16.mxu0 %v10176_v0  ;;  %6961 = vmatpush1.bf16.msra.mxu1 %v9445_v41  ;;  %v9496_v41 = vld [vmem:[#allocation20 + $0x3b8] sm:$0xff]  }
0x2179   : > { %6962 = vmatprep.subr.bf16.mxu1 %v9453_v43  ;;  %v9508_v43 = vld [vmem:[#allocation20 + $0x3a0] sm:$0xff]  }
0x217b   : > { %8850 = vmatpush3.bf16.msra.mxu0 %v9440_v31  ;;  %v9465_v31 = vld [vmem:[#allocation19 + $0x384] ss:$16 sps:$4 sm:$0xff]  }
0x217c   : > { %8851 = vmatprep.subr.bf16.mxu0 %v10176_v0  ;;  %6963 = vmatpush1.bf16.msra.mxu1 %v9451_v45  ;;  %v9510_v45 = vld [vmem:[#allocation20 + $0x3d8] sm:$0xff]  }
0x217d   : > { %6964 = vmatprep.subr.bf16.mxu1 %v9459_v34  ;;  %v9512_v34 = vld [vmem:[#allocation20 + $0x398] sm:$0xff]  }
0x217f   : > { %8852 = vmatpush3.bf16.msra.mxu0 %v9441_v59  ;;  %v9469_v59 = vld [vmem:[#allocation19 + $0x360] ss:$16 sps:$4 sm:$0xff]  }
0x2180   : > { %8853 = vmatprep.subr.bf16.mxu0 %v10176_v0  ;;  %6965 = vmatpush1.bf16.msra.mxu1 %v9457_v51  ;;  %v9514_v51 = vld [vmem:[#allocation20 + $0x3d0] sm:$0xff]  }
0x2181   : > { %6966 = vmatprep.subr.bf16.mxu1 %v9465_v31  ;;  %v9516_v31 = vld [vmem:[#allocation20 + $0x390] sm:$0xff]  }
0x2183   : > { %8854 = vmatpush3.bf16.msra.mxu0 %v9442_v60  ;;  %v9472_v60 = vld [vmem:[#allocation19 + $0x368] ss:$16 sps:$4 sm:$0xff]  }
0x2184   : > { %8855 = vmatprep.subr.bf16.mxu0 %v10176_v0 }
0x2187   : > { %8856 = vmatpush3.bf16.msra.mxu0 %v9443_v62  ;;  %v9475_v62 = vld [vmem:[#allocation19 + $0x340] ss:$16 sps:$4 sm:$0xff]  }
0x2188   : > { %8857 = vmatprep.subr.bf16.mxu0 %v10176_v0 }
0x218b   : > { %8858 = vmatpush3.bf16.msra.mxu0 %v9444_v47  ;;  %v9483_v47 = vld [vmem:[#allocation19 + $0x324] ss:$16 sps:$4 sm:$0xff]  }
0x21ca   : > { %v6425_v32 = vpop.f32.mrf.mxu0 }
0x21cc   : > { %v8823_v56 = vpop.f32.mrf.mxu0 }
0x21cd   : > { %v9463_v56 = vld [vmem:[#allocation19 + $0x380] ss:$16 sps:$4 sm:$0xff]  }
0x21ce   : > { %v6428_v57 = vpop.f32.mrf.mxu0  ;;  %6967 = vmatpush1.bf16.msra.mxu1 %v9463_v56  ;;  %v9518_v56 = vld [vmem:[#allocation20 + $0x3c8] sm:$0xff]  }
0x21cf   : > { %v6564_v40 = vpack.c.bf16 %v6428_v57, %v6425_v32  ;;  %v9468_v32 = vld [vmem:[#allocation19 + $0x38c] ss:$16 sps:$4 sm:$0xff]   ;;  %v9466_v57 = vld [vmem:[#allocation19 + $0x388] ss:$16 sps:$4 sm:$0xff]  }
0x21d0   : > { %v8824_v58 = vpop.f32.mrf.mxu0 }
0x21d1   : > { %v9474_v58 = vld [vmem:[#allocation19 + $0x36c] ss:$16 sps:$4 sm:$0xff]  }
0x2226   : > { %v6469_v39 = vpop.f32.mrf.mxu1 }
0x2228   : > { %v8829_v52 = vpop.f32.mrf.mxu1 }
0x2229   : > { %v9480_v52 = vld [vmem:[#allocation19 + $0x34c] ss:$16 sps:$4 sm:$0xff]  }
0x222a   : > { %v6472_v63 = vpop.f32.mrf.mxu1 }
0x222b   : > { %v6565_v1 = vpack.c.bf16 %v6472_v63, %v6469_v39  ;;  %v9477_v39 = vld [vmem:[#allocation19 + $0x344] ss:$16 sps:$4 sm:$0xff]   ;;  %v9478_v63 = vld [vmem:[#allocation19 + $0x348] ss:$16 sps:$4 sm:$0xff]  }
0x222c   : > { %v8830_v2 = vpop.f32.mrf.mxu1 }
0x222d   : > { %6569 = vrot.lane.b32.xlu1 %v6565_v1, %s10181_s26  ;;  %v9486_v1 = vld [vmem:[#allocation19 + $0x32c] ss:$16 sps:$4 sm:$0xff]   ;;  %v9481_v2 = vld [vmem:[#allocation19 + $0x320] ss:$16 sps:$4 sm:$0xff]   ;;  %s10063_s26 = scalar_lea.vmem %s7505_s25, 16 }
0x222e   : > { %v6513_v48 = vpop.f32.mrf.mxu0  ;;  %p10064_p1 = scmp.ne.s32.totalorder %s7505_s25, %s10063_s26 }
0x2230   : > { %v8835_v49 = vpop.f32.mrf.mxu0  ;;  %p10065_p4 = pnand %p10064_p1, %p11266_p3 }
0x2231   : > { %v9489_v49 = vld [vmem:[#allocation19 + $0x304] ss:$16 sps:$4 sm:$0xff]  }
0x2232   : > { %v6516_v3 = vpop.f32.mrf.mxu0  ;;  %p10066_p6 = pneg %p10065_p4 }
0x2233   : > { %v6566_v4 = vpack.c.bf16 %v6516_v3, %v6513_v48  ;;  %v9484_v48 = vld [vmem:[#allocation19 + $0x328] ss:$16 sps:$4 sm:$0xff]   ;;  %v9492_v3 = vld [vmem:[#allocation19 + $0x30c] ss:$16 sps:$4 sm:$0xff]  }
0x2234   : > { %v8836_v5 = vpop.f32.mrf.mxu0 }
0x2235   : > { %6572 = vrot.lane.b32.xlu0 %v6566_v4, %s10179_s28  ;;  %v9487_v4 = vld [vmem:[#allocation19 + $0x300] ss:$16 sps:$4 sm:$0xff]   ;;  %v9490_v5 = vld [vmem:[#allocation19 + $0x308] ss:$16 sps:$4 sm:$0xff]   ;;  %s7492_s28 = scalar_lea.sflag [#allocation4], %s10493_s3 }
0x2236   : > { %v6557_v6 = vpop.f32.mrf.mxu1 }
0x2238   : > { %v8841_v7 = vpop.f32.mrf.mxu1 }
0x223a   : > { %v6560_v9 = vpop.f32.mrf.mxu1 }
0x223b   : > { %v6567_v10 = vpack.c.bf16 %v6560_v9, %v6557_v6 }
0x223c   : > { %v8842_v11 = vpop.f32.mrf.mxu1 }
0x223d   : > { %6575 = vrot.lane.b32.xlu1 %v6567_v10, %s10180_s20  ;;  %s10182_s20 = smov [#allocation22]  }
0x223e   : > { %s10067_s5 = sshll.u32 %s10182_s20, 4  ;;  %s10068_s5 = int_to_ptr.vmem [resolvable:$false] %s10067_s5 }
0x223f   : > { %s10069_s27 = scalar_lea.vmem %s10068_s5, 32  ;;  %p10070_p10 = scmp.lt.s32.totalorder %s7505_s25, %s10068_s5 }
0x2240   : > { %p10071_p12 = scmp.lt.s32.totalorder %s10069_s27, %s10063_s26 }
0x2242   : > { %p10072_p7 = por %p10071_p12, %p10070_p10 }
0x2244   : > { %p10073_p2 = pnand %p10072_p7, %p10066_p6 }
0x229f   : > { %v6570_v12 = vpop.permute.xlu1 %6569 }
0x22a0   : > { %v6579_v13 = vsel %vm1121_vm2, %v6564_v40, %v6570_v12  ;;  %v9471_v40 = vld [vmem:[#allocation19 + $0x364] ss:$16 sps:$4 sm:$0xff]  }
0x22a1   : > { %6968 = vmatprep.subr.bf16.mxu1 %v9471_v40  ;;  %v9520_v40 = vld [vmem:[#allocation20 + $0x388] sm:$0xff]  }
0x22a2   : > { %6969 = vmatpush1.bf16.msra.mxu1 %v9469_v59  ;;  %v9522_v59 = vld [vmem:[#allocation20 + $0x3c0] sm:$0xff]  }
0x22a3   : > { %6970 = vmatprep.subr.bf16.mxu1 %v9477_v39  ;;  %v9524_v39 = vld [vmem:[#allocation20 + $0x380] sm:$0xff]  }
0x22a6   : > { %6971 = vmatpush1.bf16.msra.mxu1 %v9475_v62 }
0x22a7   : > { %v6573_v0 = vpop.permute.xlu0 %6572  ;;  %6972 = vmatprep.subr.bf16.mxu1 %v9483_v47 }
0x22a8   : > { %v6581_v14 = vsel %vm1595_vm4, %v6579_v13, %v6573_v0 }
0x22aa   : > { %6973 = vmatpush1.bf16.msra.mxu1 %v9481_v2 }
0x22ab   : > { %6974 = vmatprep.subr.bf16.mxu1 %v9489_v49 }
0x22ae   : > { %6975 = vmatpush1.bf16.msra.mxu1 %v9487_v4 }
0x22af   : > { %v6576_v15 = vpop.permute.xlu1 %6575 }
0x22b0   : > { %v6583_v17 = vsel %vm1598_vm5, %v6581_v14, %v6576_v15  ;;  %v8095_v14 = vld [vmem:[#allocation13 + $0x3] ss:$0 sm:$0xff] }
0x22b1   : > { %8860 = vmatmul.mubr.bf16.vlgmr.msra.gmra.mxu0 %v6583_v17 }
0x22b2   : > { %7035 = vmatprep.mubr.bf16.mxu0 %v10178_v42  ;;  %v9450_v42 = vld [vmem:[#allocation19 + $0x3ec] ss:$16 sps:$4 sm:$0xff]  }
0x22b3   : > { %7003 = vmatprep.subr.bf16.mxu0 %v9450_v42  ;;  %v9499_v42 = vld [vmem:[#allocation20 + $0x330] sm:$0xff]  }
0x22b4   : > { %7004 = vmatpush1.bf16.msra.mxu0 %v9448_v29  ;;  %v9498_v29 = vld [vmem:[#allocation20 + $0x3f0] sm:$0xff]  }
0x22b5   : > { %7005 = vmatprep.subr.bf16.mxu0 %v9456_v44  ;;  %v9509_v44 = vld [vmem:[#allocation20 + $0x358] sm:$0xff]  }
0x22b8   : > { %7006 = vmatpush1.bf16.msra.mxu0 %v9454_v8  ;;  %v9511_v8 = vld [vmem:[#allocation20 + $0x318] sm:$0xff]  }
0x22b9   : > { %7007 = vmatprep.subr.bf16.mxu0 %v9462_v46  ;;  %v9513_v46 = vld [vmem:[#allocation20 + $0x350] sm:$0xff]  }
0x22bc   : > { %7008 = vmatpush1.bf16.msra.mxu0 %v9460_v54  ;;  %v9515_v54 = vld [vmem:[#allocation20 + $0x310] sm:$0xff]  }
0x22bd   : > { %7009 = vmatprep.subr.bf16.mxu0 %v9468_v32  ;;  %v9517_v32 = vld [vmem:[#allocation20 + $0x348] sm:$0xff]  }
0x22c0   : > { %7010 = vmatpush1.bf16.msra.mxu0 %v9466_v57  ;;  %v9519_v57 = vld [vmem:[#allocation20 + $0x308] sm:$0xff]  }
0x22c1   : > { %7011 = vmatprep.subr.bf16.mxu0 %v9474_v58  ;;  %v9521_v58 = vld [vmem:[#allocation20 + $0x340] sm:$0xff]  }
0x22c4   : > { %7012 = vmatpush1.bf16.msra.mxu0 %v9472_v60  ;;  %v9523_v60 = vld [vmem:[#allocation20 + $0x300] sm:$0xff]  }
0x22c5   : > { %7013 = vmatprep.subr.bf16.mxu0 %v9480_v52  ;;  %v8097_v52 = vld [vmem:[%s11199_s13 + $0xc] sm:$0xf] }
0x22c6   : > { %v6783_v62 = vrot.slane %v8097_v52, %v10575_v61  ;;  %v6787_v2 = vrot.slane %v8097_v52, %v10571_v55 }
0x22c8   : > { %7014 = vmatpush1.bf16.msra.mxu0 %v9478_v63  ;;  %v6791_v63 = vrot.slane %v8097_v52, %v10568_v53 }
0x22c9   : > { %7015 = vmatprep.subr.bf16.mxu0 %v9486_v1 }
0x22cc   : > { %7016 = vmatpush1.bf16.msra.mxu0 %v9484_v48  ;;  %v6795_v48 = vrot.slane %v8097_v52, %v10684_v25 }
0x22cd   : > { %7017 = vmatprep.subr.bf16.mxu0 %v9492_v3 }
0x22d0   : > { %7018 = vmatpush1.bf16.msra.mxu0 %v9490_v5 }
0x2371   : > { %v6692_v18 = vpop.f32.mrf.mxu0 }
0x2372   : > { %v6693_v33 = vadd.f32 %v8086_v16, %v6692_v18  ;;  %v8096_v18 = vld [vmem:[#allocation14 + $0x3] ss:$0 sm:$0xff] }
0x2373   : > { %v8861_v19 = vpop.f32.mrf.mxu0 }
0x2374   : > { %v6699_v20 = vadd.f32 %v6693_v33, %v11021_v26 }
0x2375   : > { %v6695_v21 = vpop.f32.mrf.mxu0 }
0x2376   : > { %v6696_v22 = vadd.f32 %v8086_v16, %v6695_v21  ;;  %6705 = vadd.xlane.f32.xlu0 %v6699_v20 }
0x2377   : > { %v8862_v23 = vpop.f32.mrf.mxu0 }
0x2378   : > { %v6700_v27 = vadd.f32 %v6696_v22, %v11023_v24  ;;  %v9493_v22 = vld [vmem:[#allocation20 + $0x378] sm:$0xff]  }
0x2379   : > { %v9494_v23 = vld [vmem:[#allocation20 + $0x3f8] sm:$0xff]   ;;  %8447 = vmatprep.subr.bf16.mxu1 %v9493_v22 }
0x237a   : > { %6707 = vadd.xlane.f32.xlu1 %v6700_v27  ;;  %8469 = vmatprep.subr.bf16.mxu0 %v9494_v23 }
0x23ff   : > { %v6706_v30 = vpop.xlane.xlu0 %6705 }
0x2400   : > { %v6709_v35 = vmul.f32 0.0078125, %v6706_v30  ;;  %v9500_v30 = vld [vmem:[#allocation20 + $0x3b0] sm:$0xff]  }
0x2402   : > { %v11122_v50 = vsub.f32 %v6699_v20, %v6709_v35  ;;  %v9501_v35 = vld [vmem:[#allocation20 + $0x368] sm:$0xff]  }
0x2403   : > { %v6708_v26 = vpop.xlane.xlu1 %6707 }
0x2404   : > { %v6710_v36 = vmul.f32 0.0078125, %v6708_v26  ;;  %v6713_v37 = vmul.f32 %v11122_v50, %v11122_v50  ;;  %v9503_v26 = vld [vmem:[#allocation20 + $0x328] sm:$0xff]  }
0x2406   : > { %v11126_v38 = vsub.f32 %v6700_v27, %v6710_v36  ;;  %6715 = vadd.xlane.f32.xlu0 %v6713_v37  ;;  %v9495_v27 = vld [vmem:[#allocation20 + $0x338] sm:$0xff]   ;;  %v9504_v36 = vld [vmem:[#allocation20 + $0x3a8] sm:$0xff]   ;;  %v9505_v37 = vld [vmem:[#allocation20 + $0x360] sm:$0xff]  }
0x2408   : > { %v6714_v24 = vmul.f32 %v11126_v38, %v11126_v38 }
0x240a   : > { %6717 = vadd.xlane.f32.xlu0 %v6714_v24  ;;  %v9507_v24 = vld [vmem:[#allocation20 + $0x320] sm:$0xff]  }
0x248f   : > { %v6716_v6 = vpop.xlane.xlu0 %6715 }
0x2490   : > { %v6719_v7 = vmul.f32 0.0078125, %v6716_v6 }
0x2492   : > { %v6721_v9 = vadd.f32 1e-05, %v6719_v7 }
0x2493   : > { %v6718_v10 = vpop.xlane.xlu0 %6717 }
0x2494   : > { %9725 = vrsqrt.f32 %v6721_v9  ;;  %v6720_v11 = vmul.f32 0.0078125, %v6718_v10 }
0x2496   : > { %v6722_v12 = vadd.f32 1e-05, %v6720_v11 }
0x2498   : > { %9727 = vrsqrt.f32 %v6722_v12 }
0x24a1   : > { %v9726_v0 = vpop.eup %9725 }
0x24a2   : > { %v6725_v13 = vmul.f32 %v9726_v0, %v11122_v50  ;;  %v9502_v50 = vld [vmem:[#allocation20 + $0x3e8] sm:$0xff]  }
0x24a4   : > { %v6733_v16 = vmul.f32 %v8095_v14, %v6725_v13 }
0x24a5   : > { %v9728_v15 = vpop.eup %9727 }
0x24a6   : > { %v6726_v17 = vmul.f32 %v9728_v15, %v11126_v38  ;;  %v11132_v19 = vadd.f32 %v8096_v18, %v6733_v16  ;;  %v9506_v38 = vld [vmem:[#allocation20 + $0x3e0] sm:$0xff]  }
0x24a8   : > { %v6734_v33 = vmul.f32 %v8095_v14, %v6726_v17 }
0x24aa   : > { %v11134_v20 = vadd.f32 %v8096_v18, %v6734_v33 }
0x24ac   : > { %v6743_v21 = vpack.c.bf16 %v11134_v20, %v11132_v19 }
0x24ae   : > { %6993 = vmatmul.mubr.bf16.vlgmr.msra.gmra.mxu1 %v6743_v21  ;;  %7036 = vmatmul.mubr.bf16.vlgmr.msra.gmra.mxu0 %v6743_v21 }
0x24af   : > { %8448 = vmatpush3.bf16.msra.mxu1 %v9495_v27  ;;  %8470 = vmatpush3.bf16.msra.mxu0 %v9496_v41 }
0x24b0   : > { %8449 = vmatprep.subr.bf16.mxu1 %v9497_v28  ;;  %8471 = vmatprep.subr.bf16.mxu0 %v9498_v29 }
0x24b3   : > { %8450 = vmatpush3.bf16.msra.mxu1 %v9499_v42  ;;  %8472 = vmatpush3.bf16.msra.mxu0 %v9500_v30 }
0x24b4   : > { %8451 = vmatprep.subr.bf16.mxu1 %v9501_v35  ;;  %8473 = vmatprep.subr.bf16.mxu0 %v9502_v50 }
0x24b7   : > { %8452 = vmatpush3.bf16.msra.mxu1 %v9503_v26  ;;  %8474 = vmatpush3.bf16.msra.mxu0 %v9504_v36 }
0x24b8   : > { %8453 = vmatprep.subr.bf16.mxu1 %v9505_v37  ;;  %8475 = vmatprep.subr.bf16.mxu0 %v9506_v38 }
0x24bb   : > { %8454 = vmatpush3.bf16.msra.mxu1 %v9507_v24  ;;  %8476 = vmatpush3.bf16.msra.mxu0 %v9508_v43 }
0x24bc   : > { %8455 = vmatprep.subr.bf16.mxu1 %v9509_v44  ;;  %8477 = vmatprep.subr.bf16.mxu0 %v9510_v45 }
0x24bf   : > { %8456 = vmatpush3.bf16.msra.mxu1 %v9511_v8  ;;  %8478 = vmatpush3.bf16.msra.mxu0 %v9512_v34 }
0x24c0   : > { %8457 = vmatprep.subr.bf16.mxu1 %v9513_v46  ;;  %8479 = vmatprep.subr.bf16.mxu0 %v9514_v51 }
0x24c3   : > { %8458 = vmatpush3.bf16.msra.mxu1 %v9515_v54  ;;  %8480 = vmatpush3.bf16.msra.mxu0 %v9516_v31 }
0x24c4   : > { %8459 = vmatprep.subr.bf16.mxu1 %v9517_v32  ;;  %8481 = vmatprep.subr.bf16.mxu0 %v9518_v56 }
0x24c7   : > { %8460 = vmatpush3.bf16.msra.mxu1 %v9519_v57  ;;  %8482 = vmatpush3.bf16.msra.mxu0 %v9520_v40 }
0x24c8   : > { %8461 = vmatprep.subr.bf16.mxu1 %v9521_v58  ;;  %8483 = vmatprep.subr.bf16.mxu0 %v9522_v59 }
0x24cb   : > { %8462 = vmatpush3.bf16.msra.mxu1 %v9523_v60  ;;  %8484 = vmatpush3.bf16.msra.mxu0 %v9524_v39 }
0x256e   : > { %v6994_v47 = vpop.f32.mrf.mxu1  ;;  %v7037_v1 = vpop.f32.mrf.mxu0 }
0x256f   : > { %v6995_v49 = vadd.f32 %v6994_v47, %v6783_v62  ;;  %v7038_v3 = vadd.f32 %v7037_v1, %v6791_v63 }
0x2570   : > { %v6996_v4 = vpop.f32.mrf.mxu1  ;;  %v7039_v5 = vpop.f32.mrf.mxu0 }
0x2571   : > { %v7054_v6 = vmul.f32 0.70710677, %v6995_v49  ;;  %v7056_v7 = vmul.f32 0.70710677, %v7038_v3  ;;  %v6997_v9 = vadd.f32 %v6996_v4, %v6787_v2  ;;  %v7040_v10 = vadd.f32 %v7039_v5, %v6795_v48 }
0x2572   : > { %v6998_v11 = vpop.f32.mrf.mxu1  ;;  %v7041_v12 = vpop.f32.mrf.mxu0  ;;  %v7046_v29 = vmul.f32 0.5, %v6995_v49  ;;  %v7048_v31 = vmul.f32 0.5, %v7038_v3 }
0x2573   : > { %v6999_v0 = vadd.f32 %v6998_v11, %v6783_v62  ;;  %v7042_v61 = vadd.f32 %v7041_v12, %v6791_v63  ;;  %9729 = verf.f32 %v7054_v6  ;;  %v7055_v53 = vmul.f32 0.70710677, %v6997_v9 }
0x2574   : > { %v7000_v13 = vpop.f32.mrf.mxu1  ;;  %v7043_v14 = vpop.f32.mrf.mxu0  ;;  %9731 = verf.f32 %v7056_v7  ;;  %v7057_v55 = vmul.f32 0.70710677, %v7040_v10  ;;  %v7047_v42 = vmul.f32 0.5, %v6997_v9  ;;  %v7049_v34 = vmul.f32 0.5, %v7040_v10 }
0x2575   : > { %v7058_v15 = vmul.f32 0.70710677, %v6999_v0  ;;  %9733 = verf.f32 %v7055_v53  ;;  %v7060_v25 = vmul.f32 0.70710677, %v7042_v61  ;;  %v7001_v17 = vadd.f32 %v7000_v13, %v6787_v2  ;;  %v8131_v2 = vld [vmem:[%s11264_s10 + $0x3] ss:$0 sm:$0xff] }
0x2576   : > { %v7044_v16 = vadd.f32 %v7043_v14, %v6795_v48  ;;  %9735 = verf.f32 %v7057_v55  ;;  %v7050_v37 = vmul.f32 0.5, %v6999_v0  ;;  %v7052_v44 = vmul.f32 0.5, %v7042_v61 }
0x2577   : > { %9737 = verf.f32 %v7058_v15  ;;  %v7059_v18 = vmul.f32 0.70710677, %v7001_v17  ;;  %v7051_v45 = vmul.f32 0.5, %v7001_v17 }
0x2578   : > { %9739 = verf.f32 %v7060_v25  ;;  %v7061_v33 = vmul.f32 0.70710677, %v7044_v16  ;;  %v7053_v51 = vmul.f32 0.5, %v7044_v16 }
0x2579   : > { %9741 = verf.f32 %v7059_v18 }
0x257a   : > { %9743 = verf.f32 %v7061_v33 }
0x2580   : > { %v9730_v21 = vpop.eup %9729 }
0x2581   : > { %v9732_v22 = vpop.eup %9731  ;;  %v7070_v26 = vadd.f32 1.0, %v9730_v21 }
0x2582   : > { %v9734_v23 = vpop.eup %9733  ;;  %v7072_v43 = vadd.f32 1.0, %v9732_v22 }
0x2583   : > { %v9736_v27 = vpop.eup %9735  ;;  %v7071_v30 = vadd.f32 1.0, %v9734_v23  ;;  %v7078_v40 = vmul.f32 %v7070_v26, %v7046_v29  ;;  %v8165_v26 = vld [vmem:[#allocation17 + $0x3] ss:$0 sm:$0xff] }
0x2584   : > { %v9738_v41 = vpop.eup %9737  ;;  %v7073_v36 = vadd.f32 1.0, %v9736_v27  ;;  %v7080_v60 = vmul.f32 %v7072_v43, %v7048_v31 }
0x2585   : > { %v9740_v28 = vpop.eup %9739  ;;  %v7074_v35 = vadd.f32 1.0, %v9738_v41  ;;  %v7079_v32 = vmul.f32 %v7071_v30, %v7047_v42  ;;  %v8164_v42 = vld [vmem:[#allocation16 + $0x3] ss:$0 sm:$0xff] }
0x2586   : > { %v9742_v50 = vpop.eup %9741  ;;  %v7076_v38 = vadd.f32 1.0, %v9740_v28  ;;  %v7081_v58 = vmul.f32 %v7073_v36, %v7049_v34 }
0x2587   : > { %v9744_v24 = vpop.eup %9743  ;;  %v7075_v8 = vadd.f32 1.0, %v9742_v50  ;;  %v7082_v46 = vmul.f32 %v7074_v35, %v7050_v37 }
0x2588   : > { %v7077_v54 = vadd.f32 1.0, %v9744_v24  ;;  %v7084_v56 = vmul.f32 %v7076_v38, %v7052_v44 }
0x2589   : > { %v7083_v57 = vmul.f32 %v7075_v8, %v7051_v45  ;;  %v7086_v52 = vpack.c.bf16 %v7082_v46, %v7078_v40 }
0x258a   : > { %v7085_v59 = vmul.f32 %v7077_v54, %v7053_v51  ;;  %v7088_v63 = vpack.c.bf16 %v7084_v56, %v7080_v60 }
0x258b   : > { %v7087_v39 = vpack.c.bf16 %v7083_v57, %v7079_v32 }
0x258c   : > { %v7089_v62 = vpack.c.bf16 %v7085_v59, %v7081_v58 }
0x258d   : > { %7387 = vmatprep.mubr.bf16.mxu1 %v7087_v39 }
0x258e   : > { %7428 = vmatprep.mubr.bf16.mxu0 %v7089_v62  ;;  %7388 = vmatmul.mubr.bf16.vlgmr.msra.gmra.mxu1 %v7086_v52 }
0x258f   : > { %7429 = vmatmul.mubr.bf16.vlgmr.msra.gmra.mxu0 %v7088_v63 }
0x264e   : > { %v8463_v47 = vpop.f32.mrf.mxu1 }
0x264f   : > { %v8485_v1 = vpop.f32.mrf.mxu0 }
0x2650   : > { %v8464_v48 = vpop.f32.mrf.mxu1 }
0x2651   : > { %v8465_v49 = vadd.f32 %v8464_v48, %v8463_v47  ;;  %v8486_v3 = vpop.f32.mrf.mxu0 }
0x2652   : > { %v8466_v4 = vpop.f32.mrf.mxu1  ;;  %v8487_v6 = vadd.f32 %v8486_v3, %v8485_v1 }
0x2653   : > { %v7390_v5 = vadd.f32 %v8465_v49, %v8131_v2  ;;  %v8488_v7 = vpop.f32.mrf.mxu0 }
0x2654   : > { %v8467_v9 = vpop.f32.mrf.mxu1 }
0x2655   : > { %v7431_v10 = vadd.f32 %v8487_v6, %v7390_v5  ;;  %v8468_v11 = vadd.f32 %v8467_v9, %v8466_v4  ;;  %v8489_v12 = vpop.f32.mrf.mxu0 }
0x2656   : > { %v8490_v61 = vadd.f32 %v8489_v12, %v8488_v7 }
0x2657   : > { %v7393_v0 = vadd.f32 %v8468_v11, %v8131_v2  ;;  %v7437_v53 = vadd.f32 %v7431_v10, %v11132_v19 }
0x2659   : > { %v7434_v13 = vadd.f32 %v8490_v61, %v7393_v0  ;;  %7443 = vadd.xlane.f32.xlu1 %v7437_v53 }
0x265b   : > { %v7438_v14 = vadd.f32 %v7434_v13, %v11134_v20 }
0x265d   : > { %7445 = vadd.xlane.f32.xlu0 %v7438_v14 }
0x26e2   : > { %v7444_v55 = vpop.xlane.xlu1 %7443 }
0x26e3   : > { %v7447_v15 = vmul.f32 0.0078125, %v7444_v55 }
0x26e5   : > { %v7449_v25 = vsub.f32 %v7437_v53, %v7447_v15 }
0x26e6   : > { %v7446_v17 = vpop.xlane.xlu0 %7445 }
0x26e7   : > { %v7448_v16 = vmul.f32 0.0078125, %v7446_v17  ;;  %v7451_v18 = vmul.f32 %v7449_v25, %v7449_v25 }
0x26e9   : > { %v7450_v33 = vsub.f32 %v7438_v14, %v7448_v16  ;;  %7453 = vadd.xlane.f32.xlu1 %v7451_v18 }
0x26eb   : > { %v7452_v21 = vmul.f32 %v7450_v33, %v7450_v33 }
0x26ed   : > { %7455 = vadd.xlane.f32.xlu0 %v7452_v21 }
0x2772   : > { %v7454_v22 = vpop.xlane.xlu1 %7453 }
0x2773   : > { %v7457_v23 = vmul.f32 0.0078125, %v7454_v22 }
0x2775   : > { %v7459_v27 = vadd.f32 1e-05, %v7457_v23 }
0x2776   : > { %v7456_v41 = vpop.xlane.xlu0 %7455 }
0x2777   : > { %9745 = vrsqrt.f32 %v7459_v27  ;;  %v7458_v19 = vmul.f32 0.0078125, %v7456_v41 }
0x2779   : > { %v7460_v28 = vadd.f32 1e-05, %v7458_v19 }
0x277b   : > { %9747 = vrsqrt.f32 %v7460_v28 }
0x2784   : > { %v9746_v20 = vpop.eup %9745 }
0x2785   : > { %v7463_v29 = vmul.f32 %v9746_v20, %v7449_v25 }
0x2787   : > { %v7471_v35 = vmul.f32 %v8164_v42, %v7463_v29 }
0x2788   : > { %v9748_v30 = vpop.eup %9747 }
0x2789   : > { %v7464_v50 = vmul.f32 %v9748_v30, %v7450_v33  ;;  %v7479_v37 = vadd.f32 %v8165_v26, %v7471_v35 }
0x278b   : > { %v7472_v36 = vmul.f32 %v8164_v42, %v7464_v50 }
0x278d   : > { %v7480_v38 = vadd.f32 %v8165_v26, %v7472_v36 }
0x278f   : > { %v7481_v24 = vadd.f32 %v7480_v38, %v7479_v37 }
0x2791   : > { %v7482_v43 = vrot.slane %v7481_v24, 4 }
0x2793   : > { %v7483_v44 = vadd.f32 %v7482_v43, %v7481_v24 }
0x2795   : > { %v7484_v45 = vrot.slane %v7483_v44, 2 }
0x2797   : > { %v7485_v8 = vadd.f32 %v7484_v45, %v7483_v44 }
0x2799   : > { %v7486_v34 = vrot.slane %v7485_v8, 1 }
0x279b   : > { %v7487_v46 = vadd.f32 %v7486_v34, %v7485_v8 }
0x279d   : > { %v7489_v51 = vmul.f32 0.0625, %v7487_v46 }
0x279f   : > { %7490 = vst [vmem:[%s696_s4] sm:$0x1] %v7489_v51 }
0x27a0   : > { %10076 = shalt.err (!%p10073_p2)
}
0x27a1   : > { %s10077_s8 = scalar_lea.hbm %s7502_s0, 16  ;;  %s10081_s17 = scalar_lea.hbm %s11265_s30, 32 }
0x27a2   : > { %p10078_p9 = scmp.ne.s32.totalorder %s7502_s0, %s10077_s8  ;;  %p10082_p8 = scmp.lt.s32.totalorder %s7502_s0, %s11265_s30 }
0x27a3   : > { %p10083_p13 = scmp.lt.s32.totalorder %s10081_s17, %s10077_s8 }
0x27a4   : > { %p10079_p5 = pnand %p10078_p9, %p11266_p3 }
0x27a5   : > { %p10084_p0 = por %p10083_p13, %p10082_p8 }
0x27a6   : > { %p10080_p11 = pneg %p10079_p5 }
0x27a8   : > { %p10085_p1 = pnand %p10084_p0, %p10080_p11 }
0x27aa   : > { %10088 = shalt.err (!%p10085_p1)
}
0x27ab   : > { %8909 = dma.vmem_to_hbm [thread:$0]  (%p11266_p3), %s7505_s25, 16, %s7502_s0, %s7492_s28  }
0x27ac PF: > { %s7516_s6 = sand.u32 1, %s10139_s21   ;;  %p11267_p4 = scmp.ne.s32.totalorder %s11247_s16, 0 }
0x27ad   : > { %p11268_p6 = scmp.ge.s32.totalorder %s10151_s24, 2  ;;  %s7517_s26 = scalar_lea.sflag [#allocation4], %s7516_s6 }
0x27af   : > { %p8950_p10 = pnand %p11268_p6, %p11267_p4 }
0x27b1   : > { %p8951_p12 = pneg %p8950_p10 }
0x27b3   : > { %10134 = dma.done.wait (%p8951_p12), %s7517_s26, 16  }
0x27b4   : > { %10136 = vsyncadd (%p8951_p12), %s7517_s26, 4294967280  ;;  %p35_p7 = scmp.ge.s32.totalorder %s10421_s19, 4   ;;  %s11269_s21 = smov %s10143_s22 }
0x27b5   : > { %s11270_s22 = smov %s10147_s23  ;;  %s11271_s23 = smov %s10432_s29 }
0x27b6   : > { %s11272_s24 = smov %s10421_s19  ;;  %37 = sbr.rel (!%p35_p7) target bundleno = 23 (0x17), region = 209 }
0x27bb   :  { %7521 = vsyncpa [#allocation3], 1 }
0x27bc   :  { %7523 = vsyncpa [#allocation3 + $0x1], 1 }
0x27bd   :  { %7524 = vsyncpa [#allocation6], 1 }
0x27be   :  { %7525 = vsyncpa [#allocation9], 1 }
0x27bf   :  { %7526 = vsyncpa [#allocation12], 1 }
0x27c0   :  { %7527 = vsyncpa [#allocation15], 1 }
0x27c1   :  { %7528 = vsyncpa [#allocation18], 1 }
0x27c2   :  { %7529 = vsyncpa [#allocation21], 1 }
0x27c3   :  { %7530 = vsyncpa [#allocation4], 1 }
0x27c4   :  { %7532 = vsyncpa [#allocation4 + $0x1], 1 }

</bundles_post_ra>
